<compile_context>
chip_gen: v7x
topology: tpu7x:2x2x1
jax: 0.10.0
libtpu: 0.0.40
codegen_flags: <defaults>
</compile_context>

<pallas_src>
import math
import numpy as np
import jax
import jax.numpy as jnp
from jax.experimental import pallas as pl
from jax.experimental.pallas import tpu as pltpu

# ---- problem sizes (small, consistent with the module) ----
B = 2            # batch
WAV_CHAN = 4     # dm.wav_chan
EEG_CHAN = 4     # dm.eeg_chan
C = WAV_CHAN
H = 32           # mm.h  (embed dim of the cross-modal attention)
T = 128          # window_length = time_len * eeg_fs  (e.g. 1 s * 128 Hz)
CMA_LAYERS = 1   # mm.cma_layer
SCALE = H ** (-0.5)   # MultiheadAttention scaling, num_heads = 1 -> head_dim = H

assert WAV_CHAN == EEG_CHAN, "folded weights assume a single input-channel count"
assert CMA_LAYERS == 1, "conv-fold into in_proj is only valid for a single CMA layer"


def _multi_tensorcore_chip() -> bool:
    # v7x has 2 TensorCores per chip -> keep grid=(B,) so B=2 shards across cores.
    # v5e / v6e are single-TC -> fold the whole batch into one grid step.
    try:
        kind = jax.devices()[0].device_kind.lower()
    except Exception:
        return False
    return ("v7" in kind) or ("7x" in kind)


B_BLK = 1 if _multi_tensorcore_chip() else B     # batches handled per grid step
GRID = (B // B_BLK,)
DIM_SEMANTICS = ("parallel",) if B_BLK == 1 else ("arbitrary",)


def cmaa_kernel(wav_cm_ref, eeg_cm_ref, wav_tm_ref, eeg_tm_ref,
                wq_ref, wkv_ref, qb_ref, kvb_ref, outw_ref, outb_ref,
                out_ref):
    # wav_cm_ref : (B_BLK, C, 2T)  channel-major; cols 0:T = bs1 (wavA), T:2T = bs2 (wavB)
    # eeg_cm_ref : (B_BLK, C, T)   channel-major eeg
    # wav_tm_ref : (B_BLK, 2T, C)  time-major (only the Q projections need it)
    # eeg_tm_ref : (B_BLK, T, C)
    # wq_ref     : (2, C, H)   folded, scaled Q weights  [module0(wav-q), module1(eeg-q)]
    # wkv_ref    : (2, 2H, C)  folded K/V weights        [wav-sourced (k1;v1), eeg-sourced (k0;v0)]
    # qb_ref     : (2, H)      scaled Q biases
    # kvb_ref    : (2H, 2)     K/V biases (col 0 wav-sourced, col 1 eeg-sourced)
    # outw_ref   : (2, H, H)   out_proj weights (used channel-major: o = W @ a + b)
    # outb_ref   : (H, 2)      out_proj biases
    # out_ref    : (B_BLK, 2)  SMEM scalars
    wq0 = wq_ref[0]
    wq1 = wq_ref[1]
    wkv_wav = wkv_ref[0]            # (2H, C)  rows [k1; v1]
    wkv_eeg = wkv_ref[1]            # (2H, C)  rows [k0; v0]
    qb0 = qb_ref[0:1, :]            # (1, H)
    qb1 = qb_ref[1:2, :]
    kvb_wav = kvb_ref[:, 0:1]       # (2H, 1)
    kvb_eeg = kvb_ref[:, 1:2]
    w_o0 = outw_ref[0]              # (H, H)
    w_o1 = outw_ref[1]
    b_o0 = outb_ref[:, 0:1]         # (H, 1)
    b_o1 = outb_ref[:, 1:2]

    def mm(a, b):
        return jnp.dot(a, b, preferred_element_type=jnp.float32)

    def mm_bt(a, b):  # (M, K) x (N, K) -> (M, N), contract the lane dims
        return jax.lax.dot_general(a, b, (((1,), (1,)), ((), ())),
                                   preferred_element_type=jnp.float32)

    def softmax_rows(s):  # softmax over the last (lane) dim
        m = jnp.max(s, axis=-1, keepdims=True)
        e = jnp.exp(s - m)
        return e * pl.reciprocal(jnp.sum(e, axis=-1, keepdims=True), approx=True)

    def cos_sum(x, y):  # x, y: (H, T) channel-major; per-time cosine over H, summed over T
        dab = jnp.sum(x * y, axis=0, keepdims=True)   # (1, T) sublane reduction
        nx = jnp.sum(x * x, axis=0, keepdims=True)
        ny = jnp.sum(y * y, axis=0, keepdims=True)
        # Matches Model.dot(): no epsilon clamp on the norms (same as the PyTorch module).
        return jnp.sum(dab * jax.lax.rsqrt(nx * ny))

    for b in range(B_BLK):  # static unroll (B_BLK in {1, 2})
        wav_cm = wav_cm_ref[b]    # (C, 2T)
        eeg_cm = eeg_cm_ref[b]    # (C, T)
        wav_tm = wav_tm_ref[b]    # (2T, C)
        eeg_tm = eeg_tm_ref[b]    # (T, C)

        # ---- projections (conv + in_proj + scaling folded host-side) ----
        kv_wav = mm(wkv_wav, wav_cm) + kvb_wav   # (2H, 2T): rows 0:H = k1, H:2H = v1
        kv_eeg = mm(wkv_eeg, eeg_cm) + kvb_eeg   # (2H, T):  rows 0:H = k0, H:2H = v0
        q0 = mm(wav_tm, wq0) + qb0               # (2T, H) scaled; rows 0:T wavA, T:2T wavB
        q1 = mm(eeg_tm, wq1) + qb1               # (T, H)  scaled, shared eeg query

        k1 = kv_wav[0:H]
        v1 = kv_wav[H:2 * H]                     # (H, 2T)
        k0 = kv_eeg[0:H]
        v0 = kv_eeg[H:2 * H]                     # (H, T)

        # ---- module 0 (streams 0 & 3): q = wavA|wavB stacked along time, kv = eeg shared ----
        p0 = softmax_rows(mm(q0, k0))            # (2T, T)
        a0 = mm_bt(v0, p0)                       # (H, 2T)
        o0 = mm(w_o0, a0) + b_o0                 # (H, 2T): cols 0:T = data0, T:2T = data3

        # ---- module 1 (streams 1 & 2): q = eeg shared, kv = wavA / wavB halves (no concat) ----
        s1 = mm(q1, k1)                          # (T, 2T)
        d1 = mm(w_o1, mm_bt(v1[:, 0:T], softmax_rows(s1[:, 0:T]))) + b_o1          # (H, T) data1
        d2 = mm(w_o1, mm_bt(v1[:, T:2 * T], softmax_rows(s1[:, T:2 * T]))) + b_o1  # (H, T) data2

        # ---- per-time-step cosine similarity, summed over time ----
        out_ref[b, 0] = cos_sum(o0[:, 0:T], d1)          # sum_t cos(data0, data1)
        out_ref[b, 1] = cos_sum(o0[:, T:2 * T], d2)      # sum_t cos(data3, data2)


def prepare_params(params):
    """One-time host-side folding / packing of all weights (hoisted out of the call path)."""
    (pa_w, pi_w,
     in_w0, in_b0, out_w0, out_b0,
     in_w1, in_b1, out_w1, out_b1) = params

    wq0, wk0, wv0 = in_w0[:H], in_w0[H:2 * H], in_w0[2 * H:]
    wq1, wk1, wv1 = in_w1[:H], in_w1[H:2 * H], in_w1[2 * H:]
    bq0, bk0, bv0 = in_b0[0, :H], in_b0[0, H:2 * H], in_b0[0, 2 * H:]
    bq1, bk1, bv1 = in_b1[0, :H], in_b1[0, H:2 * H], in_b1[0, 2 * H:]

    # fold the 1x1 conv projections and the attention scaling into the in_proj weights
    wq = jnp.stack([(SCALE * (wq0 @ pa_w)).T,        # module 0 query (wav input), (C, H)
                    (SCALE * (wq1 @ pi_w)).T], 0)    # module 1 query (eeg input)
    wkv = jnp.stack([jnp.concatenate([wk1 @ pa_w, wv1 @ pa_w], axis=0),   # wav-sourced K/V
                     jnp.concatenate([wk0 @ pi_w, wv0 @ pi_w], axis=0)],  # eeg-sourced K/V
                    axis=0)                                               # (2, 2H, C)
    qb = jnp.stack([SCALE * bq0, SCALE * bq1], axis=0)                    # (2, H)
    kvb = jnp.stack([jnp.concatenate([bk1, bv1], axis=0),
                     jnp.concatenate([bk0, bv0], axis=0)], axis=1)        # (2H, 2)
    outw = jnp.stack([out_w0, out_w1], axis=0)                            # (2, H, H)
    outb = jnp.stack([out_b0[0], out_b1[0]], axis=1)                      # (H, 2)

    prepared = (wq, wkv, qb, kvb, outw, outb)
    return jax.tree_util.tree_map(jax.device_put, prepared)


@jax.jit
def _cmaa_pallas(bs1, bs2, beeg, wq, wkv, qb, kvb, outw, outb):
    # activation layout plumbing fuses with the pallas_call under jit
    wav_cm = jnp.concatenate([bs1, bs2], axis=2)       # (B, C, 2T)  channel-major (native NCT)
    wav_tm = jnp.transpose(wav_cm, (0, 2, 1))          # (B, 2T, C)  time-major (Q path only)
    eeg_cm = beeg                                      # (B, C, T)
    eeg_tm = jnp.swapaxes(beeg, 1, 2)                  # (B, T, C)

    def wconst(shape):
        return pl.BlockSpec(shape, lambda g, _z=(0,) * len(shape): _z)

    return pl.pallas_call(
        cmaa_kernel,
        out_shape=jax.ShapeDtypeStruct((B, 2), jnp.float32),
        grid=GRID,
        in_specs=[
            pl.BlockSpec((B_BLK, C, 2 * T), lambda g: (g, 0, 0)),   # wav channel-major
            pl.BlockSpec((B_BLK, C, T), lambda g: (g, 0, 0)),       # eeg channel-major
            pl.BlockSpec((B_BLK, 2 * T, C), lambda g: (g, 0, 0)),   # wav time-major
            pl.BlockSpec((B_BLK, T, C), lambda g: (g, 0, 0)),       # eeg time-major
            wconst((2, C, H)),        # Q weights (folded, scaled)
            wconst((2, 2 * H, C)),    # K/V weights (folded)
            wconst((2, H)),           # Q biases
            wconst((2 * H, 2)),       # K/V biases
            wconst((2, H, H)),        # out_proj weights
            wconst((H, 2)),           # out_proj biases
        ],
        out_specs=pl.BlockSpec((B_BLK, 2), lambda g: (g, 0), memory_space=pltpu.SMEM),
        compiler_params=pltpu.CompilerParams(dimension_semantics=DIM_SEMANTICS),
    )(wav_cm, eeg_cm, wav_tm, eeg_tm, wq, wkv, qb, kvb, outw, outb)


def cmaa_forward(bs1, bs2, beeg, targets, prepared):
    out = _cmaa_pallas(bs1, bs2, beeg, *prepared)
    visualization_weights = []   # TODO(synk): per-head attention weight maps are not returned by the kernel
    return out, targets, visualization_weights


# ---------------- pure-JAX reference (for verification, uses the RAW unfused params) ----------------
def reference_forward(bs1, bs2, beeg, params):
    (pa_w, pi_w,
     in_w0, in_b0, out_w0, out_b0,
     in_w1, in_b1, out_w1, out_b1) = params
    mods = [(in_w0, in_b0[0], out_w0, out_b0[0]),
            (in_w1, in_b1[0], out_w1, out_b1[0])]

    proj = lambda x, w: jnp.einsum('hc,bct->bht', w, x)
    wavA, wavB, eeg = proj(bs1, pa_w), proj(bs2, pa_w), proj(beeg, pi_w)

    def mha(q_in, kv_in, in_w, in_b, out_w, out_b):
        xq = jnp.swapaxes(q_in, 1, 2)
        xkv = jnp.swapaxes(kv_in, 1, 2)
        wq, wk, wv = in_w[:H], in_w[H:2 * H], in_w[2 * H:]
        bq, bk, bv = in_b[:H], in_b[H:2 * H], in_b[2 * H:]
        q = (xq @ wq.T + bq) * SCALE
        k = xkv @ wk.T + bk
        v = xkv @ wv.T + bv
        s = jnp.einsum('bth,bsh->bts', q, k)
        p = jax.nn.softmax(s, axis=-1)
        a = jnp.einsum('bts,bsh->bth', p, v)
        o = a @ out_w.T + out_b
        return jnp.swapaxes(o, 1, 2)

    data = [wavA, eeg, eeg, wavB]
    kv = [eeg, wavA, wavB, eeg]
    hash_ = {0: 0, 1: 1, 2: 1, 3: 0}
    for _ in range(CMA_LAYERS):
        data = [mha(data[i], kv[i], *mods[hash_[i]]) for i in range(4)]

    def dot(a, b):
        c = jnp.sum(a * b, axis=1)
        na = jnp.linalg.norm(a, axis=1)
        nb = jnp.linalg.norm(b, axis=1)
        return jnp.sum(c / (na * nb), axis=-1)

    return jnp.stack([dot(data[0], data[1]), dot(data[3], data[2])], axis=-1)


if __name__ == "__main__":
    key = jax.random.PRNGKey(0)
    ks = jax.random.split(key, 16)

    # inputs (NCT, like PyTorch Conv1d)
    bs1 = jax.random.normal(ks[0], (B, WAV_CHAN, T), jnp.float32)
    bs2 = jax.random.normal(ks[1], (B, WAV_CHAN, T), jnp.float32)
    beeg = jax.random.normal(ks[2], (B, EEG_CHAN, T), jnp.float32)
    targets = jnp.arange(B, dtype=jnp.int32)

    # deterministic synthetic parameters (xavier-ish scale)
    def xav(k, shape):
        fan = shape[-1] + shape[-2] if len(shape) > 1 else shape[-1]
        return jax.random.normal(k, shape, jnp.float32) * math.sqrt(2.0 / fan)

    pa_w = xav(ks[3], (H, WAV_CHAN))              # proj_audio Conv1d(ks=1) weight
    pi_w = xav(ks[4], (H, EEG_CHAN))              # proj_images Conv1d(ks=1) weight
    in_w0 = xav(ks[5], (3 * H, H))
    in_b0 = 0.01 * jax.random.normal(ks[6], (1, 3 * H), jnp.float32)
    out_w0 = xav(ks[7], (H, H))
    out_b0 = 0.01 * jax.random.normal(ks[8], (1, H), jnp.float32)
    in_w1 = xav(ks[9], (3 * H, H))
    in_b1 = 0.01 * jax.random.normal(ks[10], (1, 3 * H), jnp.float32)
    out_w1 = xav(ks[11], (H, H))
    out_b1 = 0.01 * jax.random.normal(ks[12], (1, H), jnp.float32)

    params = (pa_w, pi_w,
              in_w0, in_b0, out_w0, out_b0,
              in_w1, in_b1, out_w1, out_b1)

    prepared = prepare_params(params)   # one-time host-side folding

    out, tgt, vis = cmaa_forward(bs1, bs2, beeg, targets, prepared)
    out = jax.block_until_ready(out)

    ref = jax.block_until_ready(reference_forward(bs1, bs2, beeg, params))
    # slightly relaxed tolerance: softmax uses the EUP approximate reciprocal
    np.testing.assert_allclose(np.asarray(out), np.asarray(ref), rtol=5e-3, atol=5e-3)

    assert out.shape == (B, 2)
    print("KERNEL_OK")
</pallas_src>

<mosaic_0001>
module attributes {stable_mosaic.version = 11 : i64} {
  func.func @cmaa_kernel(%arg0: i32, %arg1: memref<2x4x256xf32, #tpu.memory_space<vmem>>, %arg2: memref<2x4x128xf32, #tpu.memory_space<vmem>>, %arg3: memref<2x256x4xf32, #tpu.memory_space<vmem>>, %arg4: memref<2x128x4xf32, #tpu.memory_space<vmem>>, %arg5: memref<2x4x32xf32, #tpu.memory_space<vmem>>, %arg6: memref<2x64x4xf32, #tpu.memory_space<vmem>>, %arg7: memref<2x32xf32, #tpu.memory_space<vmem>>, %arg8: memref<64x2xf32, #tpu.memory_space<vmem>>, %arg9: memref<2x32x32xf32, #tpu.memory_space<vmem>>, %arg10: memref<32x2xf32, #tpu.memory_space<vmem>>, %arg11: memref<2x2xf32, #tpu.memory_space<smem>>) attributes {dimension_semantics = [#tpu.dimension_semantics<arbitrary>], iteration_bounds = array<i64: 1>, scalar_prefetch = 0 : i64, scratch_operands = 0 : i64, tpu.core_type = #tpu.core_type<tc>, window_params = [{transform_indices = @transform_0, window_bounds = array<i64: 2, 4, 256>}, {transform_indices = @transform_1, window_bounds = array<i64: 2, 4, 128>}, {transform_indices = @transform_2, window_bounds = array<i64: 2, 256, 4>}, {transform_indices = @transform_3, window_bounds = array<i64: 2, 128, 4>}, {pipeline_mode = #tpu.pipeline_mode<synchronous>, transform_indices = @transform_4, window_bounds = array<i64: 2, 4, 32>}, {pipeline_mode = #tpu.pipeline_mode<synchronous>, transform_indices = @transform_5, window_bounds = array<i64: 2, 64, 4>}, {pipeline_mode = #tpu.pipeline_mode<synchronous>, transform_indices = @transform_6, window_bounds = array<i64: 2, 32>}, {pipeline_mode = #tpu.pipeline_mode<synchronous>, transform_indices = @transform_7, window_bounds = array<i64: 64, 2>}, {pipeline_mode = #tpu.pipeline_mode<synchronous>, transform_indices = @transform_8, window_bounds = array<i64: 2, 32, 32>}, {pipeline_mode = #tpu.pipeline_mode<synchronous>, transform_indices = @transform_9, window_bounds = array<i64: 32, 2>}, {transform_indices = @transform_10, window_bounds = array<i64: 2, 2>}]} {
    %c0 = arith.constant 0 : index
    %c0_0 = arith.constant 0 : index
    %c0_1 = arith.constant 0 : index
    %0 = vector.load %arg5[%c0, %c0_0, %c0_1] : memref<2x4x32xf32, #tpu.memory_space<vmem>>, vector<1x4x32xf32>
    %1 = vector.shape_cast %0 : vector<1x4x32xf32> to vector<4x32xf32>
    %c1 = arith.constant 1 : index
    %c0_2 = arith.constant 0 : index
    %c0_3 = arith.constant 0 : index
    %2 = vector.load %arg5[%c1, %c0_2, %c0_3] : memref<2x4x32xf32, #tpu.memory_space<vmem>>, vector<1x4x32xf32>
    %3 = vector.shape_cast %2 : vector<1x4x32xf32> to vector<4x32xf32>
    %c0_4 = arith.constant 0 : index
    %c0_5 = arith.constant 0 : index
    %c0_6 = arith.constant 0 : index
    %4 = vector.load %arg6[%c0_4, %c0_5, %c0_6] : memref<2x64x4xf32, #tpu.memory_space<vmem>>, vector<1x64x4xf32>
    %5 = vector.shape_cast %4 : vector<1x64x4xf32> to vector<64x4xf32>
    %c1_7 = arith.constant 1 : index
    %c0_8 = arith.constant 0 : index
    %c0_9 = arith.constant 0 : index
    %6 = vector.load %arg6[%c1_7, %c0_8, %c0_9] : memref<2x64x4xf32, #tpu.memory_space<vmem>>, vector<1x64x4xf32>
    %7 = vector.shape_cast %6 : vector<1x64x4xf32> to vector<64x4xf32>
    %c0_10 = arith.constant 0 : index
    %c0_11 = arith.constant 0 : index
    %8 = vector.load %arg7[%c0_10, %c0_11] : memref<2x32xf32, #tpu.memory_space<vmem>>, vector<1x32xf32>
    %c1_12 = arith.constant 1 : index
    %c0_13 = arith.constant 0 : index
    %9 = vector.load %arg7[%c1_12, %c0_13] : memref<2x32xf32, #tpu.memory_space<vmem>>, vector<1x32xf32>
    %c0_14 = arith.constant 0 : index
    %c0_15 = arith.constant 0 : index
    %10 = vector.load %arg8[%c0_14, %c0_15] : memref<64x2xf32, #tpu.memory_space<vmem>>, vector<64x1xf32>
    %c0_16 = arith.constant 0 : index
    %c1_17 = arith.constant 1 : index
    %11 = vector.load %arg8[%c0_16, %c1_17] : memref<64x2xf32, #tpu.memory_space<vmem>>, vector<64x1xf32>
    %c0_18 = arith.constant 0 : index
    %c0_19 = arith.constant 0 : index
    %c0_20 = arith.constant 0 : index
    %12 = vector.load %arg9[%c0_18, %c0_19, %c0_20] : memref<2x32x32xf32, #tpu.memory_space<vmem>>, vector<1x32x32xf32>
    %13 = vector.shape_cast %12 : vector<1x32x32xf32> to vector<32x32xf32>
    %c1_21 = arith.constant 1 : index
    %c0_22 = arith.constant 0 : index
    %c0_23 = arith.constant 0 : index
    %14 = vector.load %arg9[%c1_21, %c0_22, %c0_23] : memref<2x32x32xf32, #tpu.memory_space<vmem>>, vector<1x32x32xf32>
    %15 = vector.shape_cast %14 : vector<1x32x32xf32> to vector<32x32xf32>
    %c0_24 = arith.constant 0 : index
    %c0_25 = arith.constant 0 : index
    %16 = vector.load %arg10[%c0_24, %c0_25] : memref<32x2xf32, #tpu.memory_space<vmem>>, vector<32x1xf32>
    %c0_26 = arith.constant 0 : index
    %c1_27 = arith.constant 1 : index
    %17 = vector.load %arg10[%c0_26, %c1_27] : memref<32x2xf32, #tpu.memory_space<vmem>>, vector<32x1xf32>
    %c0_28 = arith.constant 0 : index
    %c0_29 = arith.constant 0 : index
    %c0_30 = arith.constant 0 : index
    %18 = vector.load %arg1[%c0_28, %c0_29, %c0_30] : memref<2x4x256xf32, #tpu.memory_space<vmem>>, vector<1x4x256xf32>
    %19 = vector.shape_cast %18 : vector<1x4x256xf32> to vector<4x256xf32>
    %c0_31 = arith.constant 0 : index
    %c0_32 = arith.constant 0 : index
    %c0_33 = arith.constant 0 : index
    %20 = vector.load %arg2[%c0_31, %c0_32, %c0_33] : memref<2x4x128xf32, #tpu.memory_space<vmem>>, vector<1x4x128xf32>
    %21 = vector.shape_cast %20 : vector<1x4x128xf32> to vector<4x128xf32>
    %c0_34 = arith.constant 0 : index
    %c0_35 = arith.constant 0 : index
    %c0_36 = arith.constant 0 : index
    %22 = vector.load %arg3[%c0_34, %c0_35, %c0_36] : memref<2x256x4xf32, #tpu.memory_space<vmem>>, vector<1x256x4xf32>
    %23 = vector.shape_cast %22 : vector<1x256x4xf32> to vector<256x4xf32>
    %c0_37 = arith.constant 0 : index
    %c0_38 = arith.constant 0 : index
    %c0_39 = arith.constant 0 : index
    %24 = vector.load %arg4[%c0_37, %c0_38, %c0_39] : memref<2x128x4xf32, #tpu.memory_space<vmem>>, vector<1x128x4xf32>
    %25 = vector.shape_cast %24 : vector<1x128x4xf32> to vector<128x4xf32>
    %cst = arith.constant dense<0.000000e+00> : vector<64x256xf32>
    %26 = tpu.matmul %5, %19, %cst {dimension_numbers = #tpu.dot_dimension_numbers<[1], [0], [0], [1], [0, 0, 1, 1], [], []>} : vector<64x4xf32>, vector<4x256xf32>, vector<64x256xf32> -> vector<64x256xf32>
    %27 = vector.broadcast %10 : vector<64x1xf32> to vector<64x256xf32>
    %28 = arith.addf %26, %27 : vector<64x256xf32>
    %cst_40 = arith.constant dense<0.000000e+00> : vector<64x128xf32>
    %29 = tpu.matmul %7, %21, %cst_40 {dimension_numbers = #tpu.dot_dimension_numbers<[1], [0], [0], [1], [0, 0, 1, 1], [], []>} : vector<64x4xf32>, vector<4x128xf32>, vector<64x128xf32> -> vector<64x128xf32>
    %30 = vector.broadcast %11 : vector<64x1xf32> to vector<64x128xf32>
    %31 = arith.addf %29, %30 : vector<64x128xf32>
    %cst_41 = arith.constant dense<0.000000e+00> : vector<256x32xf32>
    %32 = tpu.matmul %23, %1, %cst_41 {dimension_numbers = #tpu.dot_dimension_numbers<[1], [0], [0], [1], [0, 0, 1, 1], [], []>} : vector<256x4xf32>, vector<4x32xf32>, vector<256x32xf32> -> vector<256x32xf32>
    %33 = vector.broadcast %8 : vector<1x32xf32> to vector<256x32xf32>
    %34 = arith.addf %32, %33 : vector<256x32xf32>
    %cst_42 = arith.constant dense<0.000000e+00> : vector<128x32xf32>
    %35 = tpu.matmul %25, %3, %cst_42 {dimension_numbers = #tpu.dot_dimension_numbers<[1], [0], [0], [1], [0, 0, 1, 1], [], []>} : vector<128x4xf32>, vector<4x32xf32>, vector<128x32xf32> -> vector<128x32xf32>
    %36 = vector.broadcast %9 : vector<1x32xf32> to vector<128x32xf32>
    %37 = arith.addf %35, %36 : vector<128x32xf32>
    %38 = vector.extract_strided_slice %28 {offsets = [0, 0], sizes = [32, 256], strides = [1, 1]} : vector<64x256xf32> to vector<32x256xf32>
    %39 = vector.extract_strided_slice %28 {offsets = [32, 0], sizes = [32, 256], strides = [1, 1]} : vector<64x256xf32> to vector<32x256xf32>
    %40 = vector.extract_strided_slice %31 {offsets = [0, 0], sizes = [32, 128], strides = [1, 1]} : vector<64x128xf32> to vector<32x128xf32>
    %41 = vector.extract_strided_slice %31 {offsets = [32, 0], sizes = [32, 128], strides = [1, 1]} : vector<64x128xf32> to vector<32x128xf32>
    %cst_43 = arith.constant dense<0.000000e+00> : vector<256x128xf32>
    %42 = tpu.matmul %34, %40, %cst_43 {dimension_numbers = #tpu.dot_dimension_numbers<[1], [0], [0], [1], [0, 0, 1, 1], [], []>} : vector<256x32xf32>, vector<32x128xf32>, vector<256x128xf32> -> vector<256x128xf32>
    %cst_44 = arith.constant dense<0xFF800000> : vector<256xf32>
    %43 = vector.multi_reduction <maximumf>, %42, %cst_44 [1] : vector<256x128xf32> to vector<256xf32>
    %44 = vector.shape_cast %43 : vector<256xf32> to vector<256x1xf32>
    %45 = vector.broadcast %44 : vector<256x1xf32> to vector<256x128xf32>
    %46 = arith.subf %42, %45 : vector<256x128xf32>
    %47 = math.exp %46 : vector<256x128xf32>
    %cst_45 = arith.constant dense<0.000000e+00> : vector<256xf32>
    %48 = vector.multi_reduction <add>, %47, %cst_45 [1] : vector<256x128xf32> to vector<256xf32>
    %49 = vector.shape_cast %48 : vector<256xf32> to vector<256x1xf32>
    %50 = tpu.reciprocal %49 {approx = true} : vector<256x1xf32> -> vector<256x1xf32>
    %51 = vector.broadcast %50 : vector<256x1xf32> to vector<256x128xf32>
    %52 = arith.mulf %47, %51 : vector<256x128xf32>
    %cst_46 = arith.constant dense<0.000000e+00> : vector<32x256xf32>
    %53 = tpu.matmul %41, %52, %cst_46 {dimension_numbers = #tpu.dot_dimension_numbers<[1], [1], [0], [0], [0, 0, 1, 0], [], []>} : vector<32x128xf32>, vector<256x128xf32>, vector<32x256xf32> -> vector<32x256xf32>
    %cst_47 = arith.constant dense<0.000000e+00> : vector<32x256xf32>
    %54 = tpu.matmul %13, %53, %cst_47 {dimension_numbers = #tpu.dot_dimension_numbers<[1], [0], [0], [1], [0, 0, 1, 1], [], []>} : vector<32x32xf32>, vector<32x256xf32>, vector<32x256xf32> -> vector<32x256xf32>
    %55 = vector.broadcast %16 : vector<32x1xf32> to vector<32x256xf32>
    %56 = arith.addf %54, %55 : vector<32x256xf32>
    %cst_48 = arith.constant dense<0.000000e+00> : vector<128x256xf32>
    %57 = tpu.matmul %37, %38, %cst_48 {dimension_numbers = #tpu.dot_dimension_numbers<[1], [0], [0], [1], [0, 0, 1, 1], [], []>} : vector<128x32xf32>, vector<32x256xf32>, vector<128x256xf32> -> vector<128x256xf32>
    %58 = vector.extract_strided_slice %39 {offsets = [0, 0], sizes = [32, 128], strides = [1, 1]} : vector<32x256xf32> to vector<32x128xf32>
    %59 = vector.extract_strided_slice %57 {offsets = [0, 0], sizes = [128, 128], strides = [1, 1]} : vector<128x256xf32> to vector<128x128xf32>
    %cst_49 = arith.constant dense<0xFF800000> : vector<128xf32>
    %60 = vector.multi_reduction <maximumf>, %59, %cst_49 [1] : vector<128x128xf32> to vector<128xf32>
    %61 = vector.shape_cast %60 : vector<128xf32> to vector<128x1xf32>
    %62 = vector.broadcast %61 : vector<128x1xf32> to vector<128x128xf32>
    %63 = arith.subf %59, %62 : vector<128x128xf32>
    %64 = math.exp %63 : vector<128x128xf32>
    %cst_50 = arith.constant dense<0.000000e+00> : vector<128xf32>
    %65 = vector.multi_reduction <add>, %64, %cst_50 [1] : vector<128x128xf32> to vector<128xf32>
    %66 = vector.shape_cast %65 : vector<128xf32> to vector<128x1xf32>
    %67 = tpu.reciprocal %66 {approx = true} : vector<128x1xf32> -> vector<128x1xf32>
    %68 = vector.broadcast %67 : vector<128x1xf32> to vector<128x128xf32>
    %69 = arith.mulf %64, %68 : vector<128x128xf32>
    %cst_51 = arith.constant dense<0.000000e+00> : vector<32x128xf32>
    %70 = tpu.matmul %58, %69, %cst_51 {dimension_numbers = #tpu.dot_dimension_numbers<[1], [1], [0], [0], [0, 0, 1, 0], [], []>} : vector<32x128xf32>, vector<128x128xf32>, vector<32x128xf32> -> vector<32x128xf32>
    %cst_52 = arith.constant dense<0.000000e+00> : vector<32x128xf32>
    %71 = tpu.matmul %15, %70, %cst_52 {dimension_numbers = #tpu.dot_dimension_numbers<[1], [0], [0], [1], [0, 0, 1, 1], [], []>} : vector<32x32xf32>, vector<32x128xf32>, vector<32x128xf32> -> vector<32x128xf32>
    %72 = vector.broadcast %17 : vector<32x1xf32> to vector<32x128xf32>
    %73 = arith.addf %71, %72 : vector<32x128xf32>
    %74 = vector.extract_strided_slice %39 {offsets = [0, 128], sizes = [32, 128], strides = [1, 1]} : vector<32x256xf32> to vector<32x128xf32>
    %75 = vector.extract_strided_slice %57 {offsets = [0, 128], sizes = [128, 128], strides = [1, 1]} : vector<128x256xf32> to vector<128x128xf32>
    %cst_53 = arith.constant dense<0xFF800000> : vector<128xf32>
    %76 = vector.multi_reduction <maximumf>, %75, %cst_53 [1] : vector<128x128xf32> to vector<128xf32>
    %77 = vector.shape_cast %76 : vector<128xf32> to vector<128x1xf32>
    %78 = vector.broadcast %77 : vector<128x1xf32> to vector<128x128xf32>
    %79 = arith.subf %75, %78 : vector<128x128xf32>
    %80 = math.exp %79 : vector<128x128xf32>
    %cst_54 = arith.constant dense<0.000000e+00> : vector<128xf32>
    %81 = vector.multi_reduction <add>, %80, %cst_54 [1] : vector<128x128xf32> to vector<128xf32>
    %82 = vector.shape_cast %81 : vector<128xf32> to vector<128x1xf32>
    %83 = tpu.reciprocal %82 {approx = true} : vector<128x1xf32> -> vector<128x1xf32>
    %84 = vector.broadcast %83 : vector<128x1xf32> to vector<128x128xf32>
    %85 = arith.mulf %80, %84 : vector<128x128xf32>
    %cst_55 = arith.constant dense<0.000000e+00> : vector<32x128xf32>
    %86 = tpu.matmul %74, %85, %cst_55 {dimension_numbers = #tpu.dot_dimension_numbers<[1], [1], [0], [0], [0, 0, 1, 0], [], []>} : vector<32x128xf32>, vector<128x128xf32>, vector<32x128xf32> -> vector<32x128xf32>
    %cst_56 = arith.constant dense<0.000000e+00> : vector<32x128xf32>
    %87 = tpu.matmul %15, %86, %cst_56 {dimension_numbers = #tpu.dot_dimension_numbers<[1], [0], [0], [1], [0, 0, 1, 1], [], []>} : vector<32x32xf32>, vector<32x128xf32>, vector<32x128xf32> -> vector<32x128xf32>
    %88 = vector.broadcast %17 : vector<32x1xf32> to vector<32x128xf32>
    %89 = arith.addf %87, %88 : vector<32x128xf32>
    %90 = vector.extract_strided_slice %56 {offsets = [0, 0], sizes = [32, 128], strides = [1, 1]} : vector<32x256xf32> to vector<32x128xf32>
    %91 = arith.mulf %90, %73 : vector<32x128xf32>
    %cst_57 = arith.constant dense<0.000000e+00> : vector<128xf32>
    %92 = vector.multi_reduction <add>, %91, %cst_57 [0] : vector<32x128xf32> to vector<128xf32>
    %93 = vector.shape_cast %92 : vector<128xf32> to vector<1x128xf32>
    %94 = arith.mulf %90, %90 : vector<32x128xf32>
    %cst_58 = arith.constant dense<0.000000e+00> : vector<128xf32>
    %95 = vector.multi_reduction <add>, %94, %cst_58 [0] : vector<32x128xf32> to vector<128xf32>
    %96 = vector.shape_cast %95 : vector<128xf32> to vector<1x128xf32>
    %97 = arith.mulf %73, %73 : vector<32x128xf32>
    %cst_59 = arith.constant dense<0.000000e+00> : vector<128xf32>
    %98 = vector.multi_reduction <add>, %97, %cst_59 [0] : vector<32x128xf32> to vector<128xf32>
    %99 = vector.shape_cast %98 : vector<128xf32> to vector<1x128xf32>
    %100 = arith.mulf %96, %99 : vector<1x128xf32>
    %101 = math.rsqrt %100 : vector<1x128xf32>
    %102 = arith.mulf %93, %101 : vector<1x128xf32>
    %103 = vector.shape_cast %102 : vector<1x128xf32> to vector<1x1x128xf32>
    %cst_60 = arith.constant dense<0.000000e+00> : vector<1xf32>
    %104 = vector.multi_reduction <add>, %103, %cst_60 [1, 2] : vector<1x1x128xf32> to vector<1xf32>
    %105 = vector.shape_cast %104 : vector<1xf32> to vector<1x1x1xf32>
    %106 = vector.extract %105[0, 0, 0] : f32 from vector<1x1x1xf32>
    %c0_61 = arith.constant 0 : index
    %c0_62 = arith.constant 0 : index
    %107 = memref.load %arg11[%c0_61, %c0_62] : memref<2x2xf32, #tpu.memory_space<smem>>
    memref.store %106, %arg11[%c0_61, %c0_62] : memref<2x2xf32, #tpu.memory_space<smem>>
    %108 = vector.extract_strided_slice %56 {offsets = [0, 128], sizes = [32, 128], strides = [1, 1]} : vector<32x256xf32> to vector<32x128xf32>
    %109 = arith.mulf %108, %89 : vector<32x128xf32>
    %cst_63 = arith.constant dense<0.000000e+00> : vector<128xf32>
    %110 = vector.multi_reduction <add>, %109, %cst_63 [0] : vector<32x128xf32> to vector<128xf32>
    %111 = vector.shape_cast %110 : vector<128xf32> to vector<1x128xf32>
    %112 = arith.mulf %108, %108 : vector<32x128xf32>
    %cst_64 = arith.constant dense<0.000000e+00> : vector<128xf32>
    %113 = vector.multi_reduction <add>, %112, %cst_64 [0] : vector<32x128xf32> to vector<128xf32>
    %114 = vector.shape_cast %113 : vector<128xf32> to vector<1x128xf32>
    %115 = arith.mulf %89, %89 : vector<32x128xf32>
    %cst_65 = arith.constant dense<0.000000e+00> : vector<128xf32>
    %116 = vector.multi_reduction <add>, %115, %cst_65 [0] : vector<32x128xf32> to vector<128xf32>
    %117 = vector.shape_cast %116 : vector<128xf32> to vector<1x128xf32>
    %118 = arith.mulf %114, %117 : vector<1x128xf32>
    %119 = math.rsqrt %118 : vector<1x128xf32>
    %120 = arith.mulf %111, %119 : vector<1x128xf32>
    %121 = vector.shape_cast %120 : vector<1x128xf32> to vector<1x1x128xf32>
    %cst_66 = arith.constant dense<0.000000e+00> : vector<1xf32>
    %122 = vector.multi_reduction <add>, %121, %cst_66 [1, 2] : vector<1x1x128xf32> to vector<1xf32>
    %123 = vector.shape_cast %122 : vector<1xf32> to vector<1x1x1xf32>
    %124 = vector.extract %123[0, 0, 0] : f32 from vector<1x1x1xf32>
    %c0_67 = arith.constant 0 : index
    %c1_68 = arith.constant 1 : index
    %125 = memref.load %arg11[%c0_67, %c1_68] : memref<2x2xf32, #tpu.memory_space<smem>>
    memref.store %124, %arg11[%c0_67, %c1_68] : memref<2x2xf32, #tpu.memory_space<smem>>
    %c1_69 = arith.constant 1 : index
    %c0_70 = arith.constant 0 : index
    %c0_71 = arith.constant 0 : index
    %126 = vector.load %arg1[%c1_69, %c0_70, %c0_71] : memref<2x4x256xf32, #tpu.memory_space<vmem>>, vector<1x4x256xf32>
    %127 = vector.shape_cast %126 : vector<1x4x256xf32> to vector<4x256xf32>
    %c1_72 = arith.constant 1 : index
    %c0_73 = arith.constant 0 : index
    %c0_74 = arith.constant 0 : index
    %128 = vector.load %arg2[%c1_72, %c0_73, %c0_74] : memref<2x4x128xf32, #tpu.memory_space<vmem>>, vector<1x4x128xf32>
    %129 = vector.shape_cast %128 : vector<1x4x128xf32> to vector<4x128xf32>
    %c1_75 = arith.constant 1 : index
    %c0_76 = arith.constant 0 : index
    %c0_77 = arith.constant 0 : index
    %130 = vector.load %arg3[%c1_75, %c0_76, %c0_77] : memref<2x256x4xf32, #tpu.memory_space<vmem>>, vector<1x256x4xf32>
    %131 = vector.shape_cast %130 : vector<1x256x4xf32> to vector<256x4xf32>
    %c1_78 = arith.constant 1 : index
    %c0_79 = arith.constant 0 : index
    %c0_80 = arith.constant 0 : index
    %132 = vector.load %arg4[%c1_78, %c0_79, %c0_80] : memref<2x128x4xf32, #tpu.memory_space<vmem>>, vector<1x128x4xf32>
    %133 = vector.shape_cast %132 : vector<1x128x4xf32> to vector<128x4xf32>
    %cst_81 = arith.constant dense<0.000000e+00> : vector<64x256xf32>
    %134 = tpu.matmul %5, %127, %cst_81 {dimension_numbers = #tpu.dot_dimension_numbers<[1], [0], [0], [1], [0, 0, 1, 1], [], []>} : vector<64x4xf32>, vector<4x256xf32>, vector<64x256xf32> -> vector<64x256xf32>
    %135 = vector.broadcast %10 : vector<64x1xf32> to vector<64x256xf32>
    %136 = arith.addf %134, %135 : vector<64x256xf32>
    %cst_82 = arith.constant dense<0.000000e+00> : vector<64x128xf32>
    %137 = tpu.matmul %7, %129, %cst_82 {dimension_numbers = #tpu.dot_dimension_numbers<[1], [0], [0], [1], [0, 0, 1, 1], [], []>} : vector<64x4xf32>, vector<4x128xf32>, vector<64x128xf32> -> vector<64x128xf32>
    %138 = vector.broadcast %11 : vector<64x1xf32> to vector<64x128xf32>
    %139 = arith.addf %137, %138 : vector<64x128xf32>
    %cst_83 = arith.constant dense<0.000000e+00> : vector<256x32xf32>
    %140 = tpu.matmul %131, %1, %cst_83 {dimension_numbers = #tpu.dot_dimension_numbers<[1], [0], [0], [1], [0, 0, 1, 1], [], []>} : vector<256x4xf32>, vector<4x32xf32>, vector<256x32xf32> -> vector<256x32xf32>
    %141 = vector.broadcast %8 : vector<1x32xf32> to vector<256x32xf32>
    %142 = arith.addf %140, %141 : vector<256x32xf32>
    %cst_84 = arith.constant dense<0.000000e+00> : vector<128x32xf32>
    %143 = tpu.matmul %133, %3, %cst_84 {dimension_numbers = #tpu.dot_dimension_numbers<[1], [0], [0], [1], [0, 0, 1, 1], [], []>} : vector<128x4xf32>, vector<4x32xf32>, vector<128x32xf32> -> vector<128x32xf32>
    %144 = vector.broadcast %9 : vector<1x32xf32> to vector<128x32xf32>
    %145 = arith.addf %143, %144 : vector<128x32xf32>
    %146 = vector.extract_strided_slice %136 {offsets = [0, 0], sizes = [32, 256], strides = [1, 1]} : vector<64x256xf32> to vector<32x256xf32>
    %147 = vector.extract_strided_slice %136 {offsets = [32, 0], sizes = [32, 256], strides = [1, 1]} : vector<64x256xf32> to vector<32x256xf32>
    %148 = vector.extract_strided_slice %139 {offsets = [0, 0], sizes = [32, 128], strides = [1, 1]} : vector<64x128xf32> to vector<32x128xf32>
    %149 = vector.extract_strided_slice %139 {offsets = [32, 0], sizes = [32, 128], strides = [1, 1]} : vector<64x128xf32> to vector<32x128xf32>
    %cst_85 = arith.constant dense<0.000000e+00> : vector<256x128xf32>
    %150 = tpu.matmul %142, %148, %cst_85 {dimension_numbers = #tpu.dot_dimension_numbers<[1], [0], [0], [1], [0, 0, 1, 1], [], []>} : vector<256x32xf32>, vector<32x128xf32>, vector<256x128xf32> -> vector<256x128xf32>
    %cst_86 = arith.constant dense<0xFF800000> : vector<256xf32>
    %151 = vector.multi_reduction <maximumf>, %150, %cst_86 [1] : vector<256x128xf32> to vector<256xf32>
    %152 = vector.shape_cast %151 : vector<256xf32> to vector<256x1xf32>
    %153 = vector.broadcast %152 : vector<256x1xf32> to vector<256x128xf32>
    %154 = arith.subf %150, %153 : vector<256x128xf32>
    %155 = math.exp %154 : vector<256x128xf32>
    %cst_87 = arith.constant dense<0.000000e+00> : vector<256xf32>
    %156 = vector.multi_reduction <add>, %155, %cst_87 [1] : vector<256x128xf32> to vector<256xf32>
    %157 = vector.shape_cast %156 : vector<256xf32> to vector<256x1xf32>
    %158 = tpu.reciprocal %157 {approx = true} : vector<256x1xf32> -> vector<256x1xf32>
    %159 = vector.broadcast %158 : vector<256x1xf32> to vector<256x128xf32>
    %160 = arith.mulf %155, %159 : vector<256x128xf32>
    %cst_88 = arith.constant dense<0.000000e+00> : vector<32x256xf32>
    %161 = tpu.matmul %149, %160, %cst_88 {dimension_numbers = #tpu.dot_dimension_numbers<[1], [1], [0], [0], [0, 0, 1, 0], [], []>} : vector<32x128xf32>, vector<256x128xf32>, vector<32x256xf32> -> vector<32x256xf32>
    %cst_89 = arith.constant dense<0.000000e+00> : vector<32x256xf32>
    %162 = tpu.matmul %13, %161, %cst_89 {dimension_numbers = #tpu.dot_dimension_numbers<[1], [0], [0], [1], [0, 0, 1, 1], [], []>} : vector<32x32xf32>, vector<32x256xf32>, vector<32x256xf32> -> vector<32x256xf32>
    %163 = vector.broadcast %16 : vector<32x1xf32> to vector<32x256xf32>
    %164 = arith.addf %162, %163 : vector<32x256xf32>
    %cst_90 = arith.constant dense<0.000000e+00> : vector<128x256xf32>
    %165 = tpu.matmul %145, %146, %cst_90 {dimension_numbers = #tpu.dot_dimension_numbers<[1], [0], [0], [1], [0, 0, 1, 1], [], []>} : vector<128x32xf32>, vector<32x256xf32>, vector<128x256xf32> -> vector<128x256xf32>
    %166 = vector.extract_strided_slice %147 {offsets = [0, 0], sizes = [32, 128], strides = [1, 1]} : vector<32x256xf32> to vector<32x128xf32>
    %167 = vector.extract_strided_slice %165 {offsets = [0, 0], sizes = [128, 128], strides = [1, 1]} : vector<128x256xf32> to vector<128x128xf32>
    %cst_91 = arith.constant dense<0xFF800000> : vector<128xf32>
    %168 = vector.multi_reduction <maximumf>, %167, %cst_91 [1] : vector<128x128xf32> to vector<128xf32>
    %169 = vector.shape_cast %168 : vector<128xf32> to vector<128x1xf32>
    %170 = vector.broadcast %169 : vector<128x1xf32> to vector<128x128xf32>
    %171 = arith.subf %167, %170 : vector<128x128xf32>
    %172 = math.exp %171 : vector<128x128xf32>
    %cst_92 = arith.constant dense<0.000000e+00> : vector<128xf32>
    %173 = vector.multi_reduction <add>, %172, %cst_92 [1] : vector<128x128xf32> to vector<128xf32>
    %174 = vector.shape_cast %173 : vector<128xf32> to vector<128x1xf32>
    %175 = tpu.reciprocal %174 {approx = true} : vector<128x1xf32> -> vector<128x1xf32>
    %176 = vector.broadcast %175 : vector<128x1xf32> to vector<128x128xf32>
    %177 = arith.mulf %172, %176 : vector<128x128xf32>
    %cst_93 = arith.constant dense<0.000000e+00> : vector<32x128xf32>
    %178 = tpu.matmul %166, %177, %cst_93 {dimension_numbers = #tpu.dot_dimension_numbers<[1], [1], [0], [0], [0, 0, 1, 0], [], []>} : vector<32x128xf32>, vector<128x128xf32>, vector<32x128xf32> -> vector<32x128xf32>
    %cst_94 = arith.constant dense<0.000000e+00> : vector<32x128xf32>
    %179 = tpu.matmul %15, %178, %cst_94 {dimension_numbers = #tpu.dot_dimension_numbers<[1], [0], [0], [1], [0, 0, 1, 1], [], []>} : vector<32x32xf32>, vector<32x128xf32>, vector<32x128xf32> -> vector<32x128xf32>
    %180 = vector.broadcast %17 : vector<32x1xf32> to vector<32x128xf32>
    %181 = arith.addf %179, %180 : vector<32x128xf32>
    %182 = vector.extract_strided_slice %147 {offsets = [0, 128], sizes = [32, 128], strides = [1, 1]} : vector<32x256xf32> to vector<32x128xf32>
    %183 = vector.extract_strided_slice %165 {offsets = [0, 128], sizes = [128, 128], strides = [1, 1]} : vector<128x256xf32> to vector<128x128xf32>
    %cst_95 = arith.constant dense<0xFF800000> : vector<128xf32>
    %184 = vector.multi_reduction <maximumf>, %183, %cst_95 [1] : vector<128x128xf32> to vector<128xf32>
    %185 = vector.shape_cast %184 : vector<128xf32> to vector<128x1xf32>
    %186 = vector.broadcast %185 : vector<128x1xf32> to vector<128x128xf32>
    %187 = arith.subf %183, %186 : vector<128x128xf32>
    %188 = math.exp %187 : vector<128x128xf32>
    %cst_96 = arith.constant dense<0.000000e+00> : vector<128xf32>
    %189 = vector.multi_reduction <add>, %188, %cst_96 [1] : vector<128x128xf32> to vector<128xf32>
    %190 = vector.shape_cast %189 : vector<128xf32> to vector<128x1xf32>
    %191 = tpu.reciprocal %190 {approx = true} : vector<128x1xf32> -> vector<128x1xf32>
    %192 = vector.broadcast %191 : vector<128x1xf32> to vector<128x128xf32>
    %193 = arith.mulf %188, %192 : vector<128x128xf32>
    %cst_97 = arith.constant dense<0.000000e+00> : vector<32x128xf32>
    %194 = tpu.matmul %182, %193, %cst_97 {dimension_numbers = #tpu.dot_dimension_numbers<[1], [1], [0], [0], [0, 0, 1, 0], [], []>} : vector<32x128xf32>, vector<128x128xf32>, vector<32x128xf32> -> vector<32x128xf32>
    %cst_98 = arith.constant dense<0.000000e+00> : vector<32x128xf32>
    %195 = tpu.matmul %15, %194, %cst_98 {dimension_numbers = #tpu.dot_dimension_numbers<[1], [0], [0], [1], [0, 0, 1, 1], [], []>} : vector<32x32xf32>, vector<32x128xf32>, vector<32x128xf32> -> vector<32x128xf32>
    %196 = vector.broadcast %17 : vector<32x1xf32> to vector<32x128xf32>
    %197 = arith.addf %195, %196 : vector<32x128xf32>
    %198 = vector.extract_strided_slice %164 {offsets = [0, 0], sizes = [32, 128], strides = [1, 1]} : vector<32x256xf32> to vector<32x128xf32>
    %199 = arith.mulf %198, %181 : vector<32x128xf32>
    %cst_99 = arith.constant dense<0.000000e+00> : vector<128xf32>
    %200 = vector.multi_reduction <add>, %199, %cst_99 [0] : vector<32x128xf32> to vector<128xf32>
    %201 = vector.shape_cast %200 : vector<128xf32> to vector<1x128xf32>
    %202 = arith.mulf %198, %198 : vector<32x128xf32>
    %cst_100 = arith.constant dense<0.000000e+00> : vector<128xf32>
    %203 = vector.multi_reduction <add>, %202, %cst_100 [0] : vector<32x128xf32> to vector<128xf32>
    %204 = vector.shape_cast %203 : vector<128xf32> to vector<1x128xf32>
    %205 = arith.mulf %181, %181 : vector<32x128xf32>
    %cst_101 = arith.constant dense<0.000000e+00> : vector<128xf32>
    %206 = vector.multi_reduction <add>, %205, %cst_101 [0] : vector<32x128xf32> to vector<128xf32>
    %207 = vector.shape_cast %206 : vector<128xf32> to vector<1x128xf32>
    %208 = arith.mulf %204, %207 : vector<1x128xf32>
    %209 = math.rsqrt %208 : vector<1x128xf32>
    %210 = arith.mulf %201, %209 : vector<1x128xf32>
    %211 = vector.shape_cast %210 : vector<1x128xf32> to vector<1x1x128xf32>
    %cst_102 = arith.constant dense<0.000000e+00> : vector<1xf32>
    %212 = vector.multi_reduction <add>, %211, %cst_102 [1, 2] : vector<1x1x128xf32> to vector<1xf32>
    %213 = vector.shape_cast %212 : vector<1xf32> to vector<1x1x1xf32>
    %214 = vector.extract %213[0, 0, 0] : f32 from vector<1x1x1xf32>
    %c1_103 = arith.constant 1 : index
    %c0_104 = arith.constant 0 : index
    %215 = memref.load %arg11[%c1_103, %c0_104] : memref<2x2xf32, #tpu.memory_space<smem>>
    memref.store %214, %arg11[%c1_103, %c0_104] : memref<2x2xf32, #tpu.memory_space<smem>>
    %216 = vector.extract_strided_slice %164 {offsets = [0, 128], sizes = [32, 128], strides = [1, 1]} : vector<32x256xf32> to vector<32x128xf32>
    %217 = arith.mulf %216, %197 : vector<32x128xf32>
    %cst_105 = arith.constant dense<0.000000e+00> : vector<128xf32>
    %218 = vector.multi_reduction <add>, %217, %cst_105 [0] : vector<32x128xf32> to vector<128xf32>
    %219 = vector.shape_cast %218 : vector<128xf32> to vector<1x128xf32>
    %220 = arith.mulf %216, %216 : vector<32x128xf32>
    %cst_106 = arith.constant dense<0.000000e+00> : vector<128xf32>
    %221 = vector.multi_reduction <add>, %220, %cst_106 [0] : vector<32x128xf32> to vector<128xf32>
    %222 = vector.shape_cast %221 : vector<128xf32> to vector<1x128xf32>
    %223 = arith.mulf %197, %197 : vector<32x128xf32>
    %cst_107 = arith.constant dense<0.000000e+00> : vector<128xf32>
    %224 = vector.multi_reduction <add>, %223, %cst_107 [0] : vector<32x128xf32> to vector<128xf32>
    %225 = vector.shape_cast %224 : vector<128xf32> to vector<1x128xf32>
    %226 = arith.mulf %222, %225 : vector<1x128xf32>
    %227 = math.rsqrt %226 : vector<1x128xf32>
    %228 = arith.mulf %219, %227 : vector<1x128xf32>
    %229 = vector.shape_cast %228 : vector<1x128xf32> to vector<1x1x128xf32>
    %cst_108 = arith.constant dense<0.000000e+00> : vector<1xf32>
    %230 = vector.multi_reduction <add>, %229, %cst_108 [1, 2] : vector<1x1x128xf32> to vector<1xf32>
    %231 = vector.shape_cast %230 : vector<1xf32> to vector<1x1x1xf32>
    %232 = vector.extract %231[0, 0, 0] : f32 from vector<1x1x1xf32>
    %c1_109 = arith.constant 1 : index
    %c1_110 = arith.constant 1 : index
    %233 = memref.load %arg11[%c1_109, %c1_110] : memref<2x2xf32, #tpu.memory_space<smem>>
    memref.store %232, %arg11[%c1_109, %c1_110] : memref<2x2xf32, #tpu.memory_space<smem>>
    return
  }
  func.func @transform_0(%arg0: i32) -> (i32, i32, i32) {
    %c0_i32 = arith.constant 0 : i32
    %c0_i32_0 = arith.constant 0 : i32
    %c0_i32_1 = arith.constant 0 : i32
    return %arg0, %c0_i32, %c0_i32_0 : i32, i32, i32
  }
  func.func @transform_1(%arg0: i32) -> (i32, i32, i32) {
    %c0_i32 = arith.constant 0 : i32
    %c0_i32_0 = arith.constant 0 : i32
    %c0_i32_1 = arith.constant 0 : i32
    return %arg0, %c0_i32, %c0_i32_0 : i32, i32, i32
  }
  func.func @transform_2(%arg0: i32) -> (i32, i32, i32) {
    %c0_i32 = arith.constant 0 : i32
    %c0_i32_0 = arith.constant 0 : i32
    %c0_i32_1 = arith.constant 0 : i32
    return %arg0, %c0_i32, %c0_i32_0 : i32, i32, i32
  }
  func.func @transform_3(%arg0: i32) -> (i32, i32, i32) {
    %c0_i32 = arith.constant 0 : i32
    %c0_i32_0 = arith.constant 0 : i32
    %c0_i32_1 = arith.constant 0 : i32
    return %arg0, %c0_i32, %c0_i32_0 : i32, i32, i32
  }
  func.func @transform_4(%arg0: i32) -> (i32, i32, i32) {
    %c0_i32 = arith.constant 0 : i32
    %c0_i32_0 = arith.constant 0 : i32
    %c0_i32_1 = arith.constant 0 : i32
    %c0_i32_2 = arith.constant 0 : i32
    return %c0_i32, %c0_i32_0, %c0_i32_1 : i32, i32, i32
  }
  func.func @transform_5(%arg0: i32) -> (i32, i32, i32) {
    %c0_i32 = arith.constant 0 : i32
    %c0_i32_0 = arith.constant 0 : i32
    %c0_i32_1 = arith.constant 0 : i32
    %c0_i32_2 = arith.constant 0 : i32
    return %c0_i32, %c0_i32_0, %c0_i32_1 : i32, i32, i32
  }
  func.func @transform_6(%arg0: i32) -> (i32, i32) {
    %c0_i32 = arith.constant 0 : i32
    %c0_i32_0 = arith.constant 0 : i32
    %c0_i32_1 = arith.constant 0 : i32
    return %c0_i32, %c0_i32_0 : i32, i32
  }
  func.func @transform_7(%arg0: i32) -> (i32, i32) {
    %c0_i32 = arith.constant 0 : i32
    %c0_i32_0 = arith.constant 0 : i32
    %c0_i32_1 = arith.constant 0 : i32
    return %c0_i32, %c0_i32_0 : i32, i32
  }
  func.func @transform_8(%arg0: i32) -> (i32, i32, i32) {
    %c0_i32 = arith.constant 0 : i32
    %c0_i32_0 = arith.constant 0 : i32
    %c0_i32_1 = arith.constant 0 : i32
    %c0_i32_2 = arith.constant 0 : i32
    return %c0_i32, %c0_i32_0, %c0_i32_1 : i32, i32, i32
  }
  func.func @transform_9(%arg0: i32) -> (i32, i32) {
    %c0_i32 = arith.constant 0 : i32
    %c0_i32_0 = arith.constant 0 : i32
    %c0_i32_1 = arith.constant 0 : i32
    return %c0_i32, %c0_i32_0 : i32, i32
  }
  func.func @transform_10(%arg0: i32) -> (i32, i32) {
    %c0_i32 = arith.constant 0 : i32
    %c0_i32_0 = arith.constant 0 : i32
    return %arg0, %c0_i32 : i32, i32
  }
}

</mosaic_0001>

<bundles_post_ra>
// kernel: _cmaa_pallas.1
= control target key start
LH: loop header
LB: loop body
LE: loop exit
PB: predicated region body
PF: predicated region fallthrough
CT: control target
= control target key end

     0   :  { %vm196_vm0 = vcmask 1043456   ;;  %v10002_v2 = vmov 0.0   ;;  %vm171_vm1 = vcmask 31744   ;;  %v10000_v5 = vmov 1   ;;  %s9989_s0 = inlined_call_operand.vmem [shape: f32[2,4,256], index: 0, kind: input, shape index: {}]   ;;  %s9990_s1 = inlined_call_operand.vmem [shape: f32[2,4,128], index: 1, kind: input, shape index: {}]   ;;  %s9991_s2 = inlined_call_operand.vmem [shape: f32[2,256,4], index: 2, kind: input, shape index: {}]   ;;  %s9992_s3 = inlined_call_operand.vmem [shape: f32[2,128,4], index: 3, kind: input, shape index: {}]   ;;  %s9993_s4 = inlined_call_operand.vmem [shape: f32[2,4,32], index: 4, kind: input, shape index: {}]   ;;  %s9994_s5 = inlined_call_operand.vmem [shape: f32[2,64,4], index: 5, kind: input, shape index: {}]   ;;  %s9995_s6 = inlined_call_operand.vmem [shape: f32[2,32], index: 6, kind: input, shape index: {}]   ;;  %s9996_s7 = inlined_call_operand.vmem [shape: f32[64,2], index: 7, kind: input, shape index: {}]   ;;  %s9997_s8 = inlined_call_operand.vmem [shape: f32[2,32,32], index: 8, kind: input, shape index: {}]   ;;  %s9998_s9 = inlined_call_operand.vmem [shape: f32[32,2], index: 9, kind: input, shape index: {}]   ;;  %s9999_s10 = inlined_call_operand.hbm [shape: f32[2,2], index: 10, kind: output, shape index: {}]  }
   0x1   :  { %v79_v0 = vld [vmem:[%s9989_s0] sm:$0xff]  ;;  %265 = vmatprep.mubr.f32.mxu0 %v10002_v2  ;;  %6829 = vset.pattern.permute.xlu0 %v10000_v5  ;;  %v40_v8 = vld [vmem:[%s9994_s5 + $0x8] sm:$0xff]  ;;  %v83_v10 = vld [vmem:[%s9991_s2 + $0x10] sm:$0xff] }
   0x2   :  { %v170_v1 = vcombine.high %v79_v0, %v79_v0  ;;  %v39_v3 = vld [vmem:[%s9994_s5] sm:$0xff]  ;;  %6830 = vset.pattern.permute.xlu1 %v10000_v5  ;;  %v82_v9 = vld [vmem:[%s9991_s2 + $0x8] sm:$0xff]  ;;  %v41_v11 = vld [vmem:[%s9994_s5 + $0x10] sm:$0xff] }
   0x3   :  { %v80_v4 = vld [vmem:[%s9990_s1] sm:$0xf]  ;;  %v84_v12 = vld [vmem:[%s9991_s2 + $0x18] sm:$0xff]  ;;  %v86_v16 = vld [vmem:[%s9991_s2 + $0x28] sm:$0xff] }
   0x4   :  { %5353 = vmatprep.subr.msk.mxu0 %vm196_vm0, %v170_v1  ;;  %v36_v6 = vld [vmem:[%s9993_s4] sm:$0xf]  ;;  %v42_v15 = vld [vmem:[%s9994_s5 + $0x18] sm:$0xff]  ;;  %v60_v17 = vld [vmem:[%s9996_s7 + $0x10] sm:$0xff] }
   0x5   :  { %5354 = vmatpush1.msk.msra.mxu0 %vm196_vm0, %v79_v0  ;;  %v81_v7 = vld [vmem:[%s9991_s2] sm:$0xff]  ;;  %6059 = vmatprep.subr.msk.mxu1 %vm196_vm0, %v36_v6  ;;  %v87_v18 = vld [vmem:[%s9991_s2 + $0x30] sm:$0xff]  ;;  %v59_v19 = vld [vmem:[%s9996_s7 + $0x8] sm:$0xff] }
   0x6   :  { %5355 = vmatmul.mubr.msk.f32.vlgmr.msra.gmra.mrb[0].mxu0 %vm171_vm1, %v39_v3  ;;  %6045 = vmatprep.subr.msk.mxu0 %vm196_vm0, %v80_v4  ;;  %v85_v13 = vld [vmem:[%s9991_s2 + $0x20] sm:$0xff]  ;;  %v61_v20 = vld [vmem:[%s9996_s7 + $0x18] sm:$0xff] }
   0x7   :  { %271 = vmatprep.mubr.f32.mxu0 %v10002_v2  ;;  %6046 = vmatpush3.msk.msra.mxu0 %vm196_vm0, %v80_v4  ;;  %v58_v14 = vld [vmem:[%s9996_s7] sm:$0xff] }
   0x8   :  { %6061 = vmatprep.mubr.msk.f32.mxu1 %vm171_vm1, %v81_v7  ;;  %6060 = vmatpush3.msk.msra.mxu1 %vm196_vm0, %v36_v6 }
   0x9   :  { %6062 = vmatmul.mubr.msk.f32.vlgmr.msra.gmra.mrb[0].mxu1 %vm171_vm1, %v82_v9  ;;  %315 = vperm.xlu0 %6829, %v58_v14  }
   0xa   :  { %5356 = vmatmul.mubr.msk.f32.gmra.mrb[2].mxu0 %vm171_vm1, %v40_v8  ;;  %6064 = vmatprep.mubr.msk.f32.mxu1 %vm171_vm1, %v83_v10 }
   0xb   :  { %277 = vmatprep.mubr.f32.mxu0 %v10002_v2  ;;  %323 = vperm.xlu1 %6830, %v60_v17  }
   0xd   :  { %6065 = vmatmul.mubr.msk.f32.gmra.mrb[2].mxu1 %vm171_vm1, %v84_v12 }
   0xe   :  { %5357 = vmatmul.mubr.msk.f32.gmra.mrb[4].mxu0 %vm171_vm1, %v41_v11  ;;  %6067 = vmatprep.mubr.msk.f32.mxu1 %vm171_vm1, %v85_v13 }
   0xf   :  { %283 = vmatprep.mubr.f32.mxu0 %v10002_v2 }
  0x11   :  { %6068 = vmatmul.mubr.msk.f32.gmra.mrb[4].mxu1 %vm171_vm1, %v86_v16 }
  0x12   :  { %5358 = vmatmul.mubr.msk.f32.gmra.mrb[6].mxu0 %vm171_vm1, %v42_v15 }
  0x13   :  { %15 = vsyncpa [#allocation3], 0  ;;  %289 = vmatprep.mubr.f32.mxu0 %v10002_v2  ;;  %v43_v21 = vld [vmem:[%s9994_s5 + $0x20] sm:$0xff]  ;;  %6070 = vmatprep.mubr.msk.f32.mxu1 %vm171_vm1, %v87_v18  ;;  %v88_v22 = vld [vmem:[%s9991_s2 + $0x38] sm:$0xff]  ;;  %vm1006_vm2 = vcmask 261120   ;;  %vm2733_vm3 = vcmask 1040384  }
  0x14   :  { %v89_v23 = vld [vmem:[%s9991_s2 + $0x40] sm:$0xff]  ;;  %319 = vperm.xlu0 %6829, %v59_v19   ;;  %327 = vperm.xlu1 %6830, %v61_v20   ;;  %v44_v24 = vld [vmem:[%s9994_s5 + $0x28] sm:$0xff]  ;;  %v91_v26 = vld [vmem:[%s9991_s2 + $0x50] sm:$0xff] }
  0x15   :  { %6071 = vmatmul.mubr.msk.f32.gmra.mrb[6].mxu1 %vm171_vm1, %v88_v22  ;;  %v90_v25 = vld [vmem:[%s9991_s2 + $0x48] sm:$0xff]  ;;  %v45_v27 = vld [vmem:[%s9994_s5 + $0x30] sm:$0xff]  ;;  %v92_v28 = vld [vmem:[%s9991_s2 + $0x58] sm:$0xff] }
  0x16   :  { %5359 = vmatmul.mubr.msk.f32.gmra.mrb[8].mxu0 %vm171_vm1, %v43_v21  ;;  %6073 = vmatprep.mubr.msk.f32.mxu1 %vm171_vm1, %v89_v23  ;;  %v93_v29 = vld [vmem:[%s9991_s2 + $0x60] sm:$0xff]  ;;  %v46_v30 = vld [vmem:[%s9994_s5 + $0x38] sm:$0xff]  ;;  %v94_v31 = vld [vmem:[%s9991_s2 + $0x68] sm:$0xff] }
  0x17   :  { %295 = vmatprep.mubr.f32.mxu0 %v10002_v2  ;;  %v5341_v32 = vld [vmem:[%s9994_s5 + $0x40] sm:$0xff]  ;;  %v95_v33 = vld [vmem:[%s9991_s2 + $0x70] sm:$0xff]  ;;  %v5342_v34 = vld [vmem:[%s9994_s5 + $0x48] sm:$0xff] }
  0x18   :  { %v96_v35 = vld [vmem:[%s9991_s2 + $0x78] sm:$0xff]  ;;  %v5343_v36 = vld [vmem:[%s9994_s5 + $0x50] sm:$0xff]  ;;  %v97_v37 = vld [vmem:[%s9991_s2 + $0x80] sm:$0xff] }
  0x19   :  { %6074 = vmatmul.mubr.msk.f32.gmra.mrb[8].mxu1 %vm171_vm1, %v90_v25  ;;  %v5344_v38 = vld [vmem:[%s9994_s5 + $0x58] sm:$0xff]  ;;  %v98_v39 = vld [vmem:[%s9991_s2 + $0x88] sm:$0xff]  ;;  %v99_v40 = vld [vmem:[%s9991_s2 + $0x90] sm:$0xff] }
  0x1a   :  { %5360 = vmatmul.mubr.msk.f32.gmra.mrb[10].mxu0 %vm171_vm1, %v44_v24  ;;  %6076 = vmatprep.mubr.msk.f32.mxu1 %vm171_vm1, %v91_v26  ;;  %v100_v41 = vld [vmem:[%s9991_s2 + $0x98] sm:$0xff]  ;;  %v101_v42 = vld [vmem:[%s9991_s2 + $0xa0] sm:$0xff]  ;;  %v102_v43 = vld [vmem:[%s9991_s2 + $0xa8] sm:$0xff] }
  0x1b   :  { %301 = vmatprep.mubr.f32.mxu0 %v10002_v2  ;;  %v103_v44 = vld [vmem:[%s9991_s2 + $0xb0] sm:$0xff]  ;;  %v104_v45 = vld [vmem:[%s9991_s2 + $0xb8] sm:$0xff]  ;;  %v105_v46 = vld [vmem:[%s9991_s2 + $0xc0] sm:$0xff] }
  0x1c   :  { %v106_v47 = vld [vmem:[%s9991_s2 + $0xc8] sm:$0xff]  ;;  %v107_v48 = vld [vmem:[%s9991_s2 + $0xd0] sm:$0xff]  ;;  %v108_v49 = vld [vmem:[%s9991_s2 + $0xd8] sm:$0xff] }
  0x1d   :  { %6077 = vmatmul.mubr.msk.f32.gmra.mrb[10].mxu1 %vm171_vm1, %v92_v28  ;;  %v109_v50 = vld [vmem:[%s9991_s2 + $0xe0] sm:$0xff]  ;;  %v110_v51 = vld [vmem:[%s9991_s2 + $0xe8] sm:$0xff]  ;;  %v111_v52 = vld [vmem:[%s9991_s2 + $0xf0] sm:$0xff] }
  0x1e   :  { %5361 = vmatmul.mubr.msk.f32.gmra.mrb[12].mxu0 %vm171_vm1, %v45_v27  ;;  %6079 = vmatprep.mubr.msk.f32.mxu1 %vm171_vm1, %v93_v29  ;;  %v112_v53 = vld [vmem:[%s9991_s2 + $0xf8] sm:$0xff]  ;;  %v5345_v54 = vld [vmem:[%s9994_s5 + $0x60] sm:$0xff]  ;;  %v5346_v55 = vld [vmem:[%s9994_s5 + $0x68] sm:$0xff] }
  0x1f   :  { %307 = vmatprep.mubr.f32.mxu0 %v10002_v2  ;;  %v5347_v56 = vld [vmem:[%s9994_s5 + $0x70] sm:$0xff]  ;;  %v5348_v57 = vld [vmem:[%s9994_s5 + $0x78] sm:$0xff]  ;;  %v5340_v58 = vld [vmem:[%s9993_s4 + $0x4] sm:$0xf] }
  0x20   :  { %6109 = vmatprep.subr.msk.mxu0 %vm196_vm0, %v5340_v58  ;;  %v113_v59 = vld [vmem:[%s9992_s3] sm:$0xff]  ;;  %v114_v60 = vld [vmem:[%s9992_s3 + $0x8] sm:$0xff]  ;;  %v115_v61 = vld [vmem:[%s9992_s3 + $0x10] sm:$0xff] }
  0x21   :  { %6080 = vmatmul.mubr.msk.f32.gmra.mrb[12].mxu1 %vm171_vm1, %v94_v31  ;;  %v116_v62 = vld [vmem:[%s9992_s3 + $0x18] sm:$0xff]  ;;  %v117_v63 = vld [vmem:[%s9992_s3 + $0x20] sm:$0xff]  ;;  %v118_v0 = vld [vmem:[%s9992_s3 + $0x28] sm:$0xff] }
  0x22   :  { %5362 = vmatmul.mubr.msk.f32.gmra.mrb[14].mxu0 %vm171_vm1, %v46_v30  ;;  %6082 = vmatprep.mubr.msk.f32.mxu1 %vm171_vm1, %v95_v33  ;;  %v119_v1 = vld [vmem:[%s9992_s3 + $0x30] sm:$0xff]  ;;  %v120_v3 = vld [vmem:[%s9992_s3 + $0x38] sm:$0xff]  ;;  %v121_v4 = vld [vmem:[%s9992_s3 + $0x40] sm:$0xff] }
  0x23   :  { %6047 = vmatprep.mubr.msk.f32.mxu0 %vm171_vm1, %v5341_v32  ;;  %v122_v6 = vld [vmem:[%s9992_s3 + $0x48] sm:$0xff]  ;;  %v123_v7 = vld [vmem:[%s9992_s3 + $0x50] sm:$0xff]  ;;  %v124_v8 = vld [vmem:[%s9992_s3 + $0x58] sm:$0xff] }
  0x24   :  { %v125_v9 = vld [vmem:[%s9992_s3 + $0x60] sm:$0xff]  ;;  %v126_v10 = vld [vmem:[%s9992_s3 + $0x68] sm:$0xff]  ;;  %v127_v11 = vld [vmem:[%s9992_s3 + $0x70] sm:$0xff] }
  0x25   :  { %6083 = vmatmul.mubr.msk.f32.gmra.mrb[14].mxu1 %vm171_vm1, %v96_v35  ;;  %v128_v12 = vld [vmem:[%s9992_s3 + $0x78] sm:$0xff]  ;;  %v7771_v15 = vld [vmem:[%s9995_s6] ss:$0 sm:$0xff] }
  0x26   :  { %6048 = vmatmul.mubr.msk.f32.vlgmr.msra.gmra.mrb[16].mxu0 %vm171_vm1, %v5342_v34  ;;  %6085 = vmatprep.mubr.msk.f32.mxu1 %vm171_vm1, %v97_v37 }
  0x27   :  { %6050 = vmatprep.mubr.msk.f32.mxu0 %vm171_vm1, %v5343_v36  ;;  %6110 = vmatpush3.msk.msra.mxu0 %vm196_vm0, %v5340_v58 }
  0x29   :  { %6086 = vmatmul.mubr.msk.f32.gmra.mrb[16].mxu1 %vm171_vm1, %v98_v39 }
  0x2a   :  { %6051 = vmatmul.mubr.msk.f32.gmra.mrb[18].mxu0 %vm171_vm1, %v5344_v38  ;;  %6088 = vmatprep.mubr.msk.f32.mxu1 %vm171_vm1, %v99_v40 }
  0x2b   :  { %6053 = vmatprep.mubr.msk.f32.mxu0 %vm171_vm1, %v5345_v54 }
  0x2d   :  { %6089 = vmatmul.mubr.msk.f32.gmra.mrb[18].mxu1 %vm171_vm1, %v100_v41 }
  0x2e   :  { %6091 = vmatprep.mubr.msk.f32.mxu1 %vm171_vm1, %v101_v42  ;;  %6054 = vmatmul.mubr.msk.f32.gmra.mrb[20].mxu0 %vm171_vm1, %v5346_v55 }
  0x2f   :  { %6056 = vmatprep.mubr.msk.f32.mxu0 %vm171_vm1, %v5347_v56 }
  0x31   :  { %6092 = vmatmul.mubr.msk.f32.gmra.mrb[20].mxu1 %vm171_vm1, %v102_v43 }
  0x32   :  { %6094 = vmatprep.mubr.msk.f32.mxu1 %vm171_vm1, %v103_v44  ;;  %6057 = vmatmul.mubr.msk.f32.gmra.mrb[22].mxu0 %vm171_vm1, %v5348_v57 }
  0x33   :  { %6111 = vmatprep.mubr.msk.f32.mxu0 %vm171_vm1, %v113_v59 }
  0x35   :  { %6095 = vmatmul.mubr.msk.f32.gmra.mrb[22].mxu1 %vm171_vm1, %v104_v45 }
  0x36   :  { %6097 = vmatprep.mubr.msk.f32.mxu1 %vm171_vm1, %v105_v46  ;;  %6112 = vmatmul.mubr.msk.f32.vlgmr.msra.gmra.mrb[24].mxu0 %vm171_vm1, %v114_v60 }
  0x37   :  { %6114 = vmatprep.mubr.msk.f32.mxu0 %vm171_vm1, %v115_v61 }
  0x39   :  { %6098 = vmatmul.mubr.msk.f32.gmra.mrb[24].mxu1 %vm171_vm1, %v106_v47 }
  0x3a   :  { %6100 = vmatprep.mubr.msk.f32.mxu1 %vm171_vm1, %v107_v48  ;;  %6115 = vmatmul.mubr.msk.f32.gmra.mrb[26].mxu0 %vm171_vm1, %v116_v62 }
  0x3b   :  { %6117 = vmatprep.mubr.msk.f32.mxu0 %vm171_vm1, %v117_v63 }
  0x3d   :  { %6101 = vmatmul.mubr.msk.f32.gmra.mrb[26].mxu1 %vm171_vm1, %v108_v49 }
  0x3e   :  { %6103 = vmatprep.mubr.msk.f32.mxu1 %vm171_vm1, %v109_v50  ;;  %6118 = vmatmul.mubr.msk.f32.gmra.mrb[28].mxu0 %vm171_vm1, %v118_v0 }
  0x3f   :  { %6120 = vmatprep.mubr.msk.f32.mxu0 %vm171_vm1, %v119_v1 }
  0x41   :  { %6104 = vmatmul.mubr.msk.f32.gmra.mrb[28].mxu1 %vm171_vm1, %v110_v51 }
  0x42   :  { %6106 = vmatprep.mubr.msk.f32.mxu1 %vm171_vm1, %v111_v52  ;;  %6121 = vmatmul.mubr.msk.f32.gmra.mrb[30].mxu0 %vm171_vm1, %v120_v3 }
  0x43   :  { %6123 = vmatprep.mubr.msk.f32.mxu0 %vm171_vm1, %v121_v4 }
  0x45   :  { %6107 = vmatmul.mubr.msk.f32.gmra.mrb[30].mxu1 %vm171_vm1, %v112_v53 }
  0x46   :  { %6124 = vmatmul.mubr.msk.f32.gmra.mrb[32].mxu0 %vm171_vm1, %v122_v6 }
  0x47   :  { %6126 = vmatprep.mubr.msk.f32.mxu0 %vm171_vm1, %v123_v7 }
  0x4a   :  { %6127 = vmatmul.mubr.msk.f32.gmra.mrb[34].mxu0 %vm171_vm1, %v124_v8 }
  0x4b   :  { %6129 = vmatprep.mubr.msk.f32.mxu0 %vm171_vm1, %v125_v9 }
  0x4e   :  { %6130 = vmatmul.mubr.msk.f32.gmra.mrb[36].mxu0 %vm171_vm1, %v126_v10 }
  0x4f   :  { %6132 = vmatprep.mubr.msk.f32.mxu0 %vm171_vm1, %v127_v11 }
  0x52   :  { %6133 = vmatmul.mubr.msk.f32.gmra.mrb[38].mxu0 %vm171_vm1, %v128_v12 }
  0x88   :  { %v7795_v37 = vpop.permute.xlu0 %315 }
  0x89   :  { %10023 = vst [vmem:[#allocation9_spill] sm:$0xff] %v7795_v37 }
  0x8a   :  { %v7801_v42 = vpop.permute.xlu1 %323 }
  0x8b   :  { %10026 = vst [vmem:[#allocation12_spill] sm:$0xff] %v7801_v42 }
  0x93   :  { %v7807_v47 = vpop.permute.xlu0 %319  ;;  %v7811_v54 = vpop.permute.xlu1 %327 }
  0x94   :  { %10029 = vst [vmem:[#allocation15_spill] sm:$0xff] %v7807_v47  ;;  %10030 = vst [vmem:[#allocation16_spill] sm:$0xff] %v7811_v54 }
  0xd9   :  { %v7764_v13 = vpop.f32.mrb[0].mxu0 }
  0xda   :  { %v7766_v14 = vpop.f32.mrb[1].mxu0 }
  0xdc   :  { %v6063_v17 = vpop.f32.mrb[0].mxu1 }
  0xdd   :  { %v7773_v16 = vpop.f32.mrb[2].mxu0  ;;  %v647_v19 = vpop.f32.mrb[1].mxu1  ;;  %v653_v3 = vadd.f32 %v6063_v17, %v7771_v15 }
  0xde   :  { %v7775_v18 = vpop.f32.mrb[3].mxu0  ;;  %v648_v20 = vadd.f32 %v7771_v15, %v647_v19 }
  0xe0   :  { %v6066_v22 = vpop.f32.mrb[2].mxu1  ;;  %6143 = vmatprep.mubr.msk.f32.mxu0 %vm1006_vm2, %v648_v20 }
  0xe1   :  { %v7778_v21 = vpop.f32.mrb[4].mxu0  ;;  %v657_v24 = vpop.f32.mrb[3].mxu1  ;;  %v663_v8 = vadd.f32 %v6066_v22, %v7771_v15 }
  0xe2   :  { %v7781_v23 = vpop.f32.mrb[5].mxu0  ;;  %v658_v1 = vadd.f32 %v7771_v15, %v657_v24 }
  0xe4   :  { %v6069_v26 = vpop.f32.mrb[4].mxu1 }
  0xe5   :  { %v7783_v25 = vpop.f32.mrb[6].mxu0  ;;  %v667_v28 = vpop.f32.mrb[5].mxu1  ;;  %v673_v12 = vadd.f32 %v6069_v26, %v7771_v15 }
  0xe6   :  { %v7785_v27 = vpop.f32.mrb[7].mxu0  ;;  %v668_v7 = vadd.f32 %v7771_v15, %v667_v28 }
  0xe8   :  { %v6072_v30 = vpop.f32.mrb[6].mxu1 }
  0xe9   :  { %v7787_v29 = vpop.f32.mrb[8].mxu0  ;;  %v677_v32 = vpop.f32.mrb[7].mxu1  ;;  %v683_v22 = vadd.f32 %v6072_v30, %v7771_v15 }
  0xea   :  { %10019 = vst [vmem:[#allocation5_spill] sm:$0xff] %v7787_v29  ;;  %v7789_v31 = vpop.f32.mrb[9].mxu0  ;;  %v678_v11 = vadd.f32 %v7771_v15, %v677_v32 }
  0xeb   :  { %10020 = vst [vmem:[#allocation6_spill] sm:$0xff] %v7789_v31 }
  0xec   :  { %v6075_v34 = vpop.f32.mrb[8].mxu1 }
  0xed   :  { %v7791_v33 = vpop.f32.mrb[10].mxu0  ;;  %v687_v36 = vpop.f32.mrb[9].mxu1  ;;  %v693_v26 = vadd.f32 %v6075_v34, %v7771_v15 }
  0xee   :  { %10021 = vst [vmem:[#allocation7_spill] sm:$0xff] %v7791_v33  ;;  %v7793_v35 = vpop.f32.mrb[11].mxu0  ;;  %v688_v20 = vadd.f32 %v7771_v15, %v687_v36 }
  0xef   :  { %10022 = vst [vmem:[#allocation8_spill] sm:$0xff] %v7793_v35 }
  0xf0   :  { %v6078_v39 = vpop.f32.mrb[10].mxu1 }
  0xf1   :  { %v7797_v38 = vpop.f32.mrb[12].mxu0  ;;  %v697_v41 = vpop.f32.mrb[11].mxu1  ;;  %v703_v30 = vadd.f32 %v6078_v39, %v7771_v15 }
  0xf2   :  { %10024 = vst [vmem:[#allocation10_spill] sm:$0xff] %v7797_v38  ;;  %v7799_v40 = vpop.f32.mrb[13].mxu0  ;;  %v698_v32 = vadd.f32 %v7771_v15, %v697_v41 }
  0xf3   :  { %10025 = vst [vmem:[#allocation11_spill] sm:$0xff] %v7799_v40 }
  0xf4   :  { %v6081_v44 = vpop.f32.mrb[12].mxu1 }
  0xf5   :  { %v7803_v43 = vpop.f32.mrb[14].mxu0  ;;  %v707_v46 = vpop.f32.mrb[13].mxu1  ;;  %v713_v34 = vadd.f32 %v6081_v44, %v7771_v15 }
  0xf6   :  { %10027 = vst [vmem:[#allocation13_spill] sm:$0xff] %v7803_v43  ;;  %v7805_v45 = vpop.f32.mrb[15].mxu0  ;;  %v708_v36 = vadd.f32 %v7771_v15, %v707_v46 }
  0xf7   :  { %10028 = vst [vmem:[#allocation14_spill] sm:$0xff] %v7805_v45 }
  0xf8   :  { %v6084_v49 = vpop.f32.mrb[14].mxu1 }
  0xf9   :  { %v6049_v48 = vpop.f32.mrb[16].mxu0  ;;  %v717_v52 = vpop.f32.mrb[15].mxu1  ;;  %v723_v46 = vadd.f32 %v6084_v49, %v7771_v15 }
  0xfa   :  { %v445_v50 = vadd.f32 %v6049_v48, %v7807_v47  ;;  %v439_v51 = vpop.f32.mrb[17].mxu0  ;;  %v718_v41 = vadd.f32 %v7771_v15, %v717_v52 }
  0xfb   :  { %v440_v53 = vadd.f32 %v439_v51, %v7795_v37 }
  0xfc   :  { %v6087_v57 = vpop.f32.mrb[16].mxu1 }
  0xfd   :  { %v6545_v55 = vpack.c.bf16 %v445_v50, %v440_v53  ;;  %v6052_v56 = vpop.f32.mrb[18].mxu0  ;;  %v727_v60 = vpop.f32.mrb[17].mxu1 }
  0xfe   :  { %v455_v58 = vadd.f32 %v6052_v56, %v7811_v54  ;;  %v449_v59 = vpop.f32.mrb[19].mxu0  ;;  %v733_v56 = vadd.f32 %v6087_v57, %v7771_v15 }
  0xff   :  { %v450_v61 = vadd.f32 %v449_v59, %v7801_v42  ;;  %6546 = vmatprep.subr.bf16.mxu0 %v6545_v55 }
 0x100   :  { %6548 = vmatpush3.bf16.msra.mxu0 %v6545_v55  ;;  %v6090_v63 = vpop.f32.mrb[18].mxu1  ;;  %v728_v55 = vadd.f32 %v7771_v15, %v727_v60 }
 0x101   :  { %v6549_v62 = vpack.c.bf16 %v455_v58, %v450_v61  ;;  %v737_v0 = vpop.f32.mrb[19].mxu1  ;;  %v743_v44 = vadd.f32 %v6090_v63, %v7771_v15  ;;  %v7861_v60 = vpop.f32.mrb[20].mxu0 }
 0x102   :  { %v738_v39 = vadd.f32 %v7771_v15, %v737_v0  ;;  %v7863_v61 = vpop.f32.mrb[21].mxu0 }
 0x103   :  { %6550 = vmatprep.subr.bf16.mxu0 %v6549_v62 }
 0x104   :  { %6552 = vmatpush3.bf16.msra.mxu0 %v6549_v62  ;;  %v6093_v4 = vpop.f32.mrb[20].mxu1 }
 0x105   :  { %v747_v6 = vpop.f32.mrb[21].mxu1  ;;  %v753_v49 = vadd.f32 %v6093_v4, %v7771_v15  ;;  %v7869_v0 = vpop.f32.mrb[22].mxu0 }
 0x106   :  { %v748_v52 = vadd.f32 %v7771_v15, %v747_v6 }
 0x107   :  { %6144 = vmatmul.mubr.msk.f32.vlgmr.msra.gmra.mrb[40].mxu0 %vm1006_vm2, %v653_v3 }
 0x108   :  { %6146 = vmatprep.mubr.msk.f32.mxu0 %vm1006_vm2, %v658_v1  ;;  %v6096_v9 = vpop.f32.mrb[22].mxu1  ;;  %v7871_v1 = vpop.f32.mrb[23].mxu0 }
 0x109   :  { %v757_v10 = vpop.f32.mrb[23].mxu1  ;;  %v763_v57 = vadd.f32 %v6096_v9, %v7771_v15  ;;  %v7877_v6 = vpop.f32.mrb[24].mxu0 }
 0x10a   :  { %v758_v58 = vadd.f32 %v7771_v15, %v757_v10  ;;  %10031 = vst [vmem:[#allocation17_spill] sm:$0xff] %v7877_v6 }
 0x10b   :  { %6147 = vmatmul.mubr.msk.f32.gmra.mrb[42].mxu0 %vm1006_vm2, %v663_v8 }
 0x10c   :  { %6149 = vmatprep.mubr.msk.f32.mxu0 %vm1006_vm2, %v668_v7  ;;  %v6099_v17 = vpop.f32.mrb[24].mxu1  ;;  %v7879_v7 = vpop.f32.mrb[25].mxu0 }
 0x10d   :  { %v767_v19 = vpop.f32.mrb[25].mxu1  ;;  %v773_v62 = vadd.f32 %v6099_v17, %v7771_v15  ;;  %v7885_v10 = vpop.f32.mrb[26].mxu0 }
 0x10e   :  { %v768_v59 = vadd.f32 %v7771_v15, %v767_v19  ;;  %10032 = vst [vmem:[#allocation18_spill] sm:$0xff] %v7885_v10 }
 0x10f   :  { %6150 = vmatmul.mubr.msk.f32.gmra.mrb[44].mxu0 %vm1006_vm2, %v673_v12 }
 0x110   :  { %6152 = vmatprep.mubr.msk.f32.mxu0 %vm1006_vm2, %v678_v11  ;;  %v6102_v24 = vpop.f32.mrb[26].mxu1  ;;  %v7887_v11 = vpop.f32.mrb[27].mxu0 }
 0x111   :  { %v777_v28 = vpop.f32.mrb[27].mxu1  ;;  %v783_v3 = vadd.f32 %v6102_v24, %v7771_v15  ;;  %10033 = vst [vmem:[#allocation19_spill] sm:$0xff] %v7887_v11  ;;  %v7892_v17 = vpop.f32.mrb[28].mxu0 }
 0x112   :  { %v778_v63 = vadd.f32 %v7771_v15, %v777_v28  ;;  %10034 = vst [vmem:[#allocation20_spill] sm:$0xff] %v7892_v17  ;;  %v7894_v19 = vpop.f32.mrb[29].mxu0 }
 0x113   :  { %6153 = vmatmul.mubr.msk.f32.gmra.mrb[46].mxu0 %vm1006_vm2, %v683_v22  ;;  %10035 = vst [vmem:[#allocation21_spill] sm:$0xff] %v7894_v19 }
 0x114   :  { %6155 = vmatprep.mubr.msk.f32.mxu0 %vm1006_vm2, %v688_v20  ;;  %v6105_v48 = vpop.f32.mrb[28].mxu1 }
 0x115   :  { %v787_v50 = vpop.f32.mrb[29].mxu1  ;;  %v793_v8 = vadd.f32 %v6105_v48, %v7771_v15  ;;  %v7897_v20 = vpop.f32.mrb[30].mxu0 }
 0x116   :  { %v788_v4 = vadd.f32 %v7771_v15, %v787_v50  ;;  %10036 = vst [vmem:[#allocation22_spill] sm:$0xff] %v7897_v20  ;;  %v7899_v22 = vpop.f32.mrb[31].mxu0 }
 0x117   :  { %6156 = vmatmul.mubr.msk.f32.gmra.mrb[48].mxu0 %vm1006_vm2, %v693_v26  ;;  %10037 = vst [vmem:[#allocation23_spill] sm:$0xff] %v7899_v22 }
 0x118   :  { %6158 = vmatprep.mubr.msk.f32.mxu0 %vm1006_vm2, %v698_v32  ;;  %v6108_v51 = vpop.f32.mrb[30].mxu1 }
 0x119   :  { %v797_v53 = vpop.f32.mrb[31].mxu1  ;;  %v803_v12 = vadd.f32 %v6108_v51, %v7771_v15  ;;  %v7901_v24 = vpop.f32.mrb[32].mxu0 }
 0x11a   :  { %v798_v9 = vadd.f32 %v7771_v15, %v797_v53  ;;  %10038 = vst [vmem:[#allocation24_spill] sm:$0xff] %v7901_v24  ;;  %v7903_v28 = vpop.f32.mrb[33].mxu0 }
 0x11b   :  { %6159 = vmatmul.mubr.msk.f32.gmra.mrb[50].mxu0 %vm1006_vm2, %v703_v30  ;;  %10039 = vst [vmem:[#allocation25_spill] sm:$0xff] %v7903_v28 }
 0x11c   :  { %6161 = vmatprep.mubr.msk.f32.mxu0 %vm1006_vm2, %v708_v36 }
 0x11d   :  { %v7905_v32 = vpop.f32.mrb[34].mxu0 }
 0x11e   :  { %10040 = vst [vmem:[#allocation26_spill] sm:$0xff] %v7905_v32  ;;  %v7907_v26 = vpop.f32.mrb[35].mxu0 }
 0x11f   :  { %6162 = vmatmul.mubr.msk.f32.gmra.mrb[52].mxu0 %vm1006_vm2, %v713_v34  ;;  %10041 = vst [vmem:[#allocation27_spill] sm:$0xff] %v7907_v26 }
 0x120   :  { %6164 = vmatprep.mubr.msk.f32.mxu0 %vm1006_vm2, %v718_v41 }
 0x121   :  { %v7909_v15 = vpop.f32.mrb[36].mxu0 }
 0x122   :  { %10042 = vst [vmem:[#allocation28_spill] sm:$0xff] %v7909_v15  ;;  %v7911_v48 = vpop.f32.mrb[37].mxu0 }
 0x123   :  { %6165 = vmatmul.mubr.msk.f32.gmra.mrb[54].mxu0 %vm1006_vm2, %v723_v46  ;;  %10043 = vst [vmem:[#allocation29_spill] sm:$0xff] %v7911_v48 }
 0x124   :  { %6167 = vmatprep.mubr.msk.f32.mxu0 %vm1006_vm2, %v728_v55 }
 0x125   :  { %v7913_v50 = vpop.f32.mrb[38].mxu0 }
 0x126   :  { %10044 = vst [vmem:[#allocation30_spill] sm:$0xff] %v7913_v50  ;;  %v7915_v36 = vpop.f32.mrb[39].mxu0 }
 0x127   :  { %6168 = vmatmul.mubr.msk.f32.gmra.mrb[56].mxu0 %vm1006_vm2, %v733_v56  ;;  %10045 = vst [vmem:[#allocation31_spill] sm:$0xff] %v7915_v36 }
 0x128   :  { %6170 = vmatprep.mubr.msk.f32.mxu0 %vm1006_vm2, %v738_v39 }
 0x12b   :  { %6171 = vmatmul.mubr.msk.f32.gmra.mrb[58].mxu0 %vm1006_vm2, %v743_v44 }
 0x12c   :  { %6173 = vmatprep.mubr.msk.f32.mxu0 %vm1006_vm2, %v748_v52 }
 0x12f   :  { %6174 = vmatmul.mubr.msk.f32.gmra.mrb[60].mxu0 %vm1006_vm2, %v753_v49 }
 0x130   :  { %6176 = vmatprep.mubr.msk.f32.mxu0 %vm1006_vm2, %v758_v58 }
 0x133   :  { %6177 = vmatmul.mubr.msk.f32.gmra.mrb[62].mxu0 %vm1006_vm2, %v763_v57 }
 0x134   :  { %6179 = vmatprep.mubr.msk.f32.mxu0 %vm1006_vm2, %v768_v59 }
 0x137   :  { %6180 = vmatmul.mubr.msk.f32.gmra.mrb[64].mxu0 %vm1006_vm2, %v773_v62 }
 0x138   :  { %6182 = vmatprep.mubr.msk.f32.mxu0 %vm1006_vm2, %v778_v63 }
 0x13b   :  { %6183 = vmatmul.mubr.msk.f32.gmra.mrb[66].mxu0 %vm1006_vm2, %v783_v3 }
 0x13c   :  { %6185 = vmatprep.mubr.msk.f32.mxu0 %vm1006_vm2, %v788_v4 }
 0x13f   :  { %6186 = vmatmul.mubr.msk.f32.gmra.mrb[68].mxu0 %vm1006_vm2, %v793_v8 }
 0x140   :  { %6188 = vmatprep.mubr.msk.f32.mxu0 %vm1006_vm2, %v798_v9 }
 0x143   :  { %6189 = vmatmul.mubr.msk.f32.gmra.mrb[70].mxu0 %vm1006_vm2, %v803_v12 }
 0x1da   :  { %v7917_v30 = vpop.f32.mrb[40].mxu0 }
 0x1db   :  { %v7919_v51 = vpop.f32.mrb[41].mxu0 }
 0x1dc   :  { %1328 = vmax.xlane.f32.xlu0 %v7919_v51 }
 0x1de   :  { %v7922_v53 = vpop.f32.mrb[42].mxu0 }
 0x1df   :  { %v7924_v41 = vpop.f32.mrb[43].mxu0 }
 0x1e2   :  { %v7926_v34 = vpop.f32.mrb[44].mxu0 }
 0x1e3   :  { %v7928_v55 = vpop.f32.mrb[45].mxu0 }
 0x1e6   :  { %v7930_v46 = vpop.f32.mrb[46].mxu0 }
 0x1e7   :  { %v7932_v39 = vpop.f32.mrb[47].mxu0 }
 0x1ea   :  { %v7934_v56 = vpop.f32.mrb[48].mxu0 }
 0x1eb   :  { %v7936_v44 = vpop.f32.mrb[49].mxu0 }
 0x1ee   :  { %v7938_v52 = vpop.f32.mrb[50].mxu0 }
 0x1ef   :  { %v7940_v49 = vpop.f32.mrb[51].mxu0 }
 0x1f2   :  { %v7942_v58 = vpop.f32.mrb[52].mxu0 }
 0x1f3   :  { %v7944_v57 = vpop.f32.mrb[53].mxu0 }
 0x1f6   :  { %v7946_v59 = vpop.f32.mrb[54].mxu0 }
 0x1f7   :  { %v7948_v62 = vpop.f32.mrb[55].mxu0 }
 0x1fa   :  { %v7950_v63 = vpop.f32.mrb[56].mxu0 }
 0x1fb   :  { %1362 = vmax.xlane.f32.xlu1 %v7950_v63  ;;  %v7953_v3 = vpop.f32.mrb[57].mxu0 }
 0x1fc   :  { %1360 = vmax.xlane.f32.xlu0 %v7953_v3 }
 0x1fe   :  { %v7956_v4 = vpop.f32.mrb[58].mxu0 }
 0x1ff   :  { %1332 = vmax.xlane.f32.xlu1 %v7924_v41  ;;  %v7959_v8 = vpop.f32.mrb[59].mxu0 }
 0x200   :  { %1330 = vmax.xlane.f32.xlu0 %v7917_v30 }
 0x202   :  { %v7962_v9 = vpop.f32.mrb[60].mxu0 }
 0x203   :  { %1336 = vmax.xlane.f32.xlu1 %v7928_v55  ;;  %v7965_v12 = vpop.f32.mrb[61].mxu0 }
 0x204   :  { %1366 = vmax.xlane.f32.xlu0 %v7956_v4 }
 0x206   :  { %v7968_v5 = vpop.f32.mrb[62].mxu0 }
 0x207   :  { %1364 = vmax.xlane.f32.xlu1 %v7959_v8  ;;  %v7971_v2 = vpop.f32.mrb[63].mxu0 }
 0x208   :  { %1334 = vmax.xlane.f32.xlu0 %v7922_v53 }
 0x20a   :  { %v7974_v42 = vpop.f32.mrb[64].mxu0 }
 0x20b   :  { %1340 = vmax.xlane.f32.xlu1 %v7932_v39  ;;  %v7977_v54 = vpop.f32.mrb[65].mxu0 }
 0x20c   :  { %1370 = vmax.xlane.f32.xlu0 %v7962_v9 }
 0x20e   :  { %v7980_v37 = vpop.f32.mrb[66].mxu0 }
 0x20f   :  { %1368 = vmax.xlane.f32.xlu1 %v7965_v12  ;;  %v7983_v47 = vpop.f32.mrb[67].mxu0 }
 0x210   :  { %1338 = vmax.xlane.f32.xlu0 %v7926_v34 }
 0x212   :  { %v7986_v45 = vpop.f32.mrb[68].mxu0 }
 0x213   :  { %1344 = vmax.xlane.f32.xlu1 %v7936_v44  ;;  %v7989_v40 = vpop.f32.mrb[69].mxu0 }
 0x214   :  { %1374 = vmax.xlane.f32.xlu0 %v7968_v5 }
 0x216   :  { %v7992_v43 = vpop.f32.mrb[70].mxu0 }
 0x217   :  { %1372 = vmax.xlane.f32.xlu1 %v7971_v2  ;;  %v7995_v35 = vpop.f32.mrb[71].mxu0 }
 0x218   :  { %1342 = vmax.xlane.f32.xlu0 %v7930_v46 }
 0x21b   :  { %1348 = vmax.xlane.f32.xlu1 %v7940_v49 }
 0x21c   :  { %1378 = vmax.xlane.f32.xlu0 %v7974_v42 }
 0x21f   :  { %1376 = vmax.xlane.f32.xlu1 %v7977_v54 }
 0x220   :  { %1346 = vmax.xlane.f32.xlu0 %v7934_v56 }
 0x223   :  { %1352 = vmax.xlane.f32.xlu1 %v7944_v57 }
 0x224   :  { %1382 = vmax.xlane.f32.xlu0 %v7980_v37 }
 0x227   :  { %1380 = vmax.xlane.f32.xlu1 %v7983_v47 }
 0x228   :  { %1350 = vmax.xlane.f32.xlu0 %v7938_v52 }
 0x22b   :  { %1356 = vmax.xlane.f32.xlu1 %v7948_v62 }
 0x22c   :  { %1386 = vmax.xlane.f32.xlu0 %v7986_v45 }
 0x22f   :  { %1384 = vmax.xlane.f32.xlu1 %v7989_v40 }
 0x230   :  { %1354 = vmax.xlane.f32.xlu0 %v7942_v58 }
 0x233   :  { %1388 = vmax.xlane.f32.xlu1 %v7995_v35 }
 0x234   :  { %1390 = vmax.xlane.f32.xlu0 %v7992_v43 }
 0x238   :  { %1358 = vmax.xlane.f32.xlu0 %v7946_v59 }
 0x269   :  { %v1329_v38 = vpop.xlane.xlu0 %1328 }
 0x26a   :  { %v1392_v33 = vsub.f32 %v7919_v51, %v1329_v38 }
 0x26c   :  { %v1424_v31 = vmul.f32 1.442695, %v1392_v33 }
 0x26e   :  { %6841 = vpow2.f32 %v1424_v31 }
 0x278   :  { %v8014_v29 = vpop.eup %6841 }
 0x279   :  { %1488 = vadd.xlane.f32.xlu1 %v8014_v29 }
 0x288   :  { %v1363_v50 = vpop.xlane.xlu1 %1362 }
 0x289   :  { %v1361_v36 = vpop.xlane.xlu0 %1360  ;;  %v1409_v26 = vsub.f32 %v7950_v63, %v1363_v50 }
 0x28a   :  { %v1408_v33 = vsub.f32 %v7953_v3, %v1361_v36 }
 0x28b   :  { %v1458_v51 = vmul.f32 1.442695, %v1409_v26 }
 0x28c   :  { %v1333_v15 = vpop.xlane.xlu1 %1332  ;;  %v1456_v10 = vmul.f32 1.442695, %v1408_v33 }
 0x28d   :  { %v1394_v48 = vsub.f32 %v7924_v41, %v1333_v15  ;;  %v1331_v32 = vpop.xlane.xlu0 %1330 }
 0x28e   :  { %v1393_v24 = vsub.f32 %v7917_v30, %v1331_v32 }
 0x28f   :  { %v1428_v28 = vmul.f32 1.442695, %v1394_v48 }
 0x290   :  { %v1426_v20 = vmul.f32 1.442695, %v1393_v24  ;;  %v1337_v22 = vpop.xlane.xlu1 %1336 }
 0x291   :  { %6843 = vpow2.f32 %v1428_v28  ;;  %v1396_v31 = vsub.f32 %v7928_v55, %v1337_v22  ;;  %v1367_v38 = vpop.xlane.xlu0 %1366 }
 0x292   :  { %6845 = vpow2.f32 %v1426_v20  ;;  %v1411_v50 = vsub.f32 %v7956_v4, %v1367_v38 }
 0x293   :  { %v1432_v17 = vmul.f32 1.442695, %v1396_v31 }
 0x294   :  { %v1365_v19 = vpop.xlane.xlu1 %1364  ;;  %v1462_v26 = vmul.f32 1.442695, %v1411_v50 }
 0x295   :  { %6847 = vpow2.f32 %v1432_v17  ;;  %v1335_v15 = vpop.xlane.xlu0 %1334  ;;  %v1410_v28 = vsub.f32 %v7959_v8, %v1365_v19 }
 0x296   :  { %6849 = vpow2.f32 %v1458_v51  ;;  %v1395_v32 = vsub.f32 %v7922_v53, %v1335_v15 }
 0x297   :  { %6851 = vpow2.f32 %v1456_v10  ;;  %v1460_v55 = vmul.f32 1.442695, %v1410_v28 }
 0x298   :  { %v1430_v24 = vmul.f32 1.442695, %v1395_v32  ;;  %v1341_v48 = vpop.xlane.xlu1 %1340 }
 0x299   :  { %v1398_v22 = vsub.f32 %v7932_v39, %v1341_v48  ;;  %v1371_v36 = vpop.xlane.xlu0 %1370 }
 0x29a   :  { %6853 = vpow2.f32 %v1430_v24  ;;  %v1413_v10 = vsub.f32 %v7962_v9, %v1371_v36 }
 0x29b   :  { %v8026_v20 = vpop.eup %6843  ;;  %v1436_v30 = vmul.f32 1.442695, %v1398_v22 }
 0x29c   :  { %v8028_v17 = vpop.eup %6845  ;;  %v1369_v41 = vpop.xlane.xlu1 %1368  ;;  %1492 = vadd.xlane.f32.xlu1 %v8026_v20  ;;  %v1466_v38 = vmul.f32 1.442695, %v1413_v10 }
 0x29d   :  { %6855 = vpow2.f32 %v1436_v30  ;;  %v1339_v53 = vpop.xlane.xlu0 %1338  ;;  %1490 = vadd.xlane.f32.xlu0 %v8028_v17  ;;  %v1412_v8 = vsub.f32 %v7965_v12, %v1369_v41 }
 0x29e   :  { %6857 = vpow2.f32 %v1462_v26  ;;  %v1397_v19 = vsub.f32 %v7926_v34, %v1339_v53 }
 0x29f   :  { %v8034_v39 = vpop.eup %6847  ;;  %6859 = vpow2.f32 %v1460_v55  ;;  %v1464_v50 = vmul.f32 1.442695, %v1412_v8 }
 0x2a0   :  { %v8036_v63 = vpop.eup %6849  ;;  %v1434_v3 = vmul.f32 1.442695, %v1397_v19  ;;  %v1345_v4 = vpop.xlane.xlu1 %1344  ;;  %1496 = vadd.xlane.f32.xlu1 %v8034_v39 }
 0x2a1   :  { %v1400_v33 = vsub.f32 %v7936_v44, %v1345_v4  ;;  %v1375_v31 = vpop.xlane.xlu0 %1374  ;;  %1522 = vadd.xlane.f32.xlu0 %v8036_v63  ;;  %v8042_v9 = vpop.eup %6851 }
 0x2a2   :  { %6861 = vpow2.f32 %v1434_v3  ;;  %v1415_v44 = vsub.f32 %v7968_v5, %v1375_v31 }
 0x2a3   :  { %v1440_v34 = vmul.f32 1.442695, %v1400_v33 }
 0x2a4   :  { %v8044_v51 = vpop.eup %6853  ;;  %v1373_v15 = vpop.xlane.xlu1 %1372  ;;  %1520 = vadd.xlane.f32.xlu1 %v8042_v9  ;;  %v1470_v41 = vmul.f32 1.442695, %v1415_v44 }
 0x2a5   :  { %6863 = vpow2.f32 %v1440_v34  ;;  %v1343_v32 = vpop.xlane.xlu0 %1342  ;;  %1494 = vadd.xlane.f32.xlu0 %v8044_v51  ;;  %v1414_v36 = vsub.f32 %v7971_v2, %v1373_v15 }
 0x2a6   :  { %6865 = vpow2.f32 %v1466_v38  ;;  %v1399_v12 = vsub.f32 %v7930_v46, %v1343_v32 }
 0x2a7   :  { %v8050_v24 = vpop.eup %6855  ;;  %6867 = vpow2.f32 %v1464_v50  ;;  %v1468_v10 = vmul.f32 1.442695, %v1414_v36 }
 0x2a8   :  { %v8052_v48 = vpop.eup %6857  ;;  %v1438_v28 = vmul.f32 1.442695, %v1399_v12  ;;  %v1349_v22 = vpop.xlane.xlu1 %1348  ;;  %1500 = vadd.xlane.f32.xlu1 %v8050_v24 }
 0x2a9   :  { %v1402_v26 = vsub.f32 %v7940_v49, %v1349_v22  ;;  %v1379_v30 = vpop.xlane.xlu0 %1378  ;;  %1526 = vadd.xlane.f32.xlu0 %v8052_v48  ;;  %v8058_v5 = vpop.eup %6859 }
 0x2aa   :  { %6869 = vpow2.f32 %v1438_v28  ;;  %v1417_v2 = vsub.f32 %v7974_v42, %v1379_v30 }
 0x2ab   :  { %v1444_v46 = vmul.f32 1.442695, %v1402_v26 }
 0x2ac   :  { %v8060_v55 = vpop.eup %6861  ;;  %v1377_v53 = vpop.xlane.xlu1 %1376  ;;  %1524 = vadd.xlane.f32.xlu1 %v8058_v5  ;;  %v1474_v15 = vmul.f32 1.442695, %v1417_v2 }
 0x2ad   :  { %6871 = vpow2.f32 %v1444_v46  ;;  %v1347_v19 = vpop.xlane.xlu0 %1346  ;;  %1498 = vadd.xlane.f32.xlu0 %v8060_v55  ;;  %v1416_v31 = vsub.f32 %v7977_v54, %v1377_v53 }
 0x2ae   :  { %6873 = vpow2.f32 %v1470_v41  ;;  %v1401_v49 = vsub.f32 %v7934_v56, %v1347_v19 }
 0x2af   :  { %v8066_v3 = vpop.eup %6863  ;;  %6875 = vpow2.f32 %v1468_v10  ;;  %v1472_v44 = vmul.f32 1.442695, %v1416_v31 }
 0x2b0   :  { %v8068_v4 = vpop.eup %6865  ;;  %v1442_v8 = vmul.f32 1.442695, %v1401_v49  ;;  %v1353_v33 = vpop.xlane.xlu1 %1352  ;;  %1504 = vadd.xlane.f32.xlu1 %v8066_v3 }
 0x2b1   :  { %v1404_v38 = vsub.f32 %v7944_v57, %v1353_v33  ;;  %v1383_v34 = vpop.xlane.xlu0 %1382  ;;  %1530 = vadd.xlane.f32.xlu0 %v8068_v4  ;;  %v8074_v42 = vpop.eup %6867 }
 0x2b2   :  { %6877 = vpow2.f32 %v1442_v8  ;;  %v1419_v54 = vsub.f32 %v7980_v37, %v1383_v34 }
 0x2b3   :  { %v1448_v56 = vmul.f32 1.442695, %v1404_v38 }
 0x2b4   :  { %v8076_v50 = vpop.eup %6869  ;;  %v1381_v32 = vpop.xlane.xlu1 %1380  ;;  %1528 = vadd.xlane.f32.xlu1 %v8074_v42  ;;  %v1478_v53 = vmul.f32 1.442695, %v1419_v54 }
 0x2b5   :  { %6879 = vpow2.f32 %v1448_v56  ;;  %v1351_v12 = vpop.xlane.xlu0 %1350  ;;  %1502 = vadd.xlane.f32.xlu0 %v8076_v50  ;;  %v1418_v30 = vsub.f32 %v7983_v47, %v1381_v32 }
 0x2b6   :  { %6881 = vpow2.f32 %v1474_v15  ;;  %v1403_v57 = vsub.f32 %v7938_v52, %v1351_v12 }
 0x2b7   :  { %v8082_v28 = vpop.eup %6871  ;;  %6883 = vpow2.f32 %v1472_v44  ;;  %v1476_v2 = vmul.f32 1.442695, %v1418_v30 }
 0x2b8   :  { %v8084_v22 = vpop.eup %6873  ;;  %v1446_v36 = vmul.f32 1.442695, %v1403_v57  ;;  %v1357_v26 = vpop.xlane.xlu1 %1356  ;;  %1508 = vadd.xlane.f32.xlu1 %v8082_v28 }
 0x2b9   :  { %v1406_v41 = vsub.f32 %v7948_v62, %v1357_v26  ;;  %v1387_v46 = vpop.xlane.xlu0 %1386  ;;  %1534 = vadd.xlane.f32.xlu0 %v8084_v22  ;;  %v8090_v37 = vpop.eup %6875 }
 0x2ba   :  { %6885 = vpow2.f32 %v1446_v36  ;;  %v1421_v62 = vsub.f32 %v7986_v45, %v1387_v46 }
 0x2bb   :  { %v1452_v52 = vmul.f32 1.442695, %v1406_v41 }
 0x2bc   :  { %v8092_v10 = vpop.eup %6877  ;;  %v1385_v19 = vpop.xlane.xlu1 %1384  ;;  %1532 = vadd.xlane.f32.xlu1 %v8090_v37  ;;  %v1482_v15 = vmul.f32 1.442695, %v1421_v62 }
 0x2bd   :  { %6887 = vpow2.f32 %v1452_v52  ;;  %v1420_v49 = vsub.f32 %v7989_v40, %v1385_v19  ;;  %v1355_v47 = vpop.xlane.xlu0 %1354  ;;  %1506 = vadd.xlane.f32.xlu0 %v8092_v10  ;;  %v8146_v52 = vld [vmem:[%s9996_s7 + $0x28] sm:$0xff] }
 0x2be   :  { %6889 = vpow2.f32 %v1478_v53  ;;  %v1405_v8 = vsub.f32 %v7942_v58, %v1355_v47  ;;  %v8140_v53 = vld [vmem:[%s9996_s7 + $0x20] sm:$0xff]  ;;  %10047 = vst [vmem:[#allocation33_spill] sm:$0xff] %v8146_v52 }
 0x2bf   :  { %v8099_v33 = vpop.eup %6879  ;;  %6891 = vpow2.f32 %v1476_v2  ;;  %v1480_v34 = vmul.f32 1.442695, %v1420_v49  ;;  %10046 = vst [vmem:[#allocation32_spill] sm:$0xff] %v8140_v53  ;;  %v10008_v49 = vmov 0   ;;  %v7361_v47 = vld [vmem:[%s9996_s7] sm:$0xff] }
 0x2c0   :  { %v8101_v31 = vpop.eup %6881  ;;  %v1450_v38 = vmul.f32 1.442695, %v1405_v8  ;;  %1512 = vadd.xlane.f32.xlu1 %v8099_v33  ;;  %v1389_v19 = vpop.xlane.xlu1 %1388  ;;  %v7362_v8 = vld [vmem:[%s9996_s7 + $0x18] sm:$0xff] }
 0x2c1   :  { %1538 = vadd.xlane.f32.xlu0 %v8101_v31  ;;  %v1391_v40 = vpop.xlane.xlu0 %1390  ;;  %v8105_v56 = vpop.eup %6883  ;;  %v1422_v2 = vsub.f32 %v7995_v35, %v1389_v19  ;;  %v64_v35 = vld [vmem:[%s9996_s7 + $0x30] sm:$0xff] }
 0x2c2   :  { %6893 = vpow2.f32 %v1450_v38  ;;  %v1423_v58 = vsub.f32 %v7992_v43, %v1391_v40  ;;  %v7363_v40 = vld [vmem:[%s9996_s7 + $0x8] sm:$0xff] }
 0x2c3   :  { %6895 = vpow2.f32 %v1480_v34  ;;  %v1484_v62 = vmul.f32 1.442695, %v1422_v2  ;;  %v65_v34 = vld [vmem:[%s9996_s7 + $0x38] sm:$0xff] }
 0x2c4   :  { %v8107_v32 = vpop.eup %6885  ;;  %1536 = vadd.xlane.f32.xlu1 %v8105_v56  ;;  %6897 = vpow2.f32 %v1482_v15  ;;  %v1486_v36 = vmul.f32 1.442695, %v1423_v58  ;;  %v7364_v15 = vld [vmem:[%s9996_s7 + $0x10] sm:$0xff] }
 0x2c5   :  { %1510 = vadd.xlane.f32.xlu0 %v8107_v32  ;;  %v1359_v45 = vpop.xlane.xlu0 %1358 }
 0x2c6   :  { %v1407_v44 = vsub.f32 %v7946_v59, %v1359_v45 }
 0x2c7   :  { %v8113_v12 = vpop.eup %6887 }
 0x2c8   :  { %v8115_v54 = vpop.eup %6889  ;;  %v1454_v57 = vmul.f32 1.442695, %v1407_v44  ;;  %1516 = vadd.xlane.f32.xlu1 %v8113_v12 }
 0x2c9   :  { %1542 = vadd.xlane.f32.xlu0 %v8115_v54  ;;  %v8119_v26 = vpop.eup %6891 }
 0x2ca   :  { %6899 = vpow2.f32 %v1454_v57 }
 0x2cb   :  { %6901 = vpow2.f32 %v1486_v36 }
 0x2cc   :  { %v8121_v30 = vpop.eup %6893  ;;  %1540 = vadd.xlane.f32.xlu1 %v8119_v26  ;;  %6903 = vpow2.f32 %v1484_v62 }
 0x2cd   :  { %1514 = vadd.xlane.f32.xlu0 %v8121_v30  ;;  %v8125_v43 = vpop.eup %6895 }
 0x2ce   :  { %v8127_v59 = vpop.eup %6897 }
 0x2d0   :  { %1544 = vadd.xlane.f32.xlu1 %v8125_v43 }
 0x2d1   :  { %1546 = vadd.xlane.f32.xlu0 %v8127_v59 }
 0x2d4   :  { %v8131_v41 = vpop.eup %6899 }
 0x2d5   :  { %1518 = vadd.xlane.f32.xlu0 %v8131_v41  ;;  %v8134_v46 = vpop.eup %6901 }
 0x2d6   :  { %v8157_v38 = vpop.eup %6903 }
 0x2d9   :  { %1550 = vadd.xlane.f32.xlu0 %v8134_v46 }
 0x2e1   :  { %331 = vperm.xlu1 %6830, %v8140_v53  }
 0x2ef   :  { %335 = vperm.xlu0 %6829, %v8146_v52  }
 0x2f3   :  { %6831 = vset.pattern.permute.xlu0 %v10008_v49 }
 0x2f4   :  { %131 = vperm.xlu0 %6831, %v7361_v47  }
 0x2f8   :  { %146 = vperm.xlu0 %6831, %v7362_v8  }
 0x305   :  { %1548 = vadd.xlane.f32.xlu1 %v8157_v38 }
 0x306   :  { %v1489_v45 = vpop.xlane.xlu1 %1488 }
 0x316   :  { %339 = vperm.xlu1 %6830, %v64_v35  }
 0x31a   :  { %343 = vperm.xlu1 %6830, %v65_v34  }
 0x31e   :  { %6832 = vset.pattern.permute.xlu1 %v10008_v49 }
 0x31f   :  { %136 = vperm.xlu1 %6832, %v7363_v40  }
 0x323   :  { %141 = vperm.xlu1 %6832, %v7364_v15  }
 0x329   :  { %v1493_v58 = vpop.xlane.xlu1 %1492 }
 0x32a   :  { %v1491_v44 = vpop.xlane.xlu0 %1490 }
 0x32b   :  { %6905 = vrcp.f32 %v1491_v44 }
 0x32d   :  { %v1497_v57 = vpop.xlane.xlu1 %1496 }
 0x32e   :  { %v1523_v36 = vpop.xlane.xlu0 %1522 }
 0x32f   :  { %6907 = vrcp.f32 %v1523_v36 }
 0x330   :  { %6909 = vrcp.f32 %v1489_v45 }
 0x331   :  { %v1521_v19 = vpop.xlane.xlu1 %1520 }
 0x332   :  { %6911 = vrcp.f32 %v1521_v19  ;;  %v1495_v2 = vpop.xlane.xlu0 %1494 }
 0x333   :  { %6913 = vrcp.f32 %v1495_v2 }
 0x335   :  { %v1501_v47 = vpop.xlane.xlu1 %1500  ;;  %v6906_v8 = vpop.eup %6905 }
 0x336   :  { %v1527_v62 = vpop.xlane.xlu0 %1526  ;;  %v1585_v53 = vmul.f32 %v6906_v8, %v8028_v17 }
 0x337   :  { %6915 = vrcp.f32 %v1527_v62 }
 0x338   :  { %6917 = vrcp.f32 %v1493_v58 }
 0x339   :  { %v1525_v35 = vpop.xlane.xlu1 %1524  ;;  %v6908_v34 = vpop.eup %6907 }
 0x33a   :  { %6919 = vrcp.f32 %v1525_v35  ;;  %v1499_v40 = vpop.xlane.xlu0 %1498  ;;  %v6910_v15 = vpop.eup %6909  ;;  %v1601_v36 = vmul.f32 %v6908_v34, %v8036_v63 }
 0x33b   :  { %v1584_v52 = vmul.f32 %v6910_v15, %v8014_v29  ;;  %6921 = vrcp.f32 %v1499_v40 }
 0x33c   :  { %v6912_v49 = vpop.eup %6911 }
 0x33d   :  { %v1505_v44 = vpop.xlane.xlu1 %1504  ;;  %v1600_v45 = vmul.f32 %v6912_v49, %v8042_v9  ;;  %v6555_v58 = vpack.c.bf16 %v1585_v53, %v1584_v52  ;;  %v6914_v62 = vpop.eup %6913 }
 0x33e   :  { %v1531_v19 = vpop.xlane.xlu0 %1530  ;;  %v1587_v9 = vmul.f32 %v6914_v62, %v8044_v51 }
 0x33f   :  { %v6553_v2 = vpack.c.bf16 %v1601_v36, %v1600_v45  ;;  %6923 = vrcp.f32 %v1531_v19 }
 0x340   :  { %6925 = vrcp.f32 %v1497_v57 }
 0x341   :  { %6554 = vmatprep.subr.bf16.mxu1 %v6553_v2  ;;  %v1529_v35 = vpop.xlane.xlu1 %1528  ;;  %v6916_v11 = vpop.eup %6915 }
 0x342   :  { %6927 = vrcp.f32 %v1529_v35  ;;  %v1503_v6 = vpop.xlane.xlu0 %1502  ;;  %6556 = vmatpush3.bf16.xpose.msra.mxu1 %v6555_v58  ;;  %v6918_v17 = vpop.eup %6917  ;;  %v1603_v29 = vmul.f32 %v6916_v11, %v8052_v48 }
 0x343   :  { %v1586_v53 = vmul.f32 %v6918_v17, %v8026_v20  ;;  %6929 = vrcp.f32 %v1503_v6 }
 0x344   :  { %v6920_v8 = vpop.eup %6919 }
 0x345   :  { %v1509_v63 = vpop.xlane.xlu1 %1508  ;;  %v1602_v49 = vmul.f32 %v6920_v8, %v8058_v5  ;;  %v6559_v57 = vpack.c.bf16 %v1587_v9, %v1586_v53  ;;  %v6922_v40 = vpop.eup %6921 }
 0x346   :  { %v1535_v34 = vpop.xlane.xlu0 %1534  ;;  %v1589_v5 = vmul.f32 %v6922_v40, %v8060_v55 }
 0x347   :  { %v6557_v52 = vpack.c.bf16 %v1603_v29, %v1602_v49  ;;  %6931 = vrcp.f32 %v1535_v34 }
 0x348   :  { %6933 = vrcp.f32 %v1501_v47 }
 0x349   :  { %6558 = vmatprep.subr.bf16.mxu1 %v6557_v52  ;;  %v1533_v15 = vpop.xlane.xlu1 %1532  ;;  %v6924_v45 = vpop.eup %6923 }
 0x34a   :  { %6935 = vrcp.f32 %v1533_v15  ;;  %v1507_v36 = vpop.xlane.xlu0 %1506  ;;  %6560 = vmatpush3.bf16.xpose.msra.mxu1 %v6559_v57  ;;  %v6926_v51 = vpop.eup %6925  ;;  %v1605_v6 = vmul.f32 %v6924_v45, %v8068_v4 }
 0x34b   :  { %v1588_v2 = vmul.f32 %v6926_v51, %v8034_v39  ;;  %6937 = vrcp.f32 %v1507_v36 }
 0x34c   :  { %v6928_v19 = vpop.eup %6927 }
 0x34d   :  { %v1513_v11 = vpop.xlane.xlu1 %1512  ;;  %v1604_v48 = vmul.f32 %v6928_v19, %v8074_v42  ;;  %v6563_v58 = vpack.c.bf16 %v1589_v5, %v1588_v2  ;;  %v6930_v62 = vpop.eup %6929 }
 0x34e   :  { %v1539_v20 = vpop.xlane.xlu0 %1538  ;;  %v1591_v42 = vmul.f32 %v6930_v62, %v8076_v50 }
 0x34f   :  { %v6561_v47 = vpack.c.bf16 %v1605_v6, %v1604_v48  ;;  %6939 = vrcp.f32 %v1539_v20 }
 0x350   :  { %6941 = vrcp.f32 %v1505_v44 }
 0x351   :  { %6562 = vmatprep.subr.bf16.mxu1 %v6561_v47  ;;  %v1537_v35 = vpop.xlane.xlu1 %1536  ;;  %v6932_v17 = vpop.eup %6931 }
 0x352   :  { %6943 = vrcp.f32 %v1537_v35  ;;  %v1511_v8 = vpop.xlane.xlu0 %1510  ;;  %6564 = vmatpush3.bf16.xpose.msra.mxu1 %v6563_v58  ;;  %v6934_v55 = vpop.eup %6933  ;;  %v1607_v39 = vmul.f32 %v6932_v17, %v8084_v22 }
 0x353   :  { %v1590_v34 = vmul.f32 %v6934_v55, %v8050_v24  ;;  %6945 = vrcp.f32 %v1511_v8 }
 0x354   :  { %v6936_v9 = vpop.eup %6935 }
 0x355   :  { %v1517_v4 = vpop.xlane.xlu1 %1516  ;;  %v1606_v49 = vmul.f32 %v6936_v9, %v8090_v37  ;;  %v6567_v53 = vpack.c.bf16 %v1591_v42, %v1590_v34  ;;  %v6938_v52 = vpop.eup %6937 }
 0x356   :  { %v1543_v29 = vpop.xlane.xlu0 %1542  ;;  %v1593_v37 = vmul.f32 %v6938_v52, %v8092_v10 }
 0x357   :  { %v6565_v44 = vpack.c.bf16 %v1607_v39, %v1606_v49  ;;  %6947 = vrcp.f32 %v1543_v29 }
 0x358   :  { %6949 = vrcp.f32 %v1509_v63 }
 0x359   :  { %6566 = vmatprep.subr.bf16.mxu1 %v6565_v44  ;;  %v1541_v57 = vpop.xlane.xlu1 %1540  ;;  %v6940_v40 = vpop.eup %6939 }
 0x35a   :  { %6951 = vrcp.f32 %v1541_v57  ;;  %v1515_v15 = vpop.xlane.xlu0 %1514  ;;  %6568 = vmatpush3.bf16.xpose.msra.mxu1 %v6567_v53  ;;  %v6942_v50 = vpop.eup %6941  ;;  %v1609_v36 = vmul.f32 %v6940_v40, %v8101_v31 }
 0x35b   :  { %6953 = vrcp.f32 %v1515_v15  ;;  %v1592_v63 = vmul.f32 %v6942_v50, %v8066_v3 }
 0x35c   :  { %v6944_v45 = vpop.eup %6943 }
 0x35d   :  { %v1545_v22 = vpop.xlane.xlu1 %1544  ;;  %v1608_v24 = vmul.f32 %v6944_v45, %v8105_v56  ;;  %v6571_v5 = vpack.c.bf16 %v1593_v37, %v1592_v63  ;;  %v6946_v48 = vpop.eup %6945 }
 0x35e   :  { %6955 = vrcp.f32 %v1545_v22  ;;  %v1547_v51 = vpop.xlane.xlu0 %1546  ;;  %v1595_v3 = vmul.f32 %v6946_v48, %v8107_v32 }
 0x35f   :  { %6957 = vrcp.f32 %v1547_v51  ;;  %v6569_v19 = vpack.c.bf16 %v1609_v36, %v1608_v24 }
 0x360   :  { %6959 = vrcp.f32 %v1513_v11 }
 0x361   :  { %6570 = vmatprep.subr.bf16.mxu1 %v6569_v19  ;;  %v8193_v6 = vpop.permute.xlu1 %331  ;;  %v6948_v20 = vpop.eup %6947  ;;  %6961 = vrcp.f32 %v1517_v4 }
 0x362   :  { %v8197_v10 = vadd.f32 %v7863_v61, %v8193_v6  ;;  %6572 = vmatpush3.bf16.xpose.msra.mxu1 %v6571_v5  ;;  %v6950_v56 = vpop.eup %6949  ;;  %v1611_v47 = vmul.f32 %v6948_v20, %v8115_v54 }
 0x363   :  { %v1594_v11 = vmul.f32 %v6950_v56, %v8082_v28  ;;  %v1519_v28 = vpop.xlane.xlu0 %1518 }
 0x364   :  { %v6952_v31 = vpop.eup %6951  ;;  %5790 = vmatprep.mubr.f32.mxu1 %v8197_v10  ;;  %6963 = vrcp.f32 %v1519_v28 }
 0x365   :  { %v1610_v2 = vmul.f32 %v6952_v31, %v8119_v26  ;;  %v6954_v58 = vpop.eup %6953  ;;  %v6575_v17 = vpack.c.bf16 %v1595_v3, %v1594_v11  ;;  %v67_v11 = vld [vmem:[%s9997_s8 + $0x8] sm:$0xff] }
 0x366   :  { %v1597_v32 = vmul.f32 %v6954_v58, %v8121_v30  ;;  %v68_v58 = vld [vmem:[%s9997_s8 + $0x10] sm:$0xff] }
 0x367   :  { %v6573_v62 = vpack.c.bf16 %v1611_v47, %v1610_v2  ;;  %v1551_v49 = vpop.xlane.xlu0 %1550 }
 0x368   :  { %v6956_v35 = vpop.eup %6955  ;;  %6965 = vrcp.f32 %v1551_v49  ;;  %v10054_v49 = vld [vmem:[#allocation23_spill] sm:$0xff] }
 0x369   :  { %v6958_v8 = vpop.eup %6957  ;;  %6574 = vmatprep.subr.bf16.mxu1 %v6573_v62  ;;  %v1612_v61 = vmul.f32 %v6956_v35, %v8125_v43  ;;  %v69_v62 = vld [vmem:[%s9997_s8 + $0x18] sm:$0xff]  ;;  %v5406_v35 = vld [vmem:[%s9995_s6 + $0x1] ss:$0 sm:$0xff] }
 0x36a   :  { %6576 = vmatpush3.bf16.xpose.msra.mxu1 %v6575_v17  ;;  %v1613_v55 = vmul.f32 %v6958_v8, %v8127_v59  ;;  %v6960_v9 = vpop.eup %6959  ;;  %v928_v17 = vadd.f32 %v5406_v35, %v7879_v7  ;;  %v10049_v8 = vld [vmem:[#allocation17_spill] sm:$0xff] }
 0x36b   :  { %v1596_v54 = vmul.f32 %v6960_v9, %v8099_v33  ;;  %v6962_v59 = vpop.eup %6961  ;;  %v10052_v7 = vld [vmem:[#allocation21_spill] sm:$0xff] }
 0x36c   :  { %v6577_v42 = vpack.c.bf16 %v1613_v55, %v1612_v61  ;;  %v1598_v15 = vmul.f32 %v6962_v59, %v8113_v12  ;;  %v933_v61 = vadd.f32 %v10049_v8, %v5406_v35  ;;  %v10050_v55 = vld [vmem:[#allocation19_spill] sm:$0xff]  ;;  %v10055_v59 = vld [vmem:[#allocation22_spill] sm:$0xff] }
 0x36d   :  { %v6579_v26 = vpack.c.bf16 %v1597_v32, %v1596_v54  ;;  %v938_v9 = vadd.f32 %v5406_v35, %v10050_v55  ;;  %v948_v54 = vadd.f32 %v5406_v35, %v10052_v7 }
 0x36e   :  { %6578 = vmatprep.subr.bf16.mxu1 %v6577_v42  ;;  %v8208_v43 = vpop.permute.xlu0 %335  ;;  %v6964_v34 = vpop.eup %6963  ;;  %v10051_v42 = vld [vmem:[#allocation18_spill] sm:$0xff] }
 0x36f   :  { %v1599_v52 = vmul.f32 %v6964_v34, %v8131_v41  ;;  %v465_v19 = vadd.f32 %v7861_v60, %v8208_v43  ;;  %v943_v32 = vadd.f32 %v10051_v42, %v5406_v35  ;;  %v963_v34 = vadd.f32 %v10055_v59, %v5406_v35 }
 0x372   :  { %6580 = vmatpush3.bf16.xpose.msra.mxu1 %v6579_v26  ;;  %v6966_v33 = vpop.eup %6965  ;;  %v10053_v26 = vld [vmem:[#allocation20_spill] sm:$0xff] }
 0x373   :  { %v8212_v44 = vpop.permute.xlu0 %131  ;;  %v1615_v40 = vmul.f32 %v6966_v33, %v8134_v46  ;;  %v953_v28 = vadd.f32 %v10053_v26, %v5406_v35  ;;  %v10056_v33 = vld [vmem:[#allocation25_spill] sm:$0xff] }
 0x374   :  { %v268_v50 = vadd.f32 %v7764_v13, %v8212_v44  ;;  %v270_v37 = vadd.f32 %v7766_v14, %v8212_v44 }
 0x377   :  { %v8230_v22 = vpop.permute.xlu0 %146 }
 0x378   :  { %v286_v13 = vadd.f32 %v7783_v25, %v8230_v22 }
 0x392   :  { %v1549_v39 = vpop.xlane.xlu1 %1548 }
 0x393   :  { %6967 = vrcp.f32 %v1549_v39  ;;  %v958_v39 = vadd.f32 %v5406_v35, %v10054_v49 }
 0x396   :  { %v8210_v29 = vpop.permute.xlu1 %339 }
 0x397   :  { %v470_v25 = vadd.f32 %v7871_v1, %v8210_v29 }
 0x39a   :  { %v8214_v30 = vpop.permute.xlu1 %343 }
 0x39d   :  { %v6968_v53 = vpop.eup %6967 }
 0x39e   :  { %v8217_v57 = vpop.permute.xlu1 %136  ;;  %v1614_v4 = vmul.f32 %v6968_v53, %v8157_v38  ;;  %v6583_v38 = vpack.c.bf16 %v1599_v52, %v1598_v15  ;;  %v968_v53 = vadd.f32 %v5406_v35, %v10056_v33  ;;  %v10057_v52 = vld [vmem:[#allocation24_spill] sm:$0xff] }
 0x39f   :  { %v274_v45 = vadd.f32 %v7773_v16, %v8217_v57  ;;  %v276_v41 = vadd.f32 %v7775_v18, %v8217_v57  ;;  %v288_v18 = vadd.f32 %v7785_v27, %v8230_v22 }
 0x3a0   :  { %v6581_v24 = vpack.c.bf16 %v1615_v40, %v1614_v4  ;;  %v973_v4 = vadd.f32 %v10057_v52, %v5406_v35  ;;  %v10058_v40 = vld [vmem:[#allocation27_spill] sm:$0xff]  ;;  %v10073_v52 = vld [vmem:[#allocation32_spill] sm:$0xff] }
 0x3a1   :  { %v6593_v36 = vpack.c.bf16 %v276_v41, %v270_v37  ;;  %v6595_v46 = vpack.c.bf16 %v274_v45, %v268_v50  ;;  %v978_v15 = vadd.f32 %v5406_v35, %v10058_v40  ;;  %v10059_v50 = vld [vmem:[#allocation26_spill] sm:$0xff]  ;;  %v10060_v37 = vld [vmem:[#allocation29_spill] sm:$0xff] }
 0x3a2   :  { %6582 = vmatprep.subr.bf16.mxu1 %v6581_v24  ;;  %v8232_v12 = vpop.permute.xlu1 %141  ;;  %v983_v45 = vadd.f32 %v10059_v50, %v5406_v35  ;;  %v988_v41 = vadd.f32 %v5406_v35, %v10060_v37  ;;  %v10061_v24 = vld [vmem:[#allocation28_spill] sm:$0xff] }
 0x3a3   :  { %v280_v16 = vadd.f32 %v7778_v21, %v8232_v12  ;;  %6584 = vmatpush3.bf16.xpose.msra.mxu1 %v6583_v38  ;;  %v282_v14 = vadd.f32 %v7781_v23, %v8232_v12  ;;  %v475_v21 = vadd.f32 %v7869_v0, %v8214_v30  ;;  %v10048_v23 = vmov 0.0   ;;  %v66_v0 = vld [vmem:[%s9997_s8] sm:$0xff] }
 0x3a4   :  { %v993_v38 = vadd.f32 %v10061_v24, %v5406_v35 }
 0x3a5   :  { %v6597_v51 = vpack.c.bf16 %v288_v18, %v282_v14  ;;  %v6599_v63 = vpack.c.bf16 %v286_v13, %v280_v16  ;;  %v10063_v13 = vld [vmem:[#allocation30_spill] sm:$0xff] }
 0x3a6   :  { %v1003_v16 = vadd.f32 %v10063_v13, %v5406_v35 }
 0x3aa   :  { %5791 = vmatmul.mubr.f32.vlgmr.msra.gmra.mrb[32].mxu1 %v8197_v10 }
 0x3ab   :  { %5792 = vmatprep.mubr.f32.mxu1 %v465_v19 }
 0x3ae   :  { %5793 = vmatmul.mubr.f32.gmra.mrb[34].mxu1 %v465_v19 }
 0x3af   :  { %5794 = vmatprep.mubr.f32.mxu1 %v470_v25 }
 0x3b2   :  { %5795 = vmatmul.mubr.f32.gmra.mrb[36].mxu1 %v470_v25 }
 0x3b3   :  { %5796 = vmatprep.mubr.f32.mxu1 %v475_v21 }
 0x3b6   :  { %5797 = vmatmul.mubr.f32.gmra.mrb[38].mxu1 %v475_v21 }
 0x3b7   :  { %1801 = vmatprep.mubr.f32.mxu1 %v10048_v23 }
 0x47d   :  { %v1682_v27 = vpop.f32.mrb[32].mxu1 }
 0x47e   :  { %v1684_v5 = vpop.f32.mrb[33].mxu1 }
 0x481   :  { %v1688_v48 = vpop.f32.mrb[34].mxu1 }
 0x482   :  { %v6587_v60 = vpack.c.bf16 %v1688_v48, %v1682_v27  ;;  %v1690_v20 = vpop.f32.mrb[35].mxu1 }
 0x483   :  { %v6585_v10 = vpack.c.bf16 %v1690_v20, %v1684_v5 }
 0x485   :  { %v1694_v56 = vpop.f32.mrb[36].mxu1  ;;  %6586 = vmatprep.subr.bf16.mxu1 %v6585_v10 }
 0x486   :  { %v1696_v31 = vpop.f32.mrb[37].mxu1  ;;  %6588 = vmatpush1.bf16.msra.mxu1 %v6587_v60 }
 0x489   :  { %v1700_v1 = vpop.f32.mrb[38].mxu1 }
 0x48a   :  { %v6591_v3 = vpack.c.bf16 %v1700_v1, %v1694_v56  ;;  %v1702_v2 = vpop.f32.mrb[39].mxu1 }
 0x48b   :  { %v6589_v47 = vpack.c.bf16 %v1702_v2, %v1696_v31 }
 0x48d   :  { %6590 = vmatprep.subr.bf16.mxu1 %v6589_v47 }
 0x48e   :  { %6592 = vmatpush1.bf16.msra.mxu1 %v6591_v3 }
 0x48f   :  { %6594 = vmatprep.subr.bf16.mxu1 %v6593_v36  ;;  %v10062_v36 = vld [vmem:[#allocation31_spill] sm:$0xff] }
 0x491   :  { %5456 = vmatmul.mubr.msk.f32.vlgmr.msra.gmra.mrb[40].mxu1 %vm1006_vm2, %v66_v0 }
 0x492   :  { %6596 = vmatpush1.bf16.msra.mxu1 %v6595_v46  ;;  %1807 = vmatprep.mubr.f32.mxu1 %v10048_v23  ;;  %v998_v46 = vadd.f32 %v5406_v35, %v10062_v36 }
 0x493   :  { %6598 = vmatprep.subr.bf16.mxu1 %v6597_v51 }
 0x495   :  { %5457 = vmatmul.mubr.msk.f32.gmra.mrb[42].mxu1 %vm1006_vm2, %v67_v11 }
 0x496   :  { %6600 = vmatpush1.bf16.msra.mxu1 %v6599_v63  ;;  %1813 = vmatprep.mubr.f32.mxu1 %v10048_v23 }
 0x499   :  { %5458 = vmatmul.mubr.msk.f32.gmra.mrb[44].mxu1 %vm1006_vm2, %v68_v58 }
 0x49a   :  { %1819 = vmatprep.mubr.f32.mxu1 %v10048_v23 }
 0x49d   :  { %5459 = vmatmul.mubr.msk.f32.gmra.mrb[46].mxu1 %vm1006_vm2, %v69_v62 }
 0x49e   :  { %1938 = vmatprep.mubr.f32.mxu1 %v10048_v23 }
 0x4a1   :  { %5460 = vmatmul.mubr.msk.f32.vlgmr.msra.gmra.mrb[48].mxu1 %vm1006_vm2, %v928_v17 }
 0x4a2   :  { %1944 = vmatprep.mubr.f32.mxu1 %v10048_v23 }
 0x4a5   :  { %5461 = vmatmul.mubr.msk.f32.gmra.mrb[50].mxu1 %vm1006_vm2, %v933_v61 }
 0x4a6   :  { %1950 = vmatprep.mubr.f32.mxu1 %v10048_v23 }
 0x4a9   :  { %5462 = vmatmul.mubr.msk.f32.gmra.mrb[52].mxu1 %vm1006_vm2, %v938_v9 }
 0x4aa   :  { %1956 = vmatprep.mubr.f32.mxu1 %v10048_v23 }
 0x4ad   :  { %5463 = vmatmul.mubr.msk.f32.gmra.mrb[54].mxu1 %vm1006_vm2, %v943_v32 }
 0x4ae   :  { %1962 = vmatprep.mubr.f32.mxu1 %v10048_v23 }
 0x4b1   :  { %5464 = vmatmul.mubr.msk.f32.gmra.mrb[56].mxu1 %vm1006_vm2, %v948_v54 }
 0x4b2   :  { %1968 = vmatprep.mubr.f32.mxu1 %v10048_v23 }
 0x4b5   :  { %5465 = vmatmul.mubr.msk.f32.gmra.mrb[58].mxu1 %vm1006_vm2, %v953_v28 }
 0x4b6   :  { %1974 = vmatprep.mubr.f32.mxu1 %v10048_v23 }
 0x4b9   :  { %5466 = vmatmul.mubr.msk.f32.gmra.mrb[60].mxu1 %vm1006_vm2, %v958_v39 }
 0x4ba   :  { %1980 = vmatprep.mubr.f32.mxu1 %v10048_v23 }
 0x4bd   :  { %5467 = vmatmul.mubr.msk.f32.gmra.mrb[62].mxu1 %vm1006_vm2, %v963_v34 }
 0x4be   :  { %1986 = vmatprep.mubr.f32.mxu1 %v10048_v23 }
 0x4c1   :  { %5468 = vmatmul.mubr.msk.f32.gmra.mrb[64].mxu1 %vm1006_vm2, %v968_v53  ;;  %v10072_v53 = vld [vmem:[#allocation33_spill] sm:$0xff] }
 0x4c2   :  { %1992 = vmatprep.mubr.f32.mxu1 %v10048_v23 }
 0x4c5   :  { %5469 = vmatmul.mubr.msk.f32.gmra.mrb[66].mxu1 %vm1006_vm2, %v973_v4 }
 0x4c6   :  { %1998 = vmatprep.mubr.f32.mxu1 %v10048_v23 }
 0x4c9   :  { %5470 = vmatmul.mubr.msk.f32.gmra.mrb[68].mxu1 %vm1006_vm2, %v978_v15 }
 0x4ca   :  { %2004 = vmatprep.mubr.f32.mxu1 %v10048_v23 }
 0x4cd   :  { %5471 = vmatmul.mubr.msk.f32.gmra.mrb[70].mxu1 %vm1006_vm2, %v983_v45 }
 0x4ce   :  { %2010 = vmatprep.mubr.f32.mxu1 %v10048_v23 }
 0x4d1   :  { %5472 = vmatmul.mubr.msk.f32.gmra.mrb[72].mxu1 %vm1006_vm2, %v988_v41 }
 0x4d2   :  { %2016 = vmatprep.mubr.f32.mxu1 %v10048_v23 }
 0x4d5   :  { %5473 = vmatmul.mubr.msk.f32.gmra.mrb[74].mxu1 %vm1006_vm2, %v993_v38 }
 0x4d6   :  { %2022 = vmatprep.mubr.f32.mxu1 %v10048_v23 }
 0x4d9   :  { %5474 = vmatmul.mubr.msk.f32.gmra.mrb[76].mxu1 %vm1006_vm2, %v998_v46 }
 0x4da   :  { %2028 = vmatprep.mubr.f32.mxu1 %v10048_v23 }
 0x4dd   :  { %5475 = vmatmul.mubr.msk.f32.gmra.mrb[78].mxu1 %vm1006_vm2, %v1003_v16 }
 0x564   :  { %v8320_v14 = vpop.f32.mrb[40].mxu1 }
 0x565   :  { %10064 = vst [vmem:[#allocation17_spill] sm:$0xff] %v8320_v14  ;;  %v8322_v18 = vpop.f32.mrb[41].mxu1 }
 0x566   :  { %10065 = vst [vmem:[#allocation19_spill] sm:$0xff] %v8322_v18 }
 0x568   :  { %v8324_v51 = vpop.f32.mrb[42].mxu1 }
 0x569   :  { %10066 = vst [vmem:[#allocation18_spill] sm:$0xff] %v8324_v51  ;;  %v8326_v63 = vpop.f32.mrb[43].mxu1 }
 0x56a   :  { %10067 = vst [vmem:[#allocation21_spill] sm:$0xff] %v8326_v63  ;;  %v10103_v63 = vld [vmem:[#allocation9_spill] sm:$0xff] }
 0x56c   :  { %v8328_v19 = vpop.f32.mrb[44].mxu1 }
 0x56d   :  { %10068 = vst [vmem:[#allocation20_spill] sm:$0xff] %v8328_v19  ;;  %v8330_v25 = vpop.f32.mrb[45].mxu1 }
 0x56e   :  { %10069 = vst [vmem:[#allocation23_spill] sm:$0xff] %v8330_v25 }
 0x570   :  { %v8332_v21 = vpop.f32.mrb[46].mxu1 }
 0x571   :  { %10070 = vst [vmem:[#allocation22_spill] sm:$0xff] %v8332_v21  ;;  %v8334_v27 = vpop.f32.mrb[47].mxu1 }
 0x572   :  { %10071 = vst [vmem:[#allocation25_spill] sm:$0xff] %v8334_v27 }
 0x574   :  { %v8336_v5 = vpop.f32.mrb[48].mxu1 }
 0x575   :  { %2035 = vmax.xlane.f32.xlu1 %v8336_v5  ;;  %v8339_v48 = vpop.f32.mrb[49].mxu1 }
 0x576   :  { %2377 = vmax.xlane.f32.xlu0 %v8339_v48 }
 0x578   :  { %v8342_v60 = vpop.f32.mrb[50].mxu1 }
 0x579   :  { %v8344_v20 = vpop.f32.mrb[51].mxu1 }
 0x57a   :  { %2037 = vmax.xlane.f32.xlu0 %v8342_v60  ;;  %2379 = vmax.xlane.f32.xlu1 %v8344_v20 }
 0x57c   :  { %v8348_v10 = vpop.f32.mrb[52].mxu1 }
 0x57d   :  { %v8350_v56 = vpop.f32.mrb[53].mxu1 }
 0x57e   :  { %2039 = vmax.xlane.f32.xlu0 %v8348_v10 }
 0x580   :  { %v8353_v31 = vpop.f32.mrb[54].mxu1 }
 0x581   :  { %2041 = vmax.xlane.f32.xlu1 %v8353_v31  ;;  %v8356_v1 = vpop.f32.mrb[55].mxu1 }
 0x582   :  { %2381 = vmax.xlane.f32.xlu0 %v8350_v56 }
 0x584   :  { %v8359_v3 = vpop.f32.mrb[56].mxu1 }
 0x585   :  { %2383 = vmax.xlane.f32.xlu1 %v8356_v1  ;;  %v8362_v2 = vpop.f32.mrb[57].mxu1 }
 0x586   :  { %2043 = vmax.xlane.f32.xlu0 %v8359_v3 }
 0x588   :  { %v8365_v47 = vpop.f32.mrb[58].mxu1 }
 0x589   :  { %2045 = vmax.xlane.f32.xlu1 %v8365_v47  ;;  %v8368_v0 = vpop.f32.mrb[59].mxu1 }
 0x58a   :  { %2385 = vmax.xlane.f32.xlu0 %v8362_v2 }
 0x58c   :  { %v8371_v11 = vpop.f32.mrb[60].mxu1 }
 0x58d   :  { %2387 = vmax.xlane.f32.xlu1 %v8368_v0  ;;  %v8374_v58 = vpop.f32.mrb[61].mxu1 }
 0x58e   :  { %2047 = vmax.xlane.f32.xlu0 %v8371_v11 }
 0x590   :  { %v8377_v62 = vpop.f32.mrb[62].mxu1 }
 0x591   :  { %2049 = vmax.xlane.f32.xlu1 %v8377_v62  ;;  %v8380_v35 = vpop.f32.mrb[63].mxu1 }
 0x592   :  { %2389 = vmax.xlane.f32.xlu0 %v8374_v58 }
 0x594   :  { %v8383_v17 = vpop.f32.mrb[64].mxu1 }
 0x595   :  { %2391 = vmax.xlane.f32.xlu1 %v8380_v35  ;;  %v8386_v8 = vpop.f32.mrb[65].mxu1 }
 0x596   :  { %2051 = vmax.xlane.f32.xlu0 %v8383_v17 }
 0x598   :  { %v8389_v61 = vpop.f32.mrb[66].mxu1 }
 0x599   :  { %2053 = vmax.xlane.f32.xlu1 %v8389_v61  ;;  %v8392_v55 = vpop.f32.mrb[67].mxu1 }
 0x59a   :  { %2393 = vmax.xlane.f32.xlu0 %v8386_v8 }
 0x59c   :  { %v8395_v9 = vpop.f32.mrb[68].mxu1 }
 0x59d   :  { %2395 = vmax.xlane.f32.xlu1 %v8392_v55  ;;  %v8398_v42 = vpop.f32.mrb[69].mxu1 }
 0x59e   :  { %2055 = vmax.xlane.f32.xlu0 %v8395_v9 }
 0x5a0   :  { %v8401_v32 = vpop.f32.mrb[70].mxu1 }
 0x5a1   :  { %2057 = vmax.xlane.f32.xlu1 %v8401_v32  ;;  %v8404_v7 = vpop.f32.mrb[71].mxu1 }
 0x5a2   :  { %2397 = vmax.xlane.f32.xlu0 %v8398_v42 }
 0x5a4   :  { %v8407_v54 = vpop.f32.mrb[72].mxu1 }
 0x5a5   :  { %2399 = vmax.xlane.f32.xlu1 %v8404_v7  ;;  %v8410_v26 = vpop.f32.mrb[73].mxu1 }
 0x5a6   :  { %2059 = vmax.xlane.f32.xlu0 %v8407_v54 }
 0x5a8   :  { %v8413_v28 = vpop.f32.mrb[74].mxu1 }
 0x5a9   :  { %2061 = vmax.xlane.f32.xlu1 %v8413_v28  ;;  %v8416_v49 = vpop.f32.mrb[75].mxu1 }
 0x5aa   :  { %2401 = vmax.xlane.f32.xlu0 %v8410_v26 }
 0x5ac   :  { %v8419_v39 = vpop.f32.mrb[76].mxu1 }
 0x5ad   :  { %2403 = vmax.xlane.f32.xlu1 %v8416_v49  ;;  %v8422_v59 = vpop.f32.mrb[77].mxu1 }
 0x5ae   :  { %2063 = vmax.xlane.f32.xlu0 %v8419_v39 }
 0x5b0   :  { %v8425_v34 = vpop.f32.mrb[78].mxu1 }
 0x5b1   :  { %2065 = vmax.xlane.f32.xlu1 %v8425_v34  ;;  %v8428_v33 = vpop.f32.mrb[79].mxu1 }
 0x5b2   :  { %2405 = vmax.xlane.f32.xlu0 %v8422_v59 }
 0x5b5   :  { %2407 = vmax.xlane.f32.xlu1 %v8428_v33 }
 0x5c6   :  { %156 = vperm.xlu1 %6832, %v10072_v53  }
 0x5c8   :  { %151 = vperm.xlu0 %6831, %v10073_v52  }
 0x602   :  { %v2036_v4 = vpop.xlane.xlu1 %2035 }
 0x603   :  { %v2067_v40 = vsub.f32 %v8336_v5, %v2036_v4  ;;  %v2378_v15 = vpop.xlane.xlu0 %2377 }
 0x604   :  { %v2409_v50 = vsub.f32 %v8339_v48, %v2378_v15 }
 0x605   :  { %v2083_v45 = vmul.f32 1.442695, %v2067_v40 }
 0x606   :  { %v2425_v37 = vmul.f32 1.442695, %v2409_v50 }
 0x607   :  { %6969 = vpow2.f32 %v2083_v45  ;;  %v2038_v41 = vpop.xlane.xlu0 %2037  ;;  %v2380_v24 = vpop.xlane.xlu1 %2379 }
 0x608   :  { %v2068_v38 = vsub.f32 %v8342_v60, %v2038_v41  ;;  %v2410_v36 = vsub.f32 %v8344_v20, %v2380_v24  ;;  %6971 = vpow2.f32 %v2425_v37 }
 0x60a   :  { %v2085_v46 = vmul.f32 1.442695, %v2068_v38  ;;  %v2427_v13 = vmul.f32 1.442695, %v2410_v36 }
 0x60b   :  { %v2040_v16 = vpop.xlane.xlu0 %2039 }
 0x60c   :  { %6973 = vpow2.f32 %v2085_v46  ;;  %v2069_v53 = vsub.f32 %v8348_v10, %v2040_v16 }
 0x60d   :  { %6975 = vpow2.f32 %v2427_v13 }
 0x60e   :  { %v2087_v5 = vmul.f32 1.442695, %v2069_v53  ;;  %v2042_v52 = vpop.xlane.xlu1 %2041 }
 0x60f   :  { %v2070_v48 = vsub.f32 %v8353_v31, %v2042_v52  ;;  %v2382_v4 = vpop.xlane.xlu0 %2381 }
 0x610   :  { %6977 = vpow2.f32 %v2087_v5  ;;  %v2411_v40 = vsub.f32 %v8350_v56, %v2382_v4 }
 0x611   :  { %v8441_v15 = vpop.eup %6969  ;;  %v2089_v60 = vmul.f32 1.442695, %v2070_v48 }
 0x612   :  { %v2429_v20 = vmul.f32 1.442695, %v2411_v40  ;;  %v2384_v50 = vpop.xlane.xlu1 %2383  ;;  %2115 = vadd.xlane.f32.xlu0 %v8441_v15  ;;  %v8446_v41 = vpop.eup %6971 }
 0x613   :  { %6979 = vpow2.f32 %v2089_v60  ;;  %v2412_v45 = vsub.f32 %v8356_v1, %v2384_v50  ;;  %v2044_v10 = vpop.xlane.xlu0 %2043 }
 0x614   :  { %6981 = vpow2.f32 %v2429_v20  ;;  %v2071_v37 = vsub.f32 %v8359_v3, %v2044_v10 }
 0x615   :  { %v2431_v31 = vmul.f32 1.442695, %v2412_v45 }
 0x616   :  { %v8448_v24 = vpop.eup %6973  ;;  %v2091_v56 = vmul.f32 1.442695, %v2071_v37  ;;  %v2046_v38 = vpop.xlane.xlu1 %2045  ;;  %2457 = vadd.xlane.f32.xlu0 %v8446_v41 }
 0x617   :  { %6983 = vpow2.f32 %v2431_v31  ;;  %v2072_v36 = vsub.f32 %v8365_v47, %v2046_v38  ;;  %v2386_v46 = vpop.xlane.xlu0 %2385  ;;  %2117 = vadd.xlane.f32.xlu1 %v8448_v24  ;;  %v8454_v13 = vpop.eup %6975 }
 0x618   :  { %6985 = vpow2.f32 %v2091_v56  ;;  %v2413_v1 = vsub.f32 %v8362_v2, %v2386_v46 }
 0x619   :  { %v2093_v3 = vmul.f32 1.442695, %v2072_v36 }
 0x61a   :  { %v8456_v16 = vpop.eup %6977  ;;  %v2433_v53 = vmul.f32 1.442695, %v2413_v1  ;;  %v2388_v5 = vpop.xlane.xlu1 %2387 }
 0x61b   :  { %6987 = vpow2.f32 %v2093_v3  ;;  %v2414_v52 = vsub.f32 %v8368_v0, %v2388_v5  ;;  %v2048_v48 = vpop.xlane.xlu0 %2047  ;;  %2119 = vadd.xlane.f32.xlu0 %v8456_v16  ;;  %2459 = vadd.xlane.f32.xlu1 %v8454_v13 }
 0x61c   :  { %6989 = vpow2.f32 %v2433_v53  ;;  %v2073_v47 = vsub.f32 %v8371_v11, %v2048_v48 }
 0x61d   :  { %v8462_v4 = vpop.eup %6979  ;;  %v2435_v2 = vmul.f32 1.442695, %v2414_v52 }
 0x61e   :  { %v8464_v40 = vpop.eup %6981  ;;  %v2095_v60 = vmul.f32 1.442695, %v2073_v47  ;;  %v2050_v20 = vpop.xlane.xlu1 %2049 }
 0x61f   :  { %6991 = vpow2.f32 %v2435_v2  ;;  %v2074_v50 = vsub.f32 %v8377_v62, %v2050_v20  ;;  %v2390_v45 = vpop.xlane.xlu0 %2389  ;;  %2461 = vadd.xlane.f32.xlu0 %v8464_v40  ;;  %2121 = vadd.xlane.f32.xlu1 %v8462_v4 }
 0x620   :  { %6993 = vpow2.f32 %v2095_v60  ;;  %v2415_v0 = vsub.f32 %v8374_v58, %v2390_v45 }
 0x621   :  { %v8470_v10 = vpop.eup %6983  ;;  %v2097_v11 = vmul.f32 1.442695, %v2074_v50 }
 0x622   :  { %v8472_v37 = vpop.eup %6985  ;;  %v2437_v31 = vmul.f32 1.442695, %v2415_v0  ;;  %v2392_v56 = vpop.xlane.xlu1 %2391 }
 0x623   :  { %6995 = vpow2.f32 %v2097_v11  ;;  %v2416_v38 = vsub.f32 %v8380_v35, %v2392_v56  ;;  %v2052_v36 = vpop.xlane.xlu0 %2051  ;;  %2123 = vadd.xlane.f32.xlu0 %v8472_v37  ;;  %2463 = vadd.xlane.f32.xlu1 %v8470_v10 }
 0x624   :  { %6997 = vpow2.f32 %v2437_v31  ;;  %v2075_v62 = vsub.f32 %v8383_v17, %v2052_v36 }
 0x625   :  { %v8478_v46 = vpop.eup %6987  ;;  %v2439_v58 = vmul.f32 1.442695, %v2416_v38 }
 0x626   :  { %v8480_v1 = vpop.eup %6989  ;;  %v2099_v3 = vmul.f32 1.442695, %v2075_v62  ;;  %v2054_v53 = vpop.xlane.xlu1 %2053 }
 0x627   :  { %6999 = vpow2.f32 %v2439_v58  ;;  %v2076_v5 = vsub.f32 %v8389_v61, %v2054_v53  ;;  %v2394_v52 = vpop.xlane.xlu0 %2393  ;;  %2465 = vadd.xlane.f32.xlu0 %v8480_v1  ;;  %2125 = vadd.xlane.f32.xlu1 %v8478_v46 }
 0x628   :  { %7001 = vpow2.f32 %v2099_v3  ;;  %v2417_v35 = vsub.f32 %v8386_v8, %v2394_v52 }
 0x629   :  { %v8486_v48 = vpop.eup %6991  ;;  %v2101_v17 = vmul.f32 1.442695, %v2076_v5 }
 0x62a   :  { %v8488_v47 = vpop.eup %6993  ;;  %v2441_v2 = vmul.f32 1.442695, %v2417_v35  ;;  %v2396_v60 = vpop.xlane.xlu1 %2395 }
 0x62b   :  { %7003 = vpow2.f32 %v2101_v17  ;;  %v2418_v20 = vsub.f32 %v8392_v55, %v2396_v60  ;;  %v2056_v50 = vpop.xlane.xlu0 %2055  ;;  %2127 = vadd.xlane.f32.xlu0 %v8488_v47  ;;  %2467 = vadd.xlane.f32.xlu1 %v8486_v48 }
 0x62c   :  { %7005 = vpow2.f32 %v2441_v2  ;;  %v2077_v61 = vsub.f32 %v8395_v9, %v2056_v50 }
 0x62d   :  { %v8494_v45 = vpop.eup %6995  ;;  %v2443_v8 = vmul.f32 1.442695, %v2418_v20 }
 0x62e   :  { %v8496_v0 = vpop.eup %6997  ;;  %v2103_v11 = vmul.f32 1.442695, %v2077_v61  ;;  %v2058_v31 = vpop.xlane.xlu1 %2057 }
 0x62f   :  { %7007 = vpow2.f32 %v2443_v8  ;;  %v2078_v56 = vsub.f32 %v8401_v32, %v2058_v31  ;;  %v2398_v38 = vpop.xlane.xlu0 %2397  ;;  %2469 = vadd.xlane.f32.xlu0 %v8496_v0  ;;  %2129 = vadd.xlane.f32.xlu1 %v8494_v45 }
 0x630   :  { %7009 = vpow2.f32 %v2103_v11  ;;  %v2419_v55 = vsub.f32 %v8398_v42, %v2398_v38 }
 0x631   :  { %v8502_v36 = vpop.eup %6999  ;;  %v2105_v9 = vmul.f32 1.442695, %v2078_v56 }
 0x632   :  { %v8504_v62 = vpop.eup %7001  ;;  %v2445_v58 = vmul.f32 1.442695, %v2419_v55  ;;  %v2400_v3 = vpop.xlane.xlu1 %2399 }
 0x633   :  { %7011 = vpow2.f32 %v2105_v9  ;;  %v2420_v53 = vsub.f32 %v8404_v7, %v2400_v3  ;;  %v2060_v5 = vpop.xlane.xlu0 %2059  ;;  %2131 = vadd.xlane.f32.xlu0 %v8504_v62  ;;  %2471 = vadd.xlane.f32.xlu1 %v8502_v36 }
 0x634   :  { %7013 = vpow2.f32 %v2445_v58  ;;  %v2079_v32 = vsub.f32 %v8407_v54, %v2060_v5 }
 0x635   :  { %v8510_v52 = vpop.eup %7003  ;;  %v2447_v42 = vmul.f32 1.442695, %v2420_v53 }
 0x636   :  { %v8512_v35 = vpop.eup %7005  ;;  %v2107_v17 = vmul.f32 1.442695, %v2079_v32  ;;  %v2062_v2 = vpop.xlane.xlu1 %2061 }
 0x637   :  { %7015 = vpow2.f32 %v2447_v42  ;;  %v2080_v60 = vsub.f32 %v8413_v28, %v2062_v2  ;;  %v2402_v20 = vpop.xlane.xlu0 %2401  ;;  %2473 = vadd.xlane.f32.xlu0 %v8512_v35  ;;  %2133 = vadd.xlane.f32.xlu1 %v8510_v52 }
 0x638   :  { %7017 = vpow2.f32 %v2107_v17  ;;  %v2421_v7 = vsub.f32 %v8410_v26, %v2402_v20 }
 0x639   :  { %v8518_v50 = vpop.eup %7007  ;;  %v2109_v54 = vmul.f32 1.442695, %v2080_v60 }
 0x63a   :  { %v8520_v61 = vpop.eup %7009  ;;  %v2449_v8 = vmul.f32 1.442695, %v2421_v7  ;;  %v2404_v11 = vpop.xlane.xlu1 %2403  ;;  %v10075_v7 = vld [vmem:[#allocation5_spill] sm:$0xff] }
 0x63b   :  { %7019 = vpow2.f32 %v2109_v54  ;;  %v2422_v31 = vsub.f32 %v8416_v49, %v2404_v11  ;;  %v2064_v56 = vpop.xlane.xlu0 %2063  ;;  %2135 = vadd.xlane.f32.xlu0 %v8520_v61  ;;  %2475 = vadd.xlane.f32.xlu1 %v8518_v50  ;;  %v10076_v54 = vld [vmem:[#allocation6_spill] sm:$0xff] }
 0x63c   :  { %7021 = vpow2.f32 %v2449_v8  ;;  %v2081_v28 = vsub.f32 %v8419_v39, %v2064_v56 }
 0x63d   :  { %v8526_v38 = vpop.eup %7011  ;;  %v2451_v26 = vmul.f32 1.442695, %v2422_v31 }
 0x63e   :  { %v8528_v55 = vpop.eup %7013  ;;  %v2111_v9 = vmul.f32 1.442695, %v2081_v28  ;;  %v2066_v58 = vpop.xlane.xlu1 %2065 }
 0x63f   :  { %7023 = vpow2.f32 %v2451_v26  ;;  %v2082_v3 = vsub.f32 %v8425_v34, %v2066_v58  ;;  %2477 = vadd.xlane.f32.xlu0 %v8528_v55  ;;  %v2406_v49 = vpop.xlane.xlu0 %2405  ;;  %2137 = vadd.xlane.f32.xlu1 %v8526_v38  ;;  %v7366_v58 = vld [vmem:[%s9996_s7 + $0x38] sm:$0xff] }
 0x640   :  { %7025 = vpow2.f32 %v2111_v9  ;;  %v2423_v53 = vsub.f32 %v8422_v59, %v2406_v49  ;;  %v7365_v9 = vld [vmem:[%s9996_s7 + $0x30] sm:$0xff] }
 0x641   :  { %v8534_v5 = vpop.eup %7015  ;;  %v2113_v39 = vmul.f32 1.442695, %v2082_v3  ;;  %v10077_v3 = vmov 1  }
 0x642   :  { %v8536_v32 = vpop.eup %7017  ;;  %v2453_v42 = vmul.f32 1.442695, %v2423_v53  ;;  %v2408_v17 = vpop.xlane.xlu1 %2407 }
 0x643   :  { %7027 = vpow2.f32 %v2113_v39  ;;  %v2424_v2 = vsub.f32 %v8428_v33, %v2408_v17  ;;  %2139 = vadd.xlane.f32.xlu0 %v8536_v32  ;;  %2479 = vadd.xlane.f32.xlu1 %v8534_v5 }
 0x644   :  { %7029 = vpow2.f32 %v2453_v42 }
 0x645   :  { %v8541_v34 = vpop.eup %7019  ;;  %v2455_v60 = vmul.f32 1.442695, %v2424_v2 }
 0x646   :  { %v8543_v20 = vpop.eup %7021  ;;  %v8575_v53 = vpop.permute.xlu1 %156 }
 0x647   :  { %7031 = vpow2.f32 %v2455_v60  ;;  %2481 = vadd.xlane.f32.xlu0 %v8543_v20  ;;  %v8546_v59 = vpop.permute.xlu0 %151  ;;  %2141 = vadd.xlane.f32.xlu1 %v8541_v34  ;;  %10078 = vst [vmem:[#allocation27_spill] sm:$0xff] %v8575_v53 }
 0x648   :  { %10074 = vst [vmem:[#allocation24_spill] sm:$0xff] %v8546_v59  ;;  %v292_v33 = vadd.f32 %v10075_v7, %v8546_v59  ;;  %v294_v8 = vadd.f32 %v10076_v54, %v8546_v59 }
 0x649   :  { %v8553_v11 = vpop.eup %7023 }
 0x64a   :  { %v8555_v31 = vpop.eup %7025  ;;  %6223 = vmatprep.mubr.f32.mxu0 %v292_v33  ;;  %6275 = vmatprep.mubr.f32.mxu1 %v294_v8 }
 0x64b   :  { %2143 = vadd.xlane.f32.xlu0 %v8555_v31  ;;  %2483 = vadd.xlane.f32.xlu1 %v8553_v11 }
 0x64d   :  { %v8559_v56 = vpop.eup %7027 }
 0x64e   :  { %v8561_v28 = vpop.eup %7029 }
 0x64f   :  { %2485 = vadd.xlane.f32.xlu0 %v8561_v28  ;;  %2145 = vadd.xlane.f32.xlu1 %v8559_v56 }
 0x651   :  { %v8565_v26 = vpop.eup %7031 }
 0x653   :  { %2487 = vadd.xlane.f32.xlu1 %v8565_v26 }
 0x664   :  { %161 = vperm.xlu1 %6832, %v7365_v9  }
 0x665   :  { %166 = vperm.xlu0 %6831, %v7366_v58  }
 0x669   :  { %6834 = vset.pattern.permute.xlu0 %v10077_v3 }
 0x69f   :  { %v2116_v49 = vpop.xlane.xlu0 %2115 }
 0x6a0   :  { %7033 = vrcp.f32 %v2116_v49 }
 0x6a3   :  { %v2458_v39 = vpop.xlane.xlu0 %2457 }
 0x6a4   :  { %v2118_v42 = vpop.xlane.xlu1 %2117 }
 0x6a5   :  { %7035 = vrcp.f32 %v2118_v42 }
 0x6a6   :  { %7037 = vrcp.f32 %v2458_v39 }
 0x6a8   :  { %v2120_v17 = vpop.xlane.xlu0 %2119  ;;  %v2460_v2 = vpop.xlane.xlu1 %2459 }
 0x6a9   :  { %7039 = vrcp.f32 %v2460_v2 }
 0x6aa   :  { %7041 = vrcp.f32 %v2120_v17  ;;  %v7034_v33 = vpop.eup %7033 }
 0x6ab   :  { %v2163_v58 = vmul.f32 %v7034_v33, %v8441_v15 }
 0x6ac   :  { %v2462_v60 = vpop.xlane.xlu0 %2461  ;;  %v2122_v7 = vpop.xlane.xlu1 %2121 }
 0x6ad   :  { %7043 = vrcp.f32 %v2122_v7 }
 0x6ae   :  { %7045 = vrcp.f32 %v2462_v60 }
 0x6af   :  { %v7036_v54 = vpop.eup %7035 }
 0x6b0   :  { %v2124_v8 = vpop.xlane.xlu0 %2123  ;;  %v2464_v9 = vpop.xlane.xlu1 %2463  ;;  %v2164_v49 = vmul.f32 %v7036_v54, %v8448_v24 }
 0x6b1   :  { %v7038_v25 = vpop.eup %7037  ;;  %7047 = vrcp.f32 %v2464_v9 }
 0x6b2   :  { %v6601_v42 = vpack.c.bf16 %v2164_v49, %v2163_v58  ;;  %7049 = vrcp.f32 %v2124_v8  ;;  %v2505_v2 = vmul.f32 %v7038_v25, %v8446_v41 }
 0x6b3   :  { %v7040_v39 = vpop.eup %7039 }
 0x6b4   :  { %v2466_v19 = vpop.xlane.xlu0 %2465  ;;  %6602 = vmatprep.subr.bf16.mxu0 %v6601_v42  ;;  %v2126_v17 = vpop.xlane.xlu1 %2125  ;;  %v2506_v7 = vmul.f32 %v7040_v39, %v8454_v13 }
 0x6b5   :  { %6604 = vmatpush3.bf16.xpose.msra.mxu0 %v6601_v42  ;;  %v7042_v60 = vpop.eup %7041  ;;  %7051 = vrcp.f32 %v2126_v17 }
 0x6b6   :  { %v6641_v27 = vpack.c.bf16 %v2506_v7, %v2505_v2  ;;  %7053 = vrcp.f32 %v2466_v19  ;;  %v2165_v33 = vmul.f32 %v7042_v60, %v8456_v16 }
 0x6b7   :  { %v7044_v21 = vpop.eup %7043 }
 0x6b8   :  { %v2128_v15 = vpop.xlane.xlu0 %2127  ;;  %v2468_v24 = vpop.xlane.xlu1 %2467  ;;  %6642 = vmatprep.subr.bf16.mxu1 %v6641_v27  ;;  %v2166_v54 = vmul.f32 %v7044_v21, %v8462_v4 }
 0x6b9   :  { %v7046_v8 = vpop.eup %7045  ;;  %7055 = vrcp.f32 %v2468_v24  ;;  %6644 = vmatpush3.bf16.xpose.msra.mxu1 %v6641_v27 }
 0x6ba   :  { %v6605_v9 = vpack.c.bf16 %v2166_v54, %v2165_v33  ;;  %7057 = vrcp.f32 %v2128_v15  ;;  %v2507_v13 = vmul.f32 %v7046_v8, %v8464_v40 }
 0x6bb   :  { %v7048_v58 = vpop.eup %7047 }
 0x6bc   :  { %v2470_v25 = vpop.xlane.xlu0 %2469  ;;  %v2130_v41 = vpop.xlane.xlu1 %2129  ;;  %6606 = vmatprep.subr.bf16.mxu0 %v6605_v9  ;;  %v2508_v19 = vmul.f32 %v7048_v58, %v8470_v10 }
 0x6bd   :  { %v7050_v49 = vpop.eup %7049  ;;  %7059 = vrcp.f32 %v2130_v41  ;;  %6608 = vmatpush3.bf16.xpose.msra.mxu0 %v6605_v9 }
 0x6be   :  { %v6645_v42 = vpack.c.bf16 %v2508_v19, %v2507_v13  ;;  %7061 = vrcp.f32 %v2470_v25  ;;  %v2167_v27 = vmul.f32 %v7050_v49, %v8472_v37 }
 0x6bf   :  { %v7052_v16 = vpop.eup %7051 }
 0x6c0   :  { %v2132_v21 = vpop.xlane.xlu0 %2131  ;;  %v2472_v4 = vpop.xlane.xlu1 %2471  ;;  %6646 = vmatprep.subr.bf16.mxu1 %v6645_v42  ;;  %v2168_v39 = vmul.f32 %v7052_v16, %v8478_v46 }
 0x6c1   :  { %v7054_v17 = vpop.eup %7053  ;;  %7063 = vrcp.f32 %v2472_v4  ;;  %6648 = vmatpush3.bf16.xpose.msra.mxu1 %v6645_v42 }
 0x6c2   :  { %v6609_v2 = vpack.c.bf16 %v2168_v39, %v2167_v27  ;;  %7065 = vrcp.f32 %v2132_v21  ;;  %v2509_v60 = vmul.f32 %v7054_v17, %v8480_v1 }
 0x6c3   :  { %v7056_v40 = vpop.eup %7055 }
 0x6c4   :  { %v2474_v10 = vpop.xlane.xlu0 %2473  ;;  %v2134_v7 = vpop.xlane.xlu1 %2133  ;;  %6610 = vmatprep.subr.bf16.mxu0 %v6609_v2  ;;  %v2510_v15 = vmul.f32 %v7056_v40, %v8486_v48 }
 0x6c5   :  { %v7058_v24 = vpop.eup %7057  ;;  %7067 = vrcp.f32 %v2134_v7  ;;  %6612 = vmatpush3.bf16.xpose.msra.mxu0 %v6609_v2 }
 0x6c6   :  { %v6649_v33 = vpack.c.bf16 %v2510_v15, %v2509_v60  ;;  %7069 = vrcp.f32 %v2474_v10  ;;  %v2169_v8 = vmul.f32 %v7058_v24, %v8488_v47 }
 0x6c7   :  { %v7060_v37 = vpop.eup %7059 }
 0x6c8   :  { %v2136_v46 = vpop.xlane.xlu0 %2135  ;;  %v2476_v54 = vpop.xlane.xlu1 %2475  ;;  %6650 = vmatprep.subr.bf16.mxu1 %v6649_v33  ;;  %v2170_v9 = vmul.f32 %v7060_v37, %v8494_v45 }
 0x6c9   :  { %v7062_v58 = vpop.eup %7061  ;;  %7071 = vrcp.f32 %v2476_v54  ;;  %6652 = vmatpush3.bf16.xpose.msra.mxu1 %v6649_v33 }
 0x6ca   :  { %v6613_v25 = vpack.c.bf16 %v2170_v9, %v2169_v8  ;;  %7073 = vrcp.f32 %v2136_v46  ;;  %v2511_v13 = vmul.f32 %v7062_v58, %v8496_v0 }
 0x6cb   :  { %v7064_v1 = vpop.eup %7063 }
 0x6cc   :  { %v2478_v48 = vpop.xlane.xlu0 %2477  ;;  %v2138_v41 = vpop.xlane.xlu1 %2137  ;;  %6614 = vmatprep.subr.bf16.mxu0 %v6613_v25  ;;  %v2512_v19 = vmul.f32 %v7064_v1, %v8502_v36 }
 0x6cd   :  { %v7066_v49 = vpop.eup %7065  ;;  %7075 = vrcp.f32 %v2138_v41  ;;  %6616 = vmatpush3.bf16.xpose.msra.mxu0 %v6613_v25 }
 0x6ce   :  { %v6653_v42 = vpack.c.bf16 %v2512_v19, %v2511_v13  ;;  %7077 = vrcp.f32 %v2478_v48  ;;  %v2171_v21 = vmul.f32 %v7066_v49, %v8504_v62 }
 0x6cf   :  { %v7068_v47 = vpop.eup %7067 }
 0x6d0   :  { %v2140_v45 = vpop.xlane.xlu0 %2139  ;;  %v2480_v16 = vpop.xlane.xlu1 %2479  ;;  %6654 = vmatprep.subr.bf16.mxu1 %v6653_v42  ;;  %v2172_v4 = vmul.f32 %v7068_v47, %v8510_v52 }
 0x6d1   :  { %v7070_v27 = vpop.eup %7069  ;;  %7079 = vrcp.f32 %v2480_v16  ;;  %6656 = vmatpush3.bf16.xpose.msra.mxu1 %v6653_v42 }
 0x6d2   :  { %v6617_v39 = vpack.c.bf16 %v2172_v4, %v2171_v21  ;;  %7081 = vrcp.f32 %v2140_v45  ;;  %v2513_v2 = vmul.f32 %v7070_v27, %v8512_v35  ;;  %v10080_v27 = vld [vmem:[#allocation7_spill] sm:$0xff] }
 0x6d3   :  { %v7072_v0 = vpop.eup %7071 }
 0x6d4   :  { %v2482_v36 = vpop.xlane.xlu0 %2481  ;;  %v2142_v17 = vpop.xlane.xlu1 %2141  ;;  %6618 = vmatprep.subr.bf16.mxu0 %v6617_v39  ;;  %v2514_v40 = vmul.f32 %v7072_v0, %v8518_v50  ;;  %v10083_v0 = vld [vmem:[#allocation8_spill] sm:$0xff] }
 0x6d5   :  { %v7074_v10 = vpop.eup %7073  ;;  %7083 = vrcp.f32 %v2142_v17  ;;  %6620 = vmatpush3.bf16.xpose.msra.mxu0 %v6617_v39  ;;  %v298_v39 = vadd.f32 %v10080_v27, %v8575_v53  ;;  %v10084_v17 = vld [vmem:[#allocation13_spill] sm:$0xff] }
 0x6d6   :  { %v6657_v7 = vpack.c.bf16 %v2514_v40, %v2513_v2  ;;  %7085 = vrcp.f32 %v2482_v36  ;;  %v2173_v15 = vmul.f32 %v7074_v10, %v8520_v61  ;;  %v300_v36 = vadd.f32 %v10083_v0, %v8575_v53  ;;  %v10085_v40 = vld [vmem:[#allocation11_spill] sm:$0xff]  ;;  %v10104_v53 = vld [vmem:[#allocation16_spill] sm:$0xff] }
 0x6d7   :  { %v7076_v62 = vpop.eup %7075 }
 0x6d8   :  { %v2144_v52 = vpop.xlane.xlu0 %2143  ;;  %v2484_v60 = vpop.xlane.xlu1 %2483  ;;  %6658 = vmatprep.subr.bf16.mxu1 %v6657_v7  ;;  %v2174_v24 = vmul.f32 %v7076_v62, %v8526_v38 }
 0x6d9   :  { %v7078_v33 = vpop.eup %7077  ;;  %7087 = vrcp.f32 %v2484_v60  ;;  %6660 = vmatpush3.bf16.xpose.msra.mxu1 %v6657_v7  ;;  %v10086_v7 = vld [vmem:[#allocation14_spill] sm:$0xff]  ;;  %v5486_v60 = vld [vmem:[%s9991_s2 + $0x100] sm:$0xff] }
 0x6da   :  { %v6621_v37 = vpack.c.bf16 %v2174_v24, %v2173_v15  ;;  %7089 = vrcp.f32 %v2144_v52  ;;  %v2515_v54 = vmul.f32 %v7078_v33, %v8528_v55  ;;  %v8633_v52 = vld [vmem:[%s9997_s8 + $0x20] sm:$0xff]  ;;  %v5487_v15 = vld [vmem:[%s9991_s2 + $0x108] sm:$0xff]  ;;  %v5488_v24 = vld [vmem:[%s9991_s2 + $0x110] sm:$0xff] }
 0x6db   :  { %v7080_v35 = vpop.eup %7079  ;;  %v5489_v33 = vld [vmem:[%s9991_s2 + $0x118] sm:$0xff] }
 0x6dc   :  { %v2486_v50 = vpop.xlane.xlu0 %2485  ;;  %v2146_v46 = vpop.xlane.xlu1 %2145  ;;  %6622 = vmatprep.subr.bf16.mxu0 %v6621_v37  ;;  %v2516_v8 = vmul.f32 %v7080_v35, %v8534_v5  ;;  %v5491_v35 = vld [vmem:[%s9991_s2 + $0x128] sm:$0xff] }
 0x6dd   :  { %v7082_v9 = vpop.eup %7081  ;;  %7091 = vrcp.f32 %v2146_v46  ;;  %6624 = vmatpush3.bf16.xpose.msra.mxu0 %v6621_v37  ;;  %v5490_v37 = vld [vmem:[%s9991_s2 + $0x120] sm:$0xff]  ;;  %v5493_v46 = vld [vmem:[%s9991_s2 + $0x138] sm:$0xff] }
 0x6de   :  { %7093 = vrcp.f32 %v2486_v50  ;;  %v6661_v61 = vpack.c.bf16 %v2516_v8, %v2515_v54  ;;  %v2175_v25 = vmul.f32 %v7082_v9, %v8536_v32  ;;  %v5492_v50 = vld [vmem:[%s9991_s2 + $0x130] sm:$0xff]  ;;  %v5494_v54 = vld [vmem:[%s9991_s2 + $0x140] sm:$0xff]  ;;  %v5495_v8 = vld [vmem:[%s9991_s2 + $0x148] sm:$0xff] }
 0x6df   :  { %v7084_v58 = vpop.eup %7083  ;;  %v5496_v9 = vld [vmem:[%s9991_s2 + $0x150] sm:$0xff] }
 0x6e0   :  { %v2488_v38 = vpop.xlane.xlu1 %2487  ;;  %6662 = vmatprep.subr.bf16.mxu1 %v6661_v61  ;;  %v2176_v1 = vmul.f32 %v7084_v58, %v8541_v34  ;;  %v7086_v48 = vpop.eup %7085  ;;  %v5498_v58 = vld [vmem:[%s9991_s2 + $0x160] sm:$0xff] }
 0x6e1   :  { %7095 = vrcp.f32 %v2488_v38  ;;  %6664 = vmatpush3.bf16.xpose.msra.mxu1 %v6661_v61  ;;  %v2517_v55 = vmul.f32 %v7086_v48, %v8543_v20  ;;  %v5497_v61 = vld [vmem:[%s9991_s2 + $0x158] sm:$0xff]  ;;  %v5499_v38 = vld [vmem:[%s9991_s2 + $0x168] sm:$0xff]  ;;  %v5502_v48 = vld [vmem:[%s9991_s2 + $0x180] sm:$0xff] }
 0x6e2   :  { %v6625_v41 = vpack.c.bf16 %v2176_v1, %v2175_v25  ;;  %v5500_v25 = vld [vmem:[%s9991_s2 + $0x170] sm:$0xff]  ;;  %v5501_v1 = vld [vmem:[%s9991_s2 + $0x178] sm:$0xff] }
 0x6e3   :  { %v7088_v13 = vpop.eup %7087 }
 0x6e4   :  { %6626 = vmatprep.subr.bf16.mxu0 %v6625_v41  ;;  %v2518_v5 = vmul.f32 %v7088_v13, %v8553_v11  ;;  %v7090_v19 = vpop.eup %7089  ;;  %v8609_v11 = vpop.permute.xlu1 %161  ;;  %v5504_v13 = vld [vmem:[%s9991_s2 + $0x190] sm:$0xff] }
 0x6e5   :  { %6628 = vmatpush3.bf16.xpose.msra.mxu0 %v6625_v41  ;;  %v2177_v45 = vmul.f32 %v7090_v19, %v8555_v31  ;;  %10079 = vst [vmem:[#allocation26_spill] sm:$0xff] %v8609_v11  ;;  %v7367_v31 = vld [vmem:[%s9993_s4] sm:$0xf]  ;;  %v306_v10 = vadd.f32 %v10085_v40, %v8609_v11  ;;  %v5503_v41 = vld [vmem:[%s9991_s2 + $0x188] sm:$0xff] }
 0x6e6   :  { %v6665_v49 = vpack.c.bf16 %v2518_v5, %v2517_v55  ;;  %v5505_v55 = vld [vmem:[%s9991_s2 + $0x198] sm:$0xff]  ;;  %v5506_v5 = vld [vmem:[%s9991_s2 + $0x1a0] sm:$0xff]  ;;  %v5507_v19 = vld [vmem:[%s9991_s2 + $0x1a8] sm:$0xff] }
 0x6e7   :  { %v7092_v42 = vpop.eup %7091 }
 0x6e8   :  { %v7094_v47 = vpop.eup %7093  ;;  %6666 = vmatprep.subr.bf16.mxu1 %v6665_v49  ;;  %v2178_v32 = vmul.f32 %v7092_v42, %v8559_v56  ;;  %v8617_v56 = vpop.permute.xlu0 %166  ;;  %v5509_v42 = vld [vmem:[%s9991_s2 + $0x1b8] sm:$0xff] }
 0x6e9   :  { %6668 = vmatpush3.bf16.xpose.msra.mxu1 %v6665_v49  ;;  %v2519_v21 = vmul.f32 %v7094_v47, %v8561_v28  ;;  %10081 = vst [vmem:[#allocation29_spill] sm:$0xff] %v8617_v56  ;;  %v10082_v28 = vld [vmem:[#allocation10_spill] sm:$0xff]  ;;  %v310_v2 = vadd.f32 %v10084_v17, %v8617_v56  ;;  %v312_v62 = vadd.f32 %v10086_v7, %v8617_v56  ;;  %v5508_v49 = vld [vmem:[%s9991_s2 + $0x1b0] sm:$0xff]  ;;  %v5510_v47 = vld [vmem:[%s9991_s2 + $0x1c0] sm:$0xff] }
 0x6ea   :  { %v6629_v16 = vpack.c.bf16 %v2178_v32, %v2177_v45  ;;  %v5511_v45 = vld [vmem:[%s9991_s2 + $0x1c8] sm:$0xff]  ;;  %v5512_v32 = vld [vmem:[%s9991_s2 + $0x1d0] sm:$0xff] }
 0x6eb   :  { %v7096_v34 = vpop.eup %7095  ;;  %v5350_v7 = vld [vmem:[%s9997_s8 + $0x28] sm:$0xff] }
 0x6ec   :  { %v2520_v4 = vmul.f32 %v7096_v34, %v8565_v26  ;;  %6630 = vmatprep.subr.bf16.mxu0 %v6629_v16  ;;  %v304_v26 = vadd.f32 %v10082_v28, %v8609_v11  ;;  %v5513_v34 = vld [vmem:[%s9991_s2 + $0x1d8] sm:$0xff] }
 0x6ed   :  { %6632 = vmatpush3.bf16.xpose.msra.mxu0 %v6629_v16  ;;  %v5514_v16 = vld [vmem:[%s9991_s2 + $0x1e0] sm:$0xff] }
 0x6ee   :  { %v6669_v20 = vpack.c.bf16 %v2520_v4, %v2519_v21  ;;  %v5515_v21 = vld [vmem:[%s9991_s2 + $0x1e8] sm:$0xff]  ;;  %v5516_v4 = vld [vmem:[%s9991_s2 + $0x1f0] sm:$0xff] }
 0x6f0   :  { %6670 = vmatprep.subr.bf16.mxu1 %v6669_v20 }
 0x6f1   :  { %6672 = vmatpush3.bf16.xpose.msra.mxu1 %v6669_v20  ;;  %v5517_v20 = vld [vmem:[%s9991_s2 + $0x1f8] sm:$0xff]  ;;  %s7395_s2 = scalar_lea.hbm %s9999_s10, 32 }
 0x6f2   :  { %6309 = vmatprep.subr.msk.mxu1 %vm196_vm0, %v7367_v31  ;;  %p7396_p0 = scmp.ne.s32.totalorder %s9999_s10, %s7395_s2  ;;  %p7399_p1 = scmp.lt.u32.totalorder %s7395_s2, %s9999_s10 }
 0x6f4   :  { %6224 = vmatmul.mubr.f32.vlgmr.msra.gmra.mrb[72].mxu0 %v298_v39  ;;  %p7401_p2 = pnand %p7399_p1, %p7396_p0 }
 0x6f5   :  { %6226 = vmatprep.mubr.f32.mxu0 %v304_v26 }
 0x6f8   :  { %6227 = vmatmul.mubr.f32.gmra.mrb[74].mxu0 %v310_v2  ;;  %6276 = vmatmul.mubr.f32.vlgmr.msra.gmra.mrb[80].mxu1 %v300_v36 }
 0x6f9   :  { %6278 = vmatprep.mubr.f32.mxu1 %v306_v10  ;;  %6310 = vmatpush3.msk.msra.mxu1 %vm196_vm0, %v7367_v31 }
 0x6fa   :  { %6237 = vmatprep.mubr.msk.f32.mxu0 %vm1006_vm2, %v8633_v52 }
 0x6fc   :  { %6279 = vmatmul.mubr.f32.gmra.mrb[82].mxu1 %v312_v62 }
 0x6fd   :  { %6311 = vmatprep.mubr.msk.f32.mxu1 %vm171_vm1, %v5486_v60  ;;  %v5351_v60 = vld [vmem:[%s9997_s8 + $0x30] sm:$0xff] }
 0x700   :  { %6312 = vmatmul.mubr.msk.f32.vlgmr.msra.gmra.mrb[84].mxu1 %vm171_vm1, %v5487_v15  ;;  %v5484_v15 = vld [vmem:[%s9989_s0 + $0x8] sm:$0xff] }
 0x701   :  { %6314 = vmatprep.mubr.msk.f32.mxu1 %vm171_vm1, %v5488_v24  ;;  %v5352_v24 = vld [vmem:[%s9997_s8 + $0x38] sm:$0xff] }
 0x704   :  { %6315 = vmatmul.mubr.msk.f32.gmra.mrb[86].mxu1 %vm171_vm1, %v5489_v33  ;;  %v2855_v33 = vcombine.high %v5484_v15, %v5484_v15 }
 0x705   :  { %6317 = vmatprep.mubr.msk.f32.mxu1 %vm171_vm1, %v5490_v37  ;;  %v5485_v37 = vld [vmem:[%s9990_s1 + $0x4] sm:$0xf] }
 0x708   :  { %6318 = vmatmul.mubr.msk.f32.gmra.mrb[88].mxu1 %vm171_vm1, %v5491_v35  ;;  %v7369_v35 = vld [vmem:[%s9993_s4 + $0x4] sm:$0xf] }
 0x709   :  { %6320 = vmatprep.mubr.msk.f32.mxu1 %vm171_vm1, %v5492_v50  ;;  %v7370_v50 = vld [vmem:[%s9994_s5 + $0x8] sm:$0xff] }
 0x70c   :  { %6321 = vmatmul.mubr.msk.f32.gmra.mrb[90].mxu1 %vm171_vm1, %v5493_v46  ;;  %v7371_v46 = vld [vmem:[%s9994_s5 + $0x10] sm:$0xff] }
 0x70d   :  { %6323 = vmatprep.mubr.msk.f32.mxu1 %vm171_vm1, %v5494_v54  ;;  %v7372_v54 = vld [vmem:[%s9994_s5 + $0x18] sm:$0xff] }
 0x710   :  { %6324 = vmatmul.mubr.msk.f32.gmra.mrb[92].mxu1 %vm171_vm1, %v5495_v8  ;;  %v7373_v8 = vld [vmem:[%s9994_s5 + $0x20] sm:$0xff] }
 0x711   :  { %6326 = vmatprep.mubr.msk.f32.mxu1 %vm171_vm1, %v5496_v9  ;;  %v7374_v9 = vld [vmem:[%s9994_s5 + $0x28] sm:$0xff] }
 0x714   :  { %6327 = vmatmul.mubr.msk.f32.gmra.mrb[94].mxu1 %vm171_vm1, %v5497_v61  ;;  %v7375_v61 = vld [vmem:[%s9994_s5 + $0x30] sm:$0xff] }
 0x715   :  { %6329 = vmatprep.mubr.msk.f32.mxu1 %vm171_vm1, %v5498_v58  ;;  %v7376_v58 = vld [vmem:[%s9994_s5 + $0x38] sm:$0xff] }
 0x718   :  { %6330 = vmatmul.mubr.msk.f32.gmra.mrb[96].mxu1 %vm171_vm1, %v5499_v38  ;;  %v7377_v38 = vld [vmem:[%s9994_s5 + $0x40] sm:$0xff] }
 0x719   :  { %6332 = vmatprep.mubr.msk.f32.mxu1 %vm171_vm1, %v5500_v25  ;;  %v7378_v25 = vld [vmem:[%s9994_s5 + $0x48] sm:$0xff] }
 0x71c   :  { %6333 = vmatmul.mubr.msk.f32.gmra.mrb[98].mxu1 %vm171_vm1, %v5501_v1  ;;  %v7379_v1 = vld [vmem:[%s9994_s5 + $0x50] sm:$0xff] }
 0x71d   :  { %6335 = vmatprep.mubr.msk.f32.mxu1 %vm171_vm1, %v5502_v48  ;;  %v7380_v48 = vld [vmem:[%s9994_s5 + $0x58] sm:$0xff] }
 0x720   :  { %6336 = vmatmul.mubr.msk.f32.gmra.mrb[100].mxu1 %vm171_vm1, %v5503_v41  ;;  %v7381_v41 = vld [vmem:[%s9994_s5 + $0x60] sm:$0xff] }
 0x721   :  { %6338 = vmatprep.mubr.msk.f32.mxu1 %vm171_vm1, %v5504_v13  ;;  %v7382_v13 = vld [vmem:[%s9994_s5 + $0x68] sm:$0xff] }
 0x724   :  { %6339 = vmatmul.mubr.msk.f32.gmra.mrb[102].mxu1 %vm171_vm1, %v5505_v55  ;;  %v7383_v55 = vld [vmem:[%s9994_s5 + $0x70] sm:$0xff] }
 0x725   :  { %6341 = vmatprep.mubr.msk.f32.mxu1 %vm171_vm1, %v5506_v5  ;;  %v7384_v5 = vld [vmem:[%s9994_s5 + $0x78] sm:$0xff] }
 0x728   :  { %6342 = vmatmul.mubr.msk.f32.gmra.mrb[104].mxu1 %vm171_vm1, %v5507_v19  ;;  %v5518_v19 = vld [vmem:[%s9992_s3 + $0x80] sm:$0xff] }
 0x729   :  { %6344 = vmatprep.mubr.msk.f32.mxu1 %vm171_vm1, %v5508_v49  ;;  %v5519_v49 = vld [vmem:[%s9992_s3 + $0x88] sm:$0xff] }
 0x72c   :  { %6345 = vmatmul.mubr.msk.f32.gmra.mrb[106].mxu1 %vm171_vm1, %v5509_v42  ;;  %v5520_v42 = vld [vmem:[%s9992_s3 + $0x90] sm:$0xff] }
 0x72d   :  { %6347 = vmatprep.mubr.msk.f32.mxu1 %vm171_vm1, %v5510_v47  ;;  %v5521_v47 = vld [vmem:[%s9992_s3 + $0x98] sm:$0xff] }
 0x730   :  { %6348 = vmatmul.mubr.msk.f32.gmra.mrb[108].mxu1 %vm171_vm1, %v5511_v45  ;;  %v5522_v45 = vld [vmem:[%s9992_s3 + $0xa0] sm:$0xff] }
 0x731   :  { %6350 = vmatprep.mubr.msk.f32.mxu1 %vm171_vm1, %v5512_v32  ;;  %v5523_v32 = vld [vmem:[%s9992_s3 + $0xa8] sm:$0xff] }
 0x734   :  { %6351 = vmatmul.mubr.msk.f32.gmra.mrb[110].mxu1 %vm171_vm1, %v5513_v34  ;;  %v5524_v34 = vld [vmem:[%s9992_s3 + $0xb0] sm:$0xff] }
 0x735   :  { %6353 = vmatprep.mubr.msk.f32.mxu1 %vm171_vm1, %v5514_v16  ;;  %v5525_v16 = vld [vmem:[%s9992_s3 + $0xb8] sm:$0xff] }
 0x738   :  { %6354 = vmatmul.mubr.msk.f32.gmra.mrb[112].mxu1 %vm171_vm1, %v5515_v21  ;;  %v5526_v21 = vld [vmem:[%s9992_s3 + $0xc0] sm:$0xff] }
 0x739   :  { %6356 = vmatprep.mubr.msk.f32.mxu1 %vm171_vm1, %v5516_v4  ;;  %v5527_v4 = vld [vmem:[%s9992_s3 + $0xc8] sm:$0xff] }
 0x73c   :  { %6357 = vmatmul.mubr.msk.f32.gmra.mrb[114].mxu1 %vm171_vm1, %v5517_v20  ;;  %v5528_v20 = vld [vmem:[%s9992_s3 + $0xd0] sm:$0xff] }
 0x7c7   :  { %v6225_v27 = vpop.f32.mrb[72].mxu0 }
 0x7c8   :  { %v2245_v39 = vpop.f32.mrb[73].mxu0 }
 0x7c9   :  { %v6633_v31 = vpack.c.bf16 %v6225_v27, %v2245_v39  ;;  %v5529_v27 = vld [vmem:[%s9992_s3 + $0xd8] sm:$0xff]  ;;  %v5530_v39 = vld [vmem:[%s9992_s3 + $0xe0] sm:$0xff] }
 0x7cb   :  { %v6228_v28 = vpop.f32.mrb[74].mxu0  ;;  %6634 = vmatprep.subr.bf16.mxu0 %v6633_v31  ;;  %v6277_v26 = vpop.f32.mrb[80].mxu1 }
 0x7cc   :  { %v2255_v0 = vpop.f32.mrb[75].mxu0  ;;  %6636 = vmatpush3.bf16.msra.mxu0 %v6633_v31  ;;  %v2587_v36 = vpop.f32.mrb[81].mxu1  ;;  %v5531_v31 = vld [vmem:[%s9992_s3 + $0xe8] sm:$0xff] }
 0x7cd   :  { %v6637_v17 = vpack.c.bf16 %v6228_v28, %v2255_v0  ;;  %v6673_v2 = vpack.c.bf16 %v6277_v26, %v2587_v36  ;;  %v5532_v28 = vld [vmem:[%s9992_s3 + $0xf0] sm:$0xff]  ;;  %v5533_v0 = vld [vmem:[%s9992_s3 + $0xf8] sm:$0xff] }
 0x7cf   :  { %6638 = vmatprep.subr.bf16.mxu0 %v6637_v17  ;;  %v6280_v40 = vpop.f32.mrb[82].mxu1 }
 0x7d0   :  { %6640 = vmatpush3.bf16.msra.mxu0 %v6637_v17  ;;  %v2597_v10 = vpop.f32.mrb[83].mxu1  ;;  %v8938_v17 = vld [vmem:[%s9995_s6] ss:$0 sm:$0xff] }
 0x7d1   :  { %v6677_v62 = vpack.c.bf16 %v6280_v40, %v2597_v10  ;;  %6674 = vmatprep.subr.bf16.mxu0 %v6673_v2 }
 0x7d3   :  { %6238 = vmatmul.mubr.msk.f32.vlgmr.msra.gmra.mrb[76].mxu0 %vm1006_vm2, %v5350_v7  ;;  %v8928_v26 = vpop.f32.mrb[84].mxu1 }
 0x7d4   :  { %6676 = vmatpush3.bf16.msra.mxu0 %v6673_v2  ;;  %6240 = vmatprep.mubr.msk.f32.mxu0 %vm1006_vm2, %v5351_v60  ;;  %v3243_v36 = vpop.f32.mrb[85].mxu1 }
 0x7d5   :  { %6678 = vmatprep.subr.bf16.mxu0 %v6677_v62  ;;  %v3244_v2 = vadd.f32 %v8938_v17, %v3243_v36 }
 0x7d7   :  { %6241 = vmatmul.mubr.msk.f32.gmra.mrb[78].mxu0 %vm1006_vm2, %v5352_v24  ;;  %v8941_v40 = vpop.f32.mrb[86].mxu1 }
 0x7d8   :  { %6680 = vmatpush3.bf16.msra.mxu0 %v6677_v62  ;;  %6289 = vmatprep.mubr.msk.f32.mxu0 %vm1006_vm2, %v8633_v52  ;;  %v7368_v52 = vld [vmem:[%s9994_s5] sm:$0xff]  ;;  %v8944_v10 = vpop.f32.mrb[87].mxu1 }
 0x7d9   :  { %5534 = vmatprep.subr.msk.mxu0 %vm196_vm0, %v2855_v33 }
 0x7db   :  { %6290 = vmatmul.mubr.msk.f32.vlgmr.msra.gmra.mrb[80].mxu0 %vm1006_vm2, %v5350_v7  ;;  %v8946_v7 = vpop.f32.mrb[88].mxu1 }
 0x7dc   :  { %6292 = vmatprep.mubr.msk.f32.mxu0 %vm1006_vm2, %v5351_v60  ;;  %5535 = vmatpush1.msk.msra.mxu0 %vm196_vm0, %v5484_v15  ;;  %v8948_v62 = vpop.f32.mrb[89].mxu1 }
 0x7dd   :  { %6295 = vmatprep.subr.msk.mxu0 %vm196_vm0, %v5485_v37 }
 0x7df   :  { %6293 = vmatmul.mubr.msk.f32.gmra.mrb[82].mxu0 %vm1006_vm2, %v5352_v24  ;;  %v8950_v60 = vpop.f32.mrb[90].mxu1 }
 0x7e0   :  { %2924 = vmatprep.mubr.f32.mxu0 %v10048_v23  ;;  %v8952_v15 = vpop.f32.mrb[91].mxu1 }
 0x7e3   :  { %5536 = vmatmul.mubr.msk.f32.vlgmr.msra.gmra.mrb[84].mxu0 %vm171_vm1, %v7368_v52  ;;  %v8954_v24 = vpop.f32.mrb[92].mxu1 }
 0x7e4   :  { %2930 = vmatprep.mubr.f32.mxu0 %v10048_v23  ;;  %6296 = vmatpush3.msk.msra.mxu0 %vm196_vm0, %v5485_v37  ;;  %v8956_v33 = vpop.f32.mrb[93].mxu1 }
 0x7e5   :  { %6359 = vmatprep.subr.msk.mxu0 %vm196_vm0, %v7369_v35 }
 0x7e7   :  { %5537 = vmatmul.mubr.msk.f32.gmra.mrb[86].mxu0 %vm171_vm1, %v7370_v50  ;;  %v8958_v37 = vpop.f32.mrb[94].mxu1 }
 0x7e8   :  { %2936 = vmatprep.mubr.f32.mxu0 %v10048_v23  ;;  %v8960_v52 = vpop.f32.mrb[95].mxu1 }
 0x7eb   :  { %5538 = vmatmul.mubr.msk.f32.gmra.mrb[88].mxu0 %vm171_vm1, %v7371_v46 }
 0x7ec   :  { %2942 = vmatprep.mubr.f32.mxu0 %v10048_v23 }
 0x7ef   :  { %5539 = vmatmul.mubr.msk.f32.gmra.mrb[90].mxu0 %vm171_vm1, %v7372_v54 }
 0x7f0   :  { %2948 = vmatprep.mubr.f32.mxu0 %v10048_v23 }
 0x7f3   :  { %5540 = vmatmul.mubr.msk.f32.gmra.mrb[92].mxu0 %vm171_vm1, %v7373_v8 }
 0x7f4   :  { %2954 = vmatprep.mubr.f32.mxu0 %v10048_v23 }
 0x7f7   :  { %5541 = vmatmul.mubr.msk.f32.gmra.mrb[94].mxu0 %vm171_vm1, %v7374_v9 }
 0x7f8   :  { %2960 = vmatprep.mubr.f32.mxu0 %v10048_v23 }
 0x7fb   :  { %5542 = vmatmul.mubr.msk.f32.gmra.mrb[96].mxu0 %vm171_vm1, %v7375_v61 }
 0x7fc   :  { %2966 = vmatprep.mubr.f32.mxu0 %v10048_v23 }
 0x7ff   :  { %5543 = vmatmul.mubr.msk.f32.gmra.mrb[98].mxu0 %vm171_vm1, %v7376_v58 }
 0x800   :  { %6297 = vmatprep.mubr.msk.f32.mxu0 %vm171_vm1, %v7377_v38 }
 0x803   :  { %6298 = vmatmul.mubr.msk.f32.vlgmr.msra.gmra.mrb[100].mxu0 %vm171_vm1, %v7378_v25 }
 0x804   :  { %6300 = vmatprep.mubr.msk.f32.mxu0 %vm171_vm1, %v7379_v1  ;;  %6360 = vmatpush3.msk.msra.mxu0 %vm196_vm0, %v7369_v35  ;;  %v8962_v35 = vpop.f32.mrb[96].mxu1 }
 0x805   :  { %v8964_v50 = vpop.f32.mrb[97].mxu1 }
 0x806   :  { %v8966_v46 = vpop.f32.mrb[98].mxu1 }
 0x807   :  { %6301 = vmatmul.mubr.msk.f32.gmra.mrb[102].mxu0 %vm171_vm1, %v7380_v48  ;;  %v8968_v54 = vpop.f32.mrb[99].mxu1 }
 0x808   :  { %6303 = vmatprep.mubr.msk.f32.mxu0 %vm171_vm1, %v7381_v41  ;;  %v8970_v8 = vpop.f32.mrb[100].mxu1 }
 0x809   :  { %v8972_v9 = vpop.f32.mrb[101].mxu1 }
 0x80a   :  { %v8974_v61 = vpop.f32.mrb[102].mxu1 }
 0x80b   :  { %6304 = vmatmul.mubr.msk.f32.gmra.mrb[104].mxu0 %vm171_vm1, %v7382_v13  ;;  %v8976_v58 = vpop.f32.mrb[103].mxu1 }
 0x80c   :  { %6306 = vmatprep.mubr.msk.f32.mxu0 %vm171_vm1, %v7383_v55  ;;  %v8978_v38 = vpop.f32.mrb[104].mxu1 }
 0x80d   :  { %v8980_v25 = vpop.f32.mrb[105].mxu1 }
 0x80e   :  { %v8982_v1 = vpop.f32.mrb[106].mxu1 }
 0x80f   :  { %6307 = vmatmul.mubr.msk.f32.gmra.mrb[106].mxu0 %vm171_vm1, %v7384_v5  ;;  %v8984_v48 = vpop.f32.mrb[107].mxu1 }
 0x810   :  { %6361 = vmatprep.mubr.msk.f32.mxu0 %vm171_vm1, %v5518_v19  ;;  %v8986_v41 = vpop.f32.mrb[108].mxu1 }
 0x811   :  { %v8988_v13 = vpop.f32.mrb[109].mxu1 }
 0x812   :  { %v8990_v55 = vpop.f32.mrb[110].mxu1 }
 0x813   :  { %6362 = vmatmul.mubr.msk.f32.vlgmr.msra.gmra.mrb[108].mxu0 %vm171_vm1, %v5519_v49  ;;  %v8992_v5 = vpop.f32.mrb[111].mxu1 }
 0x814   :  { %6364 = vmatprep.mubr.msk.f32.mxu0 %vm171_vm1, %v5520_v42  ;;  %v8994_v19 = vpop.f32.mrb[112].mxu1 }
 0x815   :  { %v8996_v49 = vpop.f32.mrb[113].mxu1 }
 0x816   :  { %v8998_v42 = vpop.f32.mrb[114].mxu1 }
 0x817   :  { %6365 = vmatmul.mubr.msk.f32.gmra.mrb[110].mxu0 %vm171_vm1, %v5521_v47  ;;  %v9000_v47 = vpop.f32.mrb[115].mxu1 }
 0x818   :  { %6367 = vmatprep.mubr.msk.f32.mxu0 %vm171_vm1, %v5522_v45 }
 0x81b   :  { %6368 = vmatmul.mubr.msk.f32.gmra.mrb[112].mxu0 %vm171_vm1, %v5523_v32 }
 0x81c   :  { %6370 = vmatprep.mubr.msk.f32.mxu0 %vm171_vm1, %v5524_v34 }
 0x81f   :  { %6371 = vmatmul.mubr.msk.f32.gmra.mrb[114].mxu0 %vm171_vm1, %v5525_v16 }
 0x820   :  { %6373 = vmatprep.mubr.msk.f32.mxu0 %vm171_vm1, %v5526_v21 }
 0x823   :  { %6374 = vmatmul.mubr.msk.f32.gmra.mrb[116].mxu0 %vm171_vm1, %v5527_v4 }
 0x824   :  { %6376 = vmatprep.mubr.msk.f32.mxu0 %vm171_vm1, %v5528_v20 }
 0x827   :  { %6377 = vmatmul.mubr.msk.f32.gmra.mrb[118].mxu0 %vm171_vm1, %v5529_v27 }
 0x828   :  { %6379 = vmatprep.mubr.msk.f32.mxu0 %vm171_vm1, %v5530_v39 }
 0x82b   :  { %6380 = vmatmul.mubr.msk.f32.gmra.mrb[120].mxu0 %vm171_vm1, %v5531_v31 }
 0x82c   :  { %6382 = vmatprep.mubr.msk.f32.mxu0 %vm171_vm1, %v5532_v28 }
 0x82f   :  { %6383 = vmatmul.mubr.msk.f32.gmra.mrb[122].mxu0 %vm171_vm1, %v5533_v0 }
 0x830   :  { %6393 = vmatprep.mubr.msk.f32.mxu0 %vm1006_vm2, %v3244_v2 }
 0x8a6   :  { %v9002_v45 = vpop.f32.mrb[76].mxu0 }
 0x8a7   :  { %10087 = vst [vmem:[#allocation28_spill] sm:$0xff] %v9002_v45  ;;  %v9004_v32 = vpop.f32.mrb[77].mxu0 }
 0x8a8   :  { %10088 = vst [vmem:[#allocation31_spill] sm:$0xff] %v9004_v32 }
 0x8aa   :  { %v9006_v34 = vpop.f32.mrb[78].mxu0 }
 0x8ab   :  { %10089 = vst [vmem:[#allocation30_spill] sm:$0xff] %v9006_v34  ;;  %v9008_v16 = vpop.f32.mrb[79].mxu0 }
 0x8ac   :  { %10090 = vst [vmem:[#allocation33_spill] sm:$0xff] %v9008_v16 }
 0x8ae   :  { %v9010_v21 = vpop.f32.mrb[80].mxu0 }
 0x8af   :  { %10091 = vst [vmem:[#allocation32_spill] sm:$0xff] %v9010_v21  ;;  %v9012_v4 = vpop.f32.mrb[81].mxu0 }
 0x8b0   :  { %10092 = vst [vmem:[#allocation5_spill] sm:$0xff] %v9012_v4 }
 0x8b2   :  { %v9014_v20 = vpop.f32.mrb[82].mxu0 }
 0x8b3   :  { %10093 = vst [vmem:[#allocation6_spill] sm:$0xff] %v9014_v20  ;;  %v9016_v27 = vpop.f32.mrb[83].mxu0 }
 0x8b4   :  { %10094 = vst [vmem:[#allocation7_spill] sm:$0xff] %v9016_v27 }
 0x8b6   :  { %v2926_v39 = vpop.f32.mrb[84].mxu0 }
 0x8b7   :  { %v2928_v31 = vpop.f32.mrb[85].mxu0  ;;  %v9019_v0 = vadd.f32 %v2926_v39, %v8212_v44 }
 0x8b8   :  { %v9025_v34 = vadd.f32 %v2928_v31, %v8212_v44 }
 0x8ba   :  { %v2932_v28 = vpop.f32.mrb[86].mxu0 }
 0x8bb   :  { %v9022_v36 = vadd.f32 %v2932_v28, %v8217_v57  ;;  %v2934_v2 = vpop.f32.mrb[87].mxu0 }
 0x8bc   :  { %v9028_v16 = vadd.f32 %v2934_v2, %v8217_v57  ;;  %v10102_v2 = vld [vmem:[#allocation15_spill] sm:$0xff] }
 0x8be   :  { %v2938_v18 = vpop.f32.mrb[88].mxu0 }
 0x8bf   :  { %v2940_v14 = vpop.f32.mrb[89].mxu0  ;;  %v9035_v4 = vadd.f32 %v2938_v18, %v8232_v12 }
 0x8c0   :  { %v9041_v31 = vadd.f32 %v2940_v14, %v8232_v12 }
 0x8c2   :  { %v2944_v39 = vpop.f32.mrb[90].mxu0 }
 0x8c3   :  { %v9038_v28 = vadd.f32 %v2944_v39, %v8230_v22  ;;  %v2946_v44 = vpop.f32.mrb[91].mxu0 }
 0x8c4   :  { %v9044_v57 = vadd.f32 %v2946_v44, %v8230_v22 }
 0x8c6   :  { %v9050_v27 = vpop.f32.mrb[92].mxu0 }
 0x8c7   :  { %v9052_v18 = vpop.f32.mrb[93].mxu0 }
 0x8c8   :  { %10095 = vst [vmem:[#allocation10_spill] sm:$0xff] %v9052_v18 }
 0x8ca   :  { %v9054_v32 = vpop.f32.mrb[94].mxu0 }
 0x8cb   :  { %10096 = vst [vmem:[#allocation8_spill] sm:$0xff] %v9054_v32  ;;  %v9056_v39 = vpop.f32.mrb[95].mxu0 }
 0x8cc   :  { %10097 = vst [vmem:[#allocation13_spill] sm:$0xff] %v9056_v39  ;;  %v10105_v39 = vld [vmem:[#allocation12_spill] sm:$0xff] }
 0x8ce   :  { %v9058_v56 = vpop.f32.mrb[96].mxu0 }
 0x8cf   :  { %10098 = vst [vmem:[#allocation11_spill] sm:$0xff] %v9058_v56  ;;  %v9060_v12 = vpop.f32.mrb[97].mxu0 }
 0x8d0   :  { %10099 = vst [vmem:[#allocation14_spill] sm:$0xff] %v9060_v12 }
 0x8d2   :  { %v9062_v22 = vpop.f32.mrb[98].mxu0 }
 0x8d3   :  { %10100 = vst [vmem:[#allocation34_spill] sm:$0xff] %v9062_v22  ;;  %v9064_v14 = vpop.f32.mrb[99].mxu0 }
 0x8d4   :  { %10101 = vst [vmem:[#allocation35_spill] sm:$0xff] %v9064_v14 }
 0x8d6   :  { %v6299_v44 = vpop.f32.mrb[100].mxu0 }
 0x8d7   :  { %v3048_v11 = vadd.f32 %v6299_v44, %v10102_v2  ;;  %v3042_v20 = vpop.f32.mrb[101].mxu0 }
 0x8d8   :  { %v3043_v51 = vadd.f32 %v3042_v20, %v10103_v63  ;;  %v3249_v63 = vadd.f32 %v8938_v17, %v8928_v26  ;;  %v3274_v26 = vadd.f32 %v8938_v17, %v8952_v15  ;;  %v3294_v15 = vadd.f32 %v8938_v17, %v8960_v52 }
 0x8d9   :  { %v3314_v52 = vadd.f32 %v8938_v17, %v8968_v54  ;;  %v3334_v54 = vadd.f32 %v8938_v17, %v8976_v58  ;;  %v3364_v58 = vadd.f32 %v8938_v17, %v8988_v13 }
 0x8da   :  { %v6681_v21 = vpack.c.bf16 %v3048_v11, %v3043_v51  ;;  %v6302_v45 = vpop.f32.mrb[102].mxu0  ;;  %v3254_v51 = vadd.f32 %v8938_v17, %v8944_v10  ;;  %v3259_v11 = vadd.f32 %v8938_v17, %v8941_v40  ;;  %v3269_v10 = vadd.f32 %v8938_v17, %v8946_v7 }
 0x8db   :  { %v3058_v32 = vadd.f32 %v6302_v45, %v10104_v53  ;;  %v3052_v3 = vpop.f32.mrb[103].mxu0  ;;  %v3279_v40 = vadd.f32 %v8938_v17, %v8950_v60  ;;  %v3289_v7 = vadd.f32 %v8938_v17, %v8954_v24  ;;  %v3299_v60 = vadd.f32 %v8938_v17, %v8958_v37 }
 0x8dc   :  { %v3053_v18 = vadd.f32 %v3052_v3, %v10105_v39  ;;  %6682 = vmatprep.subr.bf16.mxu0 %v6681_v21  ;;  %v3309_v24 = vadd.f32 %v8938_v17, %v8962_v35  ;;  %v3319_v37 = vadd.f32 %v8938_v17, %v8966_v46  ;;  %v3329_v35 = vadd.f32 %v8938_v17, %v8970_v8 }
 0x8dd   :  { %6684 = vmatpush3.bf16.msra.mxu0 %v6681_v21  ;;  %v3339_v45 = vadd.f32 %v8938_v17, %v8974_v61  ;;  %v3344_v46 = vadd.f32 %v8938_v17, %v8980_v25  ;;  %v3354_v8 = vadd.f32 %v8938_v17, %v8984_v48  ;;  %v3359_v61 = vadd.f32 %v8938_v17, %v8982_v1 }
 0x8de   :  { %v6685_v12 = vpack.c.bf16 %v3058_v32, %v3053_v18  ;;  %v9070_v56 = vpop.f32.mrb[104].mxu0  ;;  %v3374_v25 = vadd.f32 %v8938_v17, %v8992_v5  ;;  %v3379_v1 = vadd.f32 %v8938_v17, %v8990_v55  ;;  %v3384_v48 = vadd.f32 %v8938_v17, %v8996_v49 }
 0x8df   :  { %v3062_v22 = vpop.f32.mrb[105].mxu0  ;;  %v3389_v32 = vadd.f32 %v8938_v17, %v8994_v19  ;;  %v3394_v55 = vadd.f32 %v8938_v17, %v9000_v47  ;;  %v3399_v49 = vadd.f32 %v8938_v17, %v8998_v42  ;;  %v2951_v19 = vadd.f32 %v9050_v27, %v8546_v59 }
 0x8e0   :  { %v9073_v14 = vadd.f32 %v3062_v22, %v8193_v6  ;;  %6686 = vmatprep.subr.bf16.mxu0 %v6685_v12  ;;  %v3264_v6 = vadd.f32 %v8938_v17, %v8948_v62  ;;  %v3284_v62 = vadd.f32 %v8938_v17, %v8956_v33  ;;  %v3304_v33 = vadd.f32 %v8938_v17, %v8964_v50 }
 0x8e1   :  { %6688 = vmatpush3.bf16.msra.mxu0 %v6685_v12  ;;  %v3324_v50 = vadd.f32 %v8938_v17, %v8972_v9  ;;  %v3349_v9 = vadd.f32 %v8938_v17, %v8978_v38  ;;  %v3369_v38 = vadd.f32 %v8938_v17, %v8986_v41 }
 0x8e2   :  { %v9079_v53 = vpop.f32.mrb[106].mxu0  ;;  %5981 = vmatprep.mubr.f32.mxu1 %v9073_v14 }
 0x8e3   :  { %v9082_v3 = vpop.f32.mrb[107].mxu0 }
 0x8e4   :  { %6394 = vmatmul.mubr.msk.f32.vlgmr.msra.gmra.mrb[124].mxu0 %vm1006_vm2, %v3249_v63 }
 0x8e5   :  { %6396 = vmatprep.mubr.msk.f32.mxu0 %vm1006_vm2, %v3254_v51 }
 0x8e6   :  { %v9162_v13 = vpop.f32.mrb[108].mxu0 }
 0x8e7   :  { %10106 = vst [vmem:[#allocation15_spill] sm:$0xff] %v9162_v13  ;;  %v9164_v41 = vpop.f32.mrb[109].mxu0 }
 0x8e8   :  { %6397 = vmatmul.mubr.msk.f32.gmra.mrb[126].mxu0 %vm1006_vm2, %v3259_v11  ;;  %10107 = vst [vmem:[#allocation9_spill] sm:$0xff] %v9164_v41 }
 0x8e9   :  { %6399 = vmatprep.mubr.msk.f32.mxu0 %vm1006_vm2, %v3264_v6 }
 0x8ea   :  { %v9172_v5 = vpop.f32.mrb[110].mxu0 }
 0x8eb   :  { %10108 = vst [vmem:[#allocation16_spill] sm:$0xff] %v9172_v5  ;;  %v9174_v21 = vpop.f32.mrb[111].mxu0 }
 0x8ec   :  { %6400 = vmatmul.mubr.msk.f32.gmra.mrb[128].mxu0 %vm1006_vm2, %v3269_v10  ;;  %10109 = vst [vmem:[#allocation12_spill] sm:$0xff] %v9174_v21 }
 0x8ed   :  { %6402 = vmatprep.mubr.msk.f32.mxu0 %vm1006_vm2, %v3274_v26 }
 0x8ee   :  { %v9180_v20 = vpop.f32.mrb[112].mxu0 }
 0x8ef   :  { %10110 = vst [vmem:[#allocation36_spill] sm:$0xff] %v9180_v20  ;;  %v9184_v2 = vpop.f32.mrb[113].mxu0 }
 0x8f0   :  { %6403 = vmatmul.mubr.msk.f32.gmra.mrb[130].mxu0 %vm1006_vm2, %v3279_v40  ;;  %10111 = vst [vmem:[#allocation37_spill] sm:$0xff] %v9184_v2 }
 0x8f1   :  { %6405 = vmatprep.mubr.msk.f32.mxu0 %vm1006_vm2, %v3284_v62 }
 0x8f2   :  { %v9187_v47 = vpop.f32.mrb[114].mxu0 }
 0x8f3   :  { %10112 = vst [vmem:[#allocation38_spill] sm:$0xff] %v9187_v47  ;;  %v9189_v18 = vpop.f32.mrb[115].mxu0 }
 0x8f4   :  { %6406 = vmatmul.mubr.msk.f32.gmra.mrb[132].mxu0 %vm1006_vm2, %v3289_v7  ;;  %10113 = vst [vmem:[#allocation39_spill] sm:$0xff] %v9189_v18 }
 0x8f5   :  { %6408 = vmatprep.mubr.msk.f32.mxu0 %vm1006_vm2, %v3294_v15 }
 0x8f6   :  { %v9191_v39 = vpop.f32.mrb[116].mxu0 }
 0x8f7   :  { %10114 = vst [vmem:[#allocation40_spill] sm:$0xff] %v9191_v39  ;;  %v9193_v17 = vpop.f32.mrb[117].mxu0 }
 0x8f8   :  { %6409 = vmatmul.mubr.msk.f32.gmra.mrb[134].mxu0 %vm1006_vm2, %v3299_v60  ;;  %10115 = vst [vmem:[#allocation41_spill] sm:$0xff] %v9193_v17 }
 0x8f9   :  { %6411 = vmatprep.mubr.msk.f32.mxu0 %vm1006_vm2, %v3304_v33 }
 0x8fa   :  { %v9195_v42 = vpop.f32.mrb[118].mxu0 }
 0x8fb   :  { %10116 = vst [vmem:[#allocation42_spill] sm:$0xff] %v9195_v42  ;;  %v9197_v12 = vpop.f32.mrb[119].mxu0 }
 0x8fc   :  { %6412 = vmatmul.mubr.msk.f32.gmra.mrb[136].mxu0 %vm1006_vm2, %v3309_v24  ;;  %10117 = vst [vmem:[#allocation43_spill] sm:$0xff] %v9197_v12 }
 0x8fd   :  { %6414 = vmatprep.mubr.msk.f32.mxu0 %vm1006_vm2, %v3314_v52 }
 0x8fe   :  { %v9199_v22 = vpop.f32.mrb[120].mxu0 }
 0x8ff   :  { %10118 = vst [vmem:[#allocation44_spill] sm:$0xff] %v9199_v22  ;;  %v9201_v27 = vpop.f32.mrb[121].mxu0 }
 0x900   :  { %6415 = vmatmul.mubr.msk.f32.gmra.mrb[138].mxu0 %vm1006_vm2, %v3319_v37  ;;  %10119 = vst [vmem:[#allocation45_spill] sm:$0xff] %v9201_v27 }
 0x901   :  { %6417 = vmatprep.mubr.msk.f32.mxu0 %vm1006_vm2, %v3324_v50 }
 0x902   :  { %v9203_v44 = vpop.f32.mrb[122].mxu0 }
 0x903   :  { %10120 = vst [vmem:[#allocation46_spill] sm:$0xff] %v9203_v44  ;;  %v9205_v51 = vpop.f32.mrb[123].mxu0 }
 0x904   :  { %6418 = vmatmul.mubr.msk.f32.gmra.mrb[140].mxu0 %vm1006_vm2, %v3329_v35  ;;  %10121 = vst [vmem:[#allocation47_spill] sm:$0xff] %v9205_v51 }
 0x905   :  { %6420 = vmatprep.mubr.msk.f32.mxu0 %vm1006_vm2, %v3334_v54 }
 0x908   :  { %6421 = vmatmul.mubr.msk.f32.gmra.mrb[142].mxu0 %vm1006_vm2, %v3339_v45 }
 0x909   :  { %6423 = vmatprep.mubr.msk.f32.mxu0 %vm1006_vm2, %v3344_v46 }
 0x90c   :  { %6424 = vmatmul.mubr.msk.f32.gmra.mrb[144].mxu0 %vm1006_vm2, %v3349_v9 }
 0x90d   :  { %6426 = vmatprep.mubr.msk.f32.mxu0 %vm1006_vm2, %v3354_v8 }
 0x910   :  { %6427 = vmatmul.mubr.msk.f32.gmra.mrb[146].mxu0 %vm1006_vm2, %v3359_v61 }
 0x911   :  { %6429 = vmatprep.mubr.msk.f32.mxu0 %vm1006_vm2, %v3364_v58 }
 0x914   :  { %6430 = vmatmul.mubr.msk.f32.gmra.mrb[148].mxu0 %vm1006_vm2, %v3369_v38 }
 0x915   :  { %6432 = vmatprep.mubr.msk.f32.mxu0 %vm1006_vm2, %v3374_v25 }
 0x918   :  { %6433 = vmatmul.mubr.msk.f32.gmra.mrb[150].mxu0 %vm1006_vm2, %v3379_v1 }
 0x919   :  { %6435 = vmatprep.mubr.msk.f32.mxu0 %vm1006_vm2, %v3384_v48 }
 0x91c   :  { %6436 = vmatmul.mubr.msk.f32.gmra.mrb[152].mxu0 %vm1006_vm2, %v3389_v32 }
 0x91d   :  { %6438 = vmatprep.mubr.msk.f32.mxu0 %vm1006_vm2, %v3394_v55 }
 0x920   :  { %6439 = vmatmul.mubr.msk.f32.gmra.mrb[154].mxu0 %vm1006_vm2, %v3399_v49 }
 0x921   :  { %6473 = vmatprep.mubr.f32.mxu0 %v2951_v19 }
 0x9b7   :  { %v9207_v63 = vpop.f32.mrb[124].mxu0 }
 0x9b8   :  { %v9209_v6 = vpop.f32.mrb[125].mxu0 }
 0x9bb   :  { %v9211_v11 = vpop.f32.mrb[126].mxu0 }
 0x9bc   :  { %v9213_v26 = vpop.f32.mrb[127].mxu0 }
 0x9bf   :  { %v9215_v10 = vpop.f32.mrb[128].mxu0 }
 0x9c0   :  { %v9217_v62 = vpop.f32.mrb[129].mxu0 }
 0x9c3   :  { %v9219_v40 = vpop.f32.mrb[130].mxu0 }
 0x9c4   :  { %v9221_v15 = vpop.f32.mrb[131].mxu0 }
 0x9c7   :  { %v9223_v7 = vpop.f32.mrb[132].mxu0 }
 0x9c8   :  { %v9225_v33 = vpop.f32.mrb[133].mxu0 }
 0x9cb   :  { %v9227_v60 = vpop.f32.mrb[134].mxu0 }
 0x9cc   :  { %v9229_v52 = vpop.f32.mrb[135].mxu0 }
 0x9cf   :  { %v9231_v24 = vpop.f32.mrb[136].mxu0 }
 0x9d0   :  { %v9233_v50 = vpop.f32.mrb[137].mxu0 }
 0x9d3   :  { %v9235_v37 = vpop.f32.mrb[138].mxu0 }
 0x9d4   :  { %v9237_v54 = vpop.f32.mrb[139].mxu0 }
 0x9d7   :  { %v6419_v35 = vpop.f32.mrb[140].mxu0 }
 0x9d8   :  { %3950 = vmax.xlane.f32.xlu0 %v6419_v35  ;;  %v3837_v45 = vpop.f32.mrb[141].mxu0 }
 0x9d9   :  { %3948 = vmax.xlane.f32.xlu1 %v3837_v45 }
 0x9db   :  { %v9239_v46 = vpop.f32.mrb[142].mxu0 }
 0x9dc   :  { %3916 = vmax.xlane.f32.xlu0 %v9209_v6  ;;  %v3847_v9 = vpop.f32.mrb[143].mxu0 }
 0x9dd   :  { %3918 = vmax.xlane.f32.xlu1 %v9207_v63 }
 0x9df   :  { %v9243_v8 = vpop.f32.mrb[144].mxu0 }
 0x9e0   :  { %3952 = vmax.xlane.f32.xlu0 %v3847_v9  ;;  %v9245_v61 = vpop.f32.mrb[145].mxu0 }
 0x9e1   :  { %3954 = vmax.xlane.f32.xlu1 %v9239_v46 }
 0x9e3   :  { %v9248_v58 = vpop.f32.mrb[146].mxu0 }
 0x9e4   :  { %3920 = vmax.xlane.f32.xlu0 %v9213_v26  ;;  %v9251_v38 = vpop.f32.mrb[147].mxu0 }
 0x9e5   :  { %3922 = vmax.xlane.f32.xlu1 %v9211_v11 }
 0x9e7   :  { %v9254_v25 = vpop.f32.mrb[148].mxu0 }
 0x9e8   :  { %3956 = vmax.xlane.f32.xlu0 %v9245_v61  ;;  %v9257_v1 = vpop.f32.mrb[149].mxu0 }
 0x9e9   :  { %3958 = vmax.xlane.f32.xlu1 %v9243_v8 }
 0x9eb   :  { %v9260_v48 = vpop.f32.mrb[150].mxu0 }
 0x9ec   :  { %3924 = vmax.xlane.f32.xlu0 %v9217_v62  ;;  %v9263_v32 = vpop.f32.mrb[151].mxu0 }
 0x9ed   :  { %3926 = vmax.xlane.f32.xlu1 %v9215_v10 }
 0x9ef   :  { %v9266_v55 = vpop.f32.mrb[152].mxu0 }
 0x9f0   :  { %3960 = vmax.xlane.f32.xlu0 %v9251_v38  ;;  %v9269_v49 = vpop.f32.mrb[153].mxu0 }
 0x9f1   :  { %3962 = vmax.xlane.f32.xlu1 %v9248_v58 }
 0x9f3   :  { %v9272_v19 = vpop.f32.mrb[154].mxu0 }
 0x9f4   :  { %3928 = vmax.xlane.f32.xlu0 %v9221_v15  ;;  %v9275_v59 = vpop.f32.mrb[155].mxu0 }
 0x9f5   :  { %3930 = vmax.xlane.f32.xlu1 %v9219_v40 }
 0x9f8   :  { %3964 = vmax.xlane.f32.xlu0 %v9257_v1 }
 0x9f9   :  { %3966 = vmax.xlane.f32.xlu1 %v9254_v25 }
 0x9fc   :  { %3932 = vmax.xlane.f32.xlu0 %v9225_v33 }
 0x9fd   :  { %3934 = vmax.xlane.f32.xlu1 %v9223_v7 }
 0xa00   :  { %3968 = vmax.xlane.f32.xlu0 %v9263_v32 }
 0xa01   :  { %3970 = vmax.xlane.f32.xlu1 %v9260_v48 }
 0xa04   :  { %3936 = vmax.xlane.f32.xlu0 %v9229_v52 }
 0xa05   :  { %3938 = vmax.xlane.f32.xlu1 %v9227_v60 }
 0xa08   :  { %3972 = vmax.xlane.f32.xlu0 %v9269_v49 }
 0xa09   :  { %3974 = vmax.xlane.f32.xlu1 %v9266_v55 }
 0xa0c   :  { %3940 = vmax.xlane.f32.xlu0 %v9233_v50 }
 0xa0d   :  { %3942 = vmax.xlane.f32.xlu1 %v9231_v24 }
 0xa10   :  { %3976 = vmax.xlane.f32.xlu0 %v9275_v59 }
 0xa11   :  { %3978 = vmax.xlane.f32.xlu1 %v9272_v19 }
 0xa14   :  { %3944 = vmax.xlane.f32.xlu0 %v9237_v54 }
 0xa15   :  { %3946 = vmax.xlane.f32.xlu1 %v9235_v37 }
 0xa65   :  { %v3951_v44 = vpop.xlane.xlu0 %3950 }
 0xa66   :  { %v3997_v51 = vsub.f32 %v6419_v35, %v3951_v44  ;;  %v3949_v22 = vpop.xlane.xlu1 %3948 }
 0xa67   :  { %v3996_v27 = vsub.f32 %v3837_v45, %v3949_v22 }
 0xa68   :  { %v4046_v42 = vmul.f32 1.442695, %v3997_v51 }
 0xa69   :  { %v4044_v12 = vmul.f32 1.442695, %v3996_v27  ;;  %v3917_v39 = vpop.xlane.xlu0 %3916 }
 0xa6a   :  { %7097 = vpow2.f32 %v4046_v42  ;;  %v3980_v17 = vsub.f32 %v9209_v6, %v3917_v39  ;;  %v3919_v47 = vpop.xlane.xlu1 %3918 }
 0xa6b   :  { %7099 = vpow2.f32 %v4044_v12  ;;  %v3981_v18 = vsub.f32 %v9207_v63, %v3919_v47 }
 0xa6c   :  { %v4012_v20 = vmul.f32 1.442695, %v3980_v17 }
 0xa6d   :  { %v4014_v2 = vmul.f32 1.442695, %v3981_v18  ;;  %v3953_v5 = vpop.xlane.xlu0 %3952 }
 0xa6e   :  { %7101 = vpow2.f32 %v4012_v20  ;;  %v3998_v21 = vsub.f32 %v3847_v9, %v3953_v5  ;;  %v3955_v13 = vpop.xlane.xlu1 %3954 }
 0xa6f   :  { %7103 = vpow2.f32 %v4014_v2  ;;  %v3999_v44 = vsub.f32 %v9239_v46, %v3955_v13 }
 0xa70   :  { %v4048_v22 = vmul.f32 1.442695, %v3998_v21 }
 0xa71   :  { %v4050_v51 = vmul.f32 1.442695, %v3999_v44  ;;  %v3921_v27 = vpop.xlane.xlu0 %3920 }
 0xa72   :  { %7105 = vpow2.f32 %v4048_v22  ;;  %v3982_v42 = vsub.f32 %v9213_v26, %v3921_v27  ;;  %v3923_v39 = vpop.xlane.xlu1 %3922 }
 0xa73   :  { %7107 = vpow2.f32 %v4050_v51  ;;  %v3983_v12 = vsub.f32 %v9211_v11, %v3923_v39 }
 0xa74   :  { %v9299_v47 = vpop.eup %7097  ;;  %v4016_v18 = vmul.f32 1.442695, %v3982_v42 }
 0xa75   :  { %v9301_v17 = vpop.eup %7099  ;;  %v4018_v5 = vmul.f32 1.442695, %v3983_v12  ;;  %v3957_v20 = vpop.xlane.xlu0 %3956  ;;  %4110 = vadd.xlane.f32.xlu1 %v9299_v47 }
 0xa76   :  { %7109 = vpow2.f32 %v4016_v18  ;;  %v4000_v13 = vsub.f32 %v9245_v61, %v3957_v20  ;;  %v3959_v21 = vpop.xlane.xlu1 %3958  ;;  %4108 = vadd.xlane.f32.xlu0 %v9301_v17 }
 0xa77   :  { %7111 = vpow2.f32 %v4018_v5  ;;  %v4001_v2 = vsub.f32 %v9243_v8, %v3959_v21 }
 0xa78   :  { %v9307_v63 = vpop.eup %7101  ;;  %v4052_v6 = vmul.f32 1.442695, %v4000_v13 }
 0xa79   :  { %v9309_v11 = vpop.eup %7103  ;;  %v4054_v26 = vmul.f32 1.442695, %v4001_v2  ;;  %v3925_v35 = vpop.xlane.xlu0 %3924 }
 0xa7a   :  { %7113 = vpow2.f32 %v4052_v6  ;;  %v3984_v45 = vsub.f32 %v9217_v62, %v3925_v35  ;;  %v3927_v46 = vpop.xlane.xlu1 %3926  ;;  %4078 = vadd.xlane.f32.xlu1 %v9309_v11  ;;  %4076 = vadd.xlane.f32.xlu0 %v9307_v63 }
 0xa7b   :  { %7115 = vpow2.f32 %v4054_v26  ;;  %v3985_v9 = vsub.f32 %v9215_v10, %v3927_v46 }
 0xa7c   :  { %v9315_v61 = vpop.eup %7105  ;;  %v4020_v8 = vmul.f32 1.442695, %v3984_v45 }
 0xa7d   :  { %v9317_v44 = vpop.eup %7107  ;;  %v4022_v22 = vmul.f32 1.442695, %v3985_v9  ;;  %v3961_v51 = vpop.xlane.xlu0 %3960 }
 0xa7e   :  { %7117 = vpow2.f32 %v4020_v8  ;;  %v4002_v27 = vsub.f32 %v9251_v38, %v3961_v51  ;;  %v3963_v42 = vpop.xlane.xlu1 %3962  ;;  %4114 = vadd.xlane.f32.xlu1 %v9317_v44  ;;  %4112 = vadd.xlane.f32.xlu0 %v9315_v61 }
 0xa7f   :  { %7119 = vpow2.f32 %v4022_v22  ;;  %v4003_v62 = vsub.f32 %v9248_v58, %v3963_v42 }
 0xa80   :  { %v9323_v39 = vpop.eup %7109  ;;  %v4056_v10 = vmul.f32 1.442695, %v4002_v27 }
 0xa81   :  { %v9325_v12 = vpop.eup %7111  ;;  %v4058_v18 = vmul.f32 1.442695, %v4003_v62  ;;  %v3929_v5 = vpop.xlane.xlu0 %3928 }
 0xa82   :  { %7121 = vpow2.f32 %v4056_v10  ;;  %v3986_v20 = vsub.f32 %v9221_v15, %v3929_v5  ;;  %v3931_v13 = vpop.xlane.xlu1 %3930  ;;  %4082 = vadd.xlane.f32.xlu1 %v9325_v12  ;;  %4080 = vadd.xlane.f32.xlu0 %v9323_v39 }
 0xa83   :  { %7123 = vpow2.f32 %v4058_v18  ;;  %v3987_v38 = vsub.f32 %v9219_v40, %v3931_v13 }
 0xa84   :  { %v9331_v21 = vpop.eup %7113  ;;  %v4024_v58 = vmul.f32 1.442695, %v3986_v20 }
 0xa85   :  { %v9333_v2 = vpop.eup %7115  ;;  %v4026_v6 = vmul.f32 1.442695, %v3987_v38  ;;  %v3965_v26 = vpop.xlane.xlu0 %3964 }
 0xa86   :  { %7125 = vpow2.f32 %v4024_v58  ;;  %v4004_v35 = vsub.f32 %v9257_v1, %v3965_v26  ;;  %v3967_v45 = vpop.xlane.xlu1 %3966  ;;  %4118 = vadd.xlane.f32.xlu1 %v9333_v2  ;;  %4116 = vadd.xlane.f32.xlu0 %v9331_v21 }
 0xa87   :  { %7127 = vpow2.f32 %v4026_v6  ;;  %v4005_v15 = vsub.f32 %v9254_v25, %v3967_v45 }
 0xa88   :  { %v9339_v46 = vpop.eup %7117  ;;  %v4060_v40 = vmul.f32 1.442695, %v4004_v35 }
 0xa89   :  { %v9341_v9 = vpop.eup %7119  ;;  %v4062_v8 = vmul.f32 1.442695, %v4005_v15  ;;  %v3933_v22 = vpop.xlane.xlu0 %3932 }
 0xa8a   :  { %7129 = vpow2.f32 %v4060_v40  ;;  %v3988_v51 = vsub.f32 %v9225_v33, %v3933_v22  ;;  %v3935_v27 = vpop.xlane.xlu1 %3934  ;;  %4086 = vadd.xlane.f32.xlu1 %v9341_v9  ;;  %4084 = vadd.xlane.f32.xlu0 %v9339_v46 }
 0xa8b   :  { %7131 = vpow2.f32 %v4062_v8  ;;  %v3989_v1 = vsub.f32 %v9223_v7, %v3935_v27 }
 0xa8c   :  { %v9347_v42 = vpop.eup %7121  ;;  %v4028_v25 = vmul.f32 1.442695, %v3988_v51 }
 0xa8d   :  { %v9349_v62 = vpop.eup %7123  ;;  %v4030_v10 = vmul.f32 1.442695, %v3989_v1  ;;  %v3969_v18 = vpop.xlane.xlu0 %3968 }
 0xa8e   :  { %7133 = vpow2.f32 %v4028_v25  ;;  %v4006_v5 = vsub.f32 %v9263_v32, %v3969_v18  ;;  %v3971_v20 = vpop.xlane.xlu1 %3970  ;;  %4122 = vadd.xlane.f32.xlu1 %v9349_v62  ;;  %4120 = vadd.xlane.f32.xlu0 %v9347_v42 }
 0xa8f   :  { %7135 = vpow2.f32 %v4030_v10  ;;  %v4007_v33 = vsub.f32 %v9260_v48, %v3971_v20 }
 0xa90   :  { %v9355_v13 = vpop.eup %7125  ;;  %v4064_v7 = vmul.f32 1.442695, %v4006_v5 }
 0xa91   :  { %v9357_v38 = vpop.eup %7127  ;;  %v4066_v58 = vmul.f32 1.442695, %v4007_v33  ;;  %v3937_v6 = vpop.xlane.xlu0 %3936 }
 0xa92   :  { %7137 = vpow2.f32 %v4064_v7  ;;  %v3990_v26 = vsub.f32 %v9229_v52, %v3937_v6  ;;  %v3939_v35 = vpop.xlane.xlu1 %3938  ;;  %4090 = vadd.xlane.f32.xlu1 %v9357_v38  ;;  %4088 = vadd.xlane.f32.xlu0 %v9355_v13 }
 0xa93   :  { %7139 = vpow2.f32 %v4066_v58  ;;  %v3991_v32 = vsub.f32 %v9227_v60, %v3939_v35 }
 0xa94   :  { %v9363_v45 = vpop.eup %7129  ;;  %v4032_v48 = vmul.f32 1.442695, %v3990_v26 }
 0xa95   :  { %v9365_v15 = vpop.eup %7131  ;;  %v4034_v40 = vmul.f32 1.442695, %v3991_v32  ;;  %v3973_v8 = vpop.xlane.xlu0 %3972 }
 0xa96   :  { %7141 = vpow2.f32 %v4032_v48  ;;  %v4008_v22 = vsub.f32 %v9269_v49, %v3973_v8  ;;  %v3975_v51 = vpop.xlane.xlu1 %3974  ;;  %4126 = vadd.xlane.f32.xlu1 %v9365_v15  ;;  %4124 = vadd.xlane.f32.xlu0 %v9363_v45 }
 0xa97   :  { %7143 = vpow2.f32 %v4034_v40  ;;  %v4009_v52 = vsub.f32 %v9266_v55, %v3975_v51 }
 0xa98   :  { %v9371_v27 = vpop.eup %7133  ;;  %v4068_v60 = vmul.f32 1.442695, %v4008_v22 }
 0xa99   :  { %v9373_v1 = vpop.eup %7135  ;;  %v4070_v25 = vmul.f32 1.442695, %v4009_v52  ;;  %v3941_v10 = vpop.xlane.xlu0 %3940 }
 0xa9a   :  { %7145 = vpow2.f32 %v4068_v60  ;;  %v3992_v18 = vsub.f32 %v9233_v50, %v3941_v10  ;;  %v3943_v5 = vpop.xlane.xlu1 %3942  ;;  %4094 = vadd.xlane.f32.xlu1 %v9373_v1  ;;  %4092 = vadd.xlane.f32.xlu0 %v9371_v27 }
 0xa9b   :  { %7147 = vpow2.f32 %v4070_v25  ;;  %v3993_v49 = vsub.f32 %v9231_v24, %v3943_v5 }
 0xa9c   :  { %v9379_v20 = vpop.eup %7137  ;;  %v4036_v55 = vmul.f32 1.442695, %v3992_v18 }
 0xa9d   :  { %v9381_v33 = vpop.eup %7139  ;;  %v4038_v7 = vmul.f32 1.442695, %v3993_v49  ;;  %v3977_v58 = vpop.xlane.xlu0 %3976 }
 0xa9e   :  { %7149 = vpow2.f32 %v4036_v55  ;;  %v4010_v6 = vsub.f32 %v9275_v59, %v3977_v58  ;;  %4130 = vadd.xlane.f32.xlu1 %v9381_v33  ;;  %v3979_v50 = vpop.xlane.xlu1 %3978  ;;  %4128 = vadd.xlane.f32.xlu0 %v9379_v20 }
 0xa9f   :  { %7151 = vpow2.f32 %v4038_v7  ;;  %v4011_v26 = vsub.f32 %v9272_v19, %v3979_v50 }
 0xaa0   :  { %v9387_v35 = vpop.eup %7141  ;;  %v4072_v24 = vmul.f32 1.442695, %v4010_v6 }
 0xaa1   :  { %v9389_v32 = vpop.eup %7143  ;;  %v4074_v48 = vmul.f32 1.442695, %v4011_v26  ;;  %v3945_v40 = vpop.xlane.xlu0 %3944 }
 0xaa2   :  { %7153 = vpow2.f32 %v4072_v24  ;;  %v3994_v8 = vsub.f32 %v9237_v54, %v3945_v40  ;;  %4098 = vadd.xlane.f32.xlu1 %v9389_v32  ;;  %v3947_v59 = vpop.xlane.xlu1 %3946  ;;  %4096 = vadd.xlane.f32.xlu0 %v9387_v35 }
 0xaa3   :  { %7155 = vpow2.f32 %v4074_v48  ;;  %v3995_v22 = vsub.f32 %v9235_v37, %v3947_v59 }
 0xaa4   :  { %v9395_v51 = vpop.eup %7145  ;;  %v4040_v19 = vmul.f32 1.442695, %v3994_v8 }
 0xaa5   :  { %v9397_v52 = vpop.eup %7147  ;;  %v4042_v60 = vmul.f32 1.442695, %v3995_v22 }
 0xaa6   :  { %7157 = vpow2.f32 %v4040_v19  ;;  %4134 = vadd.xlane.f32.xlu1 %v9397_v52  ;;  %4132 = vadd.xlane.f32.xlu0 %v9395_v51 }
 0xaa7   :  { %7159 = vpow2.f32 %v4042_v60 }
 0xaa8   :  { %v9401_v54 = vpop.eup %7149 }
 0xaa9   :  { %v9403_v25 = vpop.eup %7151 }
 0xaaa   :  { %4102 = vadd.xlane.f32.xlu1 %v9403_v25  ;;  %4100 = vadd.xlane.f32.xlu0 %v9401_v54 }
 0xaac   :  { %v9407_v37 = vpop.eup %7153 }
 0xaad   :  { %v9409_v10 = vpop.eup %7155 }
 0xaae   :  { %4138 = vadd.xlane.f32.xlu1 %v9409_v10  ;;  %4136 = vadd.xlane.f32.xlu0 %v9407_v37 }
 0xab0   :  { %v9413_v18 = vpop.eup %7157 }
 0xab1   :  { %v9415_v5 = vpop.eup %7159 }
 0xab2   :  { %4106 = vadd.xlane.f32.xlu1 %v9415_v5  ;;  %4104 = vadd.xlane.f32.xlu0 %v9413_v18 }
 0xb02   :  { %v4111_v49 = vpop.xlane.xlu1 %4110 }
 0xb03   :  { %7161 = vrcp.f32 %v4111_v49  ;;  %v4109_v55 = vpop.xlane.xlu0 %4108 }
 0xb04   :  { %7163 = vrcp.f32 %v4109_v55 }
 0xb07   :  { %v4079_v7 = vpop.xlane.xlu1 %4078  ;;  %v4077_v58 = vpop.xlane.xlu0 %4076 }
 0xb08   :  { %7165 = vrcp.f32 %v4079_v7 }
 0xb09   :  { %7167 = vrcp.f32 %v4077_v58 }
 0xb0b   :  { %v4115_v6 = vpop.xlane.xlu1 %4114  ;;  %v4113_v50 = vpop.xlane.xlu0 %4112 }
 0xb0c   :  { %7169 = vrcp.f32 %v4115_v6 }
 0xb0d   :  { %v7162_v26 = vpop.eup %7161  ;;  %7171 = vrcp.f32 %v4113_v50 }
 0xb0e   :  { %v7164_v24 = vpop.eup %7163  ;;  %v4189_v48 = vmul.f32 %v7162_v26, %v9299_v47 }
 0xb0f   :  { %v4083_v40 = vpop.xlane.xlu1 %4082  ;;  %v4081_v8 = vpop.xlane.xlu0 %4080  ;;  %v4188_v59 = vmul.f32 %v7164_v24, %v9301_v17 }
 0xb10   :  { %7173 = vrcp.f32 %v4083_v40 }
 0xb11   :  { %7175 = vrcp.f32 %v4081_v8  ;;  %v6689_v22 = vpack.c.bf16 %v4189_v48, %v4188_v59 }
 0xb12   :  { %v7166_v19 = vpop.eup %7165 }
 0xb13   :  { %v7168_v60 = vpop.eup %7167  ;;  %v4119_v49 = vpop.xlane.xlu1 %4118  ;;  %6690 = vmatprep.subr.bf16.mxu1 %v6689_v22  ;;  %v4173_v7 = vmul.f32 %v7166_v19, %v9309_v11 }
 0xb14   :  { %v4117_v55 = vpop.xlane.xlu0 %4116  ;;  %7177 = vrcp.f32 %v4119_v49  ;;  %v4172_v58 = vmul.f32 %v7168_v60, %v9307_v63 }
 0xb15   :  { %7179 = vrcp.f32 %v4117_v55 }
 0xb16   :  { %v7170_v6 = vpop.eup %7169  ;;  %v6691_v47 = vpack.c.bf16 %v4173_v7, %v4172_v58 }
 0xb17   :  { %v7172_v50 = vpop.eup %7171  ;;  %v4087_v26 = vpop.xlane.xlu1 %4086  ;;  %v4191_v17 = vmul.f32 %v7170_v6, %v9317_v44 }
 0xb18   :  { %v4085_v41 = vpop.xlane.xlu0 %4084  ;;  %7181 = vrcp.f32 %v4087_v26  ;;  %6692 = vmatpush3.bf16.xpose.msra.mxu1 %v6691_v47  ;;  %v4190_v24 = vmul.f32 %v7172_v50, %v9315_v61 }
 0xb19   :  { %7183 = vrcp.f32 %v4085_v41 }
 0xb1a   :  { %v7174_v48 = vpop.eup %7173  ;;  %v6693_v40 = vpack.c.bf16 %v4191_v17, %v4190_v24 }
 0xb1b   :  { %v7176_v8 = vpop.eup %7175  ;;  %v4123_v11 = vpop.xlane.xlu1 %4122  ;;  %v4175_v63 = vmul.f32 %v7174_v48, %v9325_v12 }
 0xb1c   :  { %v4121_v59 = vpop.xlane.xlu0 %4120  ;;  %7185 = vrcp.f32 %v4123_v11  ;;  %6694 = vmatprep.subr.bf16.mxu1 %v6693_v40  ;;  %v4174_v22 = vmul.f32 %v7176_v8, %v9323_v39 }
 0xb1d   :  { %7187 = vrcp.f32 %v4121_v59 }
 0xb1e   :  { %v7178_v19 = vpop.eup %7177  ;;  %v6695_v60 = vpack.c.bf16 %v4175_v63, %v4174_v22 }
 0xb1f   :  { %v7180_v44 = vpop.eup %7179  ;;  %v4091_v49 = vpop.xlane.xlu1 %4090  ;;  %v4193_v61 = vmul.f32 %v7178_v19, %v9333_v2 }
 0xb20   :  { %v4089_v55 = vpop.xlane.xlu0 %4088  ;;  %7189 = vrcp.f32 %v4091_v49  ;;  %6696 = vmatpush3.bf16.xpose.msra.mxu1 %v6695_v60  ;;  %v4192_v41 = vmul.f32 %v7180_v44, %v9331_v21 }
 0xb21   :  { %7191 = vrcp.f32 %v4089_v55 }
 0xb22   :  { %v7182_v7 = vpop.eup %7181  ;;  %v6697_v58 = vpack.c.bf16 %v4193_v61, %v4192_v41 }
 0xb23   :  { %v7184_v12 = vpop.eup %7183  ;;  %v4127_v6 = vpop.xlane.xlu1 %4126  ;;  %v4177_v39 = vmul.f32 %v7182_v7, %v9341_v9 }
 0xb24   :  { %v4125_v47 = vpop.xlane.xlu0 %4124  ;;  %7193 = vrcp.f32 %v4127_v6  ;;  %6698 = vmatprep.subr.bf16.mxu1 %v6697_v58  ;;  %v4176_v50 = vmul.f32 %v7184_v12, %v9339_v46 }
 0xb25   :  { %7195 = vrcp.f32 %v4125_v47 }
 0xb26   :  { %v7186_v26 = vpop.eup %7185  ;;  %v6699_v17 = vpack.c.bf16 %v4177_v39, %v4176_v50 }
 0xb27   :  { %v7188_v2 = vpop.eup %7187  ;;  %v4095_v24 = vpop.xlane.xlu1 %4094  ;;  %v4195_v21 = vmul.f32 %v7186_v26, %v9349_v62 }
 0xb28   :  { %v4093_v48 = vpop.xlane.xlu0 %4092  ;;  %7197 = vrcp.f32 %v4095_v24  ;;  %6700 = vmatpush3.bf16.xpose.msra.mxu1 %v6699_v17  ;;  %v4194_v40 = vmul.f32 %v7188_v2, %v9347_v42 }
 0xb29   :  { %7199 = vrcp.f32 %v4093_v48 }
 0xb2a   :  { %v7190_v8 = vpop.eup %7189  ;;  %v6701_v11 = vpack.c.bf16 %v4195_v21, %v4194_v40 }
 0xb2b   :  { %v7192_v9 = vpop.eup %7191  ;;  %v4131_v59 = vpop.xlane.xlu1 %4130  ;;  %v4179_v46 = vmul.f32 %v7190_v8, %v9357_v38 }
 0xb2c   :  { %v4129_v63 = vpop.xlane.xlu0 %4128  ;;  %7201 = vrcp.f32 %v4131_v59  ;;  %6702 = vmatprep.subr.bf16.mxu1 %v6701_v11  ;;  %v4178_v22 = vmul.f32 %v7192_v9, %v9355_v13 }
 0xb2d   :  { %7203 = vrcp.f32 %v4129_v63 }
 0xb2e   :  { %v7194_v19 = vpop.eup %7193  ;;  %v6703_v60 = vpack.c.bf16 %v4179_v46, %v4178_v22 }
 0xb2f   :  { %v7196_v62 = vpop.eup %7195  ;;  %v4099_v44 = vpop.xlane.xlu1 %4098  ;;  %v4197_v42 = vmul.f32 %v7194_v19, %v9365_v15 }
 0xb30   :  { %v4097_v49 = vpop.xlane.xlu0 %4096  ;;  %7205 = vrcp.f32 %v4099_v44  ;;  %6704 = vmatpush3.bf16.xpose.msra.mxu1 %v6703_v60  ;;  %v4196_v55 = vmul.f32 %v7196_v62, %v9363_v45 }
 0xb31   :  { %7207 = vrcp.f32 %v4097_v49 }
 0xb32   :  { %v7198_v61 = vpop.eup %7197  ;;  %v6705_v41 = vpack.c.bf16 %v4197_v42, %v4196_v55 }
 0xb33   :  { %v7200_v38 = vpop.eup %7199  ;;  %v4135_v7 = vpop.xlane.xlu1 %4134  ;;  %v4181_v13 = vmul.f32 %v7198_v61, %v9373_v1 }
 0xb34   :  { %v4133_v58 = vpop.xlane.xlu0 %4132  ;;  %7209 = vrcp.f32 %v4135_v7  ;;  %6706 = vmatprep.subr.bf16.mxu1 %v6705_v41  ;;  %v4180_v12 = vmul.f32 %v7200_v38, %v9371_v27 }
 0xb35   :  { %7211 = vrcp.f32 %v4133_v58 }
 0xb36   :  { %v7202_v6 = vpop.eup %7201  ;;  %v6707_v47 = vpack.c.bf16 %v4181_v13, %v4180_v12  ;;  %v10123_v12 = vpack.c.bf16 %v9022_v36, %v9019_v0  ;;  %v7388_v0 = vld [vmem:[%s9997_s8 + $0x10] sm:$0xff]  ;;  %v7389_v36 = vld [vmem:[%s9997_s8 + $0x18] sm:$0xff] }
 0xb37   :  { %v7204_v15 = vpop.eup %7203  ;;  %v4103_v39 = vpop.xlane.xlu1 %4102  ;;  %v4199_v45 = vmul.f32 %v7202_v6, %v9381_v33  ;;  %v10124_v6 = vpack.c.bf16 %v9044_v57, %v9041_v31  ;;  %v10127_v57 = vld [vmem:[#allocation15_spill] sm:$0xff] }
 0xb38   :  { %v4101_v50 = vpop.xlane.xlu0 %4100  ;;  %7213 = vrcp.f32 %v4103_v39  ;;  %6708 = vmatpush3.bf16.xpose.msra.mxu1 %v6707_v47  ;;  %v4198_v26 = vmul.f32 %v7204_v15, %v9379_v20  ;;  %v10128_v15 = vld [vmem:[#allocation12_spill] sm:$0xff] }
 0xb39   :  { %7215 = vrcp.f32 %v4101_v50  ;;  %v10129_v50 = vld [vmem:[#allocation16_spill] sm:$0xff] }
 0xb3a   :  { %v7206_v17 = vpop.eup %7205  ;;  %v6709_v2 = vpack.c.bf16 %v4199_v45, %v4198_v26  ;;  %v10130_v26 = vld [vmem:[#allocation37_spill] sm:$0xff] }
 0xb3b   :  { %v7208_v1 = vpop.eup %7207  ;;  %v4139_v24 = vpop.xlane.xlu1 %4138  ;;  %v4183_v27 = vmul.f32 %v7206_v17, %v9389_v32 }
 0xb3c   :  { %v4137_v48 = vpop.xlane.xlu0 %4136  ;;  %7217 = vrcp.f32 %v4139_v24  ;;  %6710 = vmatprep.subr.bf16.mxu1 %v6709_v2  ;;  %v4182_v21 = vmul.f32 %v7208_v1, %v9387_v35  ;;  %v10131_v2 = vld [vmem:[#allocation36_spill] sm:$0xff]  ;;  %v10132_v24 = vld [vmem:[#allocation39_spill] sm:$0xff] }
 0xb3d   :  { %7219 = vrcp.f32 %v4137_v48 }
 0xb3e   :  { %v7210_v40 = vpop.eup %7209  ;;  %v6711_v8 = vpack.c.bf16 %v4183_v27, %v4182_v21  ;;  %v10133_v27 = vld [vmem:[#allocation38_spill] sm:$0xff] }
 0xb3f   :  { %v7212_v33 = vpop.eup %7211  ;;  %v4107_v11 = vpop.xlane.xlu1 %4106  ;;  %v4201_v20 = vmul.f32 %v7210_v40, %v9397_v52  ;;  %v10134_v40 = vld [vmem:[#allocation41_spill] sm:$0xff] }
 0xb40   :  { %v4105_v9 = vpop.xlane.xlu0 %4104  ;;  %7221 = vrcp.f32 %v4107_v11  ;;  %6712 = vmatpush3.bf16.xpose.msra.mxu1 %v6711_v8  ;;  %v4200_v59 = vmul.f32 %v7212_v33, %v9395_v51  ;;  %v10135_v33 = vld [vmem:[#allocation40_spill] sm:$0xff] }
 0xb41   :  { %7223 = vrcp.f32 %v4105_v9  ;;  %v10136_v9 = vld [vmem:[#allocation43_spill] sm:$0xff] }
 0xb42   :  { %v7214_v63 = vpop.eup %7213  ;;  %v6713_v46 = vpack.c.bf16 %v4201_v20, %v4200_v59  ;;  %v10137_v59 = vld [vmem:[#allocation42_spill] sm:$0xff] }
 0xb43   :  { %v7216_v32 = vpop.eup %7215  ;;  %v4185_v22 = vmul.f32 %v7214_v63, %v9403_v25 }
 0xb44   :  { %6714 = vmatprep.subr.bf16.mxu1 %v6713_v46  ;;  %v4184_v35 = vmul.f32 %v7216_v32, %v9401_v54  ;;  %v3068_v54 = vadd.f32 %v9070_v56, %v8208_v43  ;;  %v10138_v46 = vld [vmem:[#allocation45_spill] sm:$0xff] }
 0xb46   :  { %v7218_v19 = vpop.eup %7217  ;;  %v6715_v60 = vpack.c.bf16 %v4185_v22, %v4184_v35  ;;  %v10139_v22 = vld [vmem:[#allocation44_spill] sm:$0xff] }
 0xb47   :  { %v7220_v62 = vpop.eup %7219  ;;  %v4203_v44 = vmul.f32 %v7218_v19, %v9409_v10  ;;  %v3073_v10 = vadd.f32 %v9082_v3, %v8210_v29  ;;  %v10140_v19 = vld [vmem:[#allocation47_spill] sm:$0xff] }
 0xb48   :  { %6716 = vmatpush3.bf16.xpose.msra.mxu1 %v6715_v60  ;;  %v4202_v52 = vmul.f32 %v7220_v62, %v9407_v37  ;;  %v3078_v37 = vadd.f32 %v9079_v53, %v8214_v30  ;;  %v10122_v30 = vpack.c.bf16 %v9028_v16, %v9025_v34  ;;  %v7386_v53 = vld [vmem:[%s9997_s8] sm:$0xff]  ;;  %v7387_v34 = vld [vmem:[%s9997_s8 + $0x8] sm:$0xff]  ;;  %v10125_v16 = vpack.c.bf16 %v9038_v28, %v9035_v4 }
 0xb49   :  { %v7390_v4 = vld [vmem:[%s9995_s6 + $0x1] ss:$0 sm:$0xff]  ;;  %v10141_v62 = vld [vmem:[#allocation46_spill] sm:$0xff] }
 0xb4a   :  { %v7222_v49 = vpop.eup %7221  ;;  %v6717_v42 = vpack.c.bf16 %v4203_v44, %v4202_v52  ;;  %v10126_v28 = vld [vmem:[#allocation9_spill] sm:$0xff]  ;;  %v3522_v47 = vadd.f32 %v7390_v4, %v10127_v57  ;;  %v3527_v39 = vadd.f32 %v7390_v4, %v10128_v15  ;;  %v3532_v45 = vadd.f32 %v7390_v4, %v10129_v50  ;;  %v10142_v52 = vld [vmem:[#allocation24_spill] sm:$0xff] }
 0xb4b   :  { %v7224_v51 = vpop.eup %7223  ;;  %v4187_v55 = vmul.f32 %v7222_v49, %v9415_v5  ;;  %v3517_v31 = vadd.f32 %v7390_v4, %v10126_v28  ;;  %v3537_v17 = vadd.f32 %v7390_v4, %v10130_v26  ;;  %v3542_v1 = vadd.f32 %v7390_v4, %v10131_v2  ;;  %v10143_v49 = vld [vmem:[#allocation10_spill] sm:$0xff] }
 0xb4c   :  { %6718 = vmatprep.subr.bf16.mxu1 %v6717_v42  ;;  %v4186_v61 = vmul.f32 %v7224_v51, %v9413_v18  ;;  %v3547_v48 = vadd.f32 %v7390_v4, %v10132_v24  ;;  %v3552_v21 = vadd.f32 %v7390_v4, %v10133_v27  ;;  %v3557_v8 = vadd.f32 %v7390_v4, %v10134_v40 }
 0xb4d   :  { %v3562_v11 = vadd.f32 %v7390_v4, %v10135_v33  ;;  %v3567_v20 = vadd.f32 %v7390_v4, %v10136_v9  ;;  %v3572_v63 = vadd.f32 %v7390_v4, %v10137_v59  ;;  %v3577_v32 = vadd.f32 %v7390_v4, %v10138_v46 }
 0xb4e   :  { %v6719_v25 = vpack.c.bf16 %v4187_v55, %v4186_v61  ;;  %v3582_v35 = vadd.f32 %v7390_v4, %v10139_v22  ;;  %v3587_v60 = vadd.f32 %v7390_v4, %v10140_v19  ;;  %v3592_v44 = vadd.f32 %v7390_v4, %v10141_v62 }
 0xb4f   :  { %v2953_v42 = vadd.f32 %v10143_v49, %v10142_v52 }
 0xb50   :  { %6720 = vmatpush3.bf16.xpose.msra.mxu1 %v6719_v25 }
 0xb57   :  { %5982 = vmatmul.mubr.f32.vlgmr.msra.gmra.mrb[116].mxu1 %v9073_v14 }
 0xb58   :  { %5983 = vmatprep.mubr.f32.mxu1 %v3068_v54 }
 0xb5b   :  { %5984 = vmatmul.mubr.f32.gmra.mrb[118].mxu1 %v3068_v54 }
 0xb5c   :  { %5985 = vmatprep.mubr.f32.mxu1 %v3073_v10 }
 0xb5f   :  { %5986 = vmatmul.mubr.f32.gmra.mrb[120].mxu1 %v3073_v10 }
 0xb60   :  { %5987 = vmatprep.mubr.f32.mxu1 %v3078_v37 }
 0xb63   :  { %5988 = vmatmul.mubr.f32.gmra.mrb[122].mxu1 %v3078_v37 }
 0xb64   :  { %4357 = vmatprep.mubr.f32.mxu1 %v10048_v23 }
 0xc2a   :  { %v4270_v18 = vpop.f32.mrb[116].mxu1 }
 0xc2b   :  { %v4272_v5 = vpop.f32.mrb[117].mxu1 }
 0xc2e   :  { %v4276_v41 = vpop.f32.mrb[118].mxu1 }
 0xc2f   :  { %v6723_v43 = vpack.c.bf16 %v4276_v41, %v4270_v18  ;;  %v4278_v56 = vpop.f32.mrb[119].mxu1 }
 0xc30   :  { %v6721_v14 = vpack.c.bf16 %v4278_v56, %v4272_v5 }
 0xc32   :  { %v4282_v38 = vpop.f32.mrb[120].mxu1  ;;  %6722 = vmatprep.subr.bf16.mxu1 %v6721_v14 }
 0xc33   :  { %v4284_v7 = vpop.f32.mrb[121].mxu1  ;;  %6724 = vmatpush1.bf16.msra.mxu1 %v6723_v43 }
 0xc36   :  { %v4288_v29 = vpop.f32.mrb[122].mxu1 }
 0xc37   :  { %v6727_v3 = vpack.c.bf16 %v4288_v29, %v4282_v38  ;;  %v4290_v58 = vpop.f32.mrb[123].mxu1 }
 0xc38   :  { %v6725_v13 = vpack.c.bf16 %v4290_v58, %v4284_v7 }
 0xc3a   :  { %6726 = vmatprep.subr.bf16.mxu1 %v6725_v13 }
 0xc3b   :  { %6728 = vmatpush1.bf16.msra.mxu1 %v6727_v3 }
 0xc3c   :  { %6730 = vmatprep.subr.bf16.mxu1 %v10122_v30 }
 0xc3e   :  { %5635 = vmatmul.mubr.msk.f32.vlgmr.msra.gmra.mrb[124].mxu1 %vm1006_vm2, %v7386_v53 }
 0xc3f   :  { %6732 = vmatpush1.bf16.msra.mxu1 %v10123_v12  ;;  %4363 = vmatprep.mubr.f32.mxu1 %v10048_v23 }
 0xc40   :  { %6734 = vmatprep.subr.bf16.mxu1 %v10124_v6 }
 0xc42   :  { %5636 = vmatmul.mubr.msk.f32.gmra.mrb[126].mxu1 %vm1006_vm2, %v7387_v34 }
 0xc43   :  { %6736 = vmatpush1.bf16.msra.mxu1 %v10125_v16  ;;  %4369 = vmatprep.mubr.f32.mxu1 %v10048_v23 }
 0xc46   :  { %5637 = vmatmul.mubr.msk.f32.gmra.mrb[128].mxu1 %vm1006_vm2, %v7388_v0 }
 0xc47   :  { %4375 = vmatprep.mubr.f32.mxu1 %v10048_v23 }
 0xc4a   :  { %5638 = vmatmul.mubr.msk.f32.gmra.mrb[130].mxu1 %vm1006_vm2, %v7389_v36 }
 0xc4b   :  { %4494 = vmatprep.mubr.f32.mxu1 %v10048_v23 }
 0xc4e   :  { %5639 = vmatmul.mubr.msk.f32.vlgmr.msra.gmra.mrb[132].mxu1 %vm1006_vm2, %v3517_v31 }
 0xc4f   :  { %4500 = vmatprep.mubr.f32.mxu1 %v10048_v23 }
 0xc52   :  { %5640 = vmatmul.mubr.msk.f32.gmra.mrb[134].mxu1 %vm1006_vm2, %v3522_v47 }
 0xc53   :  { %4506 = vmatprep.mubr.f32.mxu1 %v10048_v23 }
 0xc56   :  { %5641 = vmatmul.mubr.msk.f32.gmra.mrb[136].mxu1 %vm1006_vm2, %v3527_v39 }
 0xc57   :  { %4512 = vmatprep.mubr.f32.mxu1 %v10048_v23 }
 0xc5a   :  { %5642 = vmatmul.mubr.msk.f32.gmra.mrb[138].mxu1 %vm1006_vm2, %v3532_v45 }
 0xc5b   :  { %4518 = vmatprep.mubr.f32.mxu1 %v10048_v23 }
 0xc5e   :  { %5643 = vmatmul.mubr.msk.f32.gmra.mrb[140].mxu1 %vm1006_vm2, %v3537_v17 }
 0xc5f   :  { %4524 = vmatprep.mubr.f32.mxu1 %v10048_v23 }
 0xc62   :  { %5644 = vmatmul.mubr.msk.f32.gmra.mrb[142].mxu1 %vm1006_vm2, %v3542_v1 }
 0xc63   :  { %4530 = vmatprep.mubr.f32.mxu1 %v10048_v23 }
 0xc66   :  { %5645 = vmatmul.mubr.msk.f32.gmra.mrb[144].mxu1 %vm1006_vm2, %v3547_v48 }
 0xc67   :  { %4536 = vmatprep.mubr.f32.mxu1 %v10048_v23 }
 0xc6a   :  { %5646 = vmatmul.mubr.msk.f32.gmra.mrb[146].mxu1 %vm1006_vm2, %v3552_v21 }
 0xc6b   :  { %4542 = vmatprep.mubr.f32.mxu1 %v10048_v23 }
 0xc6e   :  { %5647 = vmatmul.mubr.msk.f32.gmra.mrb[148].mxu1 %vm1006_vm2, %v3557_v8 }
 0xc6f   :  { %4548 = vmatprep.mubr.f32.mxu1 %v10048_v23 }
 0xc72   :  { %5648 = vmatmul.mubr.msk.f32.gmra.mrb[150].mxu1 %vm1006_vm2, %v3562_v11 }
 0xc73   :  { %4554 = vmatprep.mubr.f32.mxu1 %v10048_v23 }
 0xc76   :  { %5649 = vmatmul.mubr.msk.f32.gmra.mrb[152].mxu1 %vm1006_vm2, %v3567_v20 }
 0xc77   :  { %4560 = vmatprep.mubr.f32.mxu1 %v10048_v23 }
 0xc7a   :  { %5650 = vmatmul.mubr.msk.f32.gmra.mrb[154].mxu1 %vm1006_vm2, %v3572_v63 }
 0xc7b   :  { %4566 = vmatprep.mubr.f32.mxu1 %v10048_v23 }
 0xc7e   :  { %5651 = vmatmul.mubr.msk.f32.gmra.mrb[156].mxu1 %vm1006_vm2, %v3577_v32 }
 0xc7f   :  { %4572 = vmatprep.mubr.f32.mxu1 %v10048_v23 }
 0xc82   :  { %5652 = vmatmul.mubr.msk.f32.gmra.mrb[158].mxu1 %vm1006_vm2, %v3582_v35 }
 0xc83   :  { %4578 = vmatprep.mubr.f32.mxu1 %v10048_v23 }
 0xc86   :  { %5653 = vmatmul.mubr.msk.f32.gmra.mrb[160].mxu1 %vm1006_vm2, %v3587_v60 }
 0xc87   :  { %4584 = vmatprep.mubr.f32.mxu1 %v10048_v23 }
 0xc8a   :  { %5654 = vmatmul.mubr.msk.f32.gmra.mrb[162].mxu1 %vm1006_vm2, %v3592_v44 }
 0xc8b   :  { %6525 = vmatprep.mubr.f32.mxu1 %v2953_v42 }
 0xd11   :  { %v9543_v51 = vpop.f32.mrb[124].mxu1 }
 0xd12   :  { %v9545_v55 = vpop.f32.mrb[125].mxu1 }
 0xd15   :  { %v9547_v61 = vpop.f32.mrb[126].mxu1 }
 0xd16   :  { %v9549_v25 = vpop.f32.mrb[127].mxu1 }
 0xd19   :  { %v9551_v54 = vpop.f32.mrb[128].mxu1 }
 0xd1a   :  { %v9553_v10 = vpop.f32.mrb[129].mxu1 }
 0xd1d   :  { %v9555_v23 = vpop.f32.mrb[130].mxu1 }
 0xd1e   :  { %v9557_v37 = vpop.f32.mrb[131].mxu1 }
 0xd21   :  { %v9559_v18 = vpop.f32.mrb[132].mxu1 }
 0xd22   :  { %4591 = vmax.xlane.f32.xlu0 %v9559_v18  ;;  %v9562_v5 = vpop.f32.mrb[133].mxu1 }
 0xd25   :  { %v9564_v41 = vpop.f32.mrb[134].mxu1 }
 0xd26   :  { %4905 = vmax.xlane.f32.xlu0 %v9562_v5  ;;  %4593 = vmax.xlane.f32.xlu1 %v9564_v41  ;;  %v9568_v43 = vpop.f32.mrb[135].mxu1 }
 0xd29   :  { %v9570_v56 = vpop.f32.mrb[136].mxu1 }
 0xd2a   :  { %4907 = vmax.xlane.f32.xlu1 %v9568_v43  ;;  %4595 = vmax.xlane.f32.xlu0 %v9570_v56  ;;  %v9574_v14 = vpop.f32.mrb[137].mxu1 }
 0xd2d   :  { %v9576_v38 = vpop.f32.mrb[138].mxu1 }
 0xd2e   :  { %4909 = vmax.xlane.f32.xlu0 %v9574_v14  ;;  %4597 = vmax.xlane.f32.xlu1 %v9576_v38  ;;  %v9580_v7 = vpop.f32.mrb[139].mxu1 }
 0xd31   :  { %v9582_v29 = vpop.f32.mrb[140].mxu1 }
 0xd32   :  { %4911 = vmax.xlane.f32.xlu1 %v9580_v7  ;;  %4599 = vmax.xlane.f32.xlu0 %v9582_v29  ;;  %v9586_v3 = vpop.f32.mrb[141].mxu1 }
 0xd35   :  { %v9588_v58 = vpop.f32.mrb[142].mxu1 }
 0xd36   :  { %4913 = vmax.xlane.f32.xlu0 %v9586_v3  ;;  %4601 = vmax.xlane.f32.xlu1 %v9588_v58  ;;  %v9592_v13 = vpop.f32.mrb[143].mxu1 }
 0xd39   :  { %v9594_v30 = vpop.f32.mrb[144].mxu1 }
 0xd3a   :  { %4915 = vmax.xlane.f32.xlu1 %v9592_v13  ;;  %4603 = vmax.xlane.f32.xlu0 %v9594_v30  ;;  %v9598_v53 = vpop.f32.mrb[145].mxu1 }
 0xd3d   :  { %v9600_v12 = vpop.f32.mrb[146].mxu1 }
 0xd3e   :  { %4917 = vmax.xlane.f32.xlu0 %v9598_v53  ;;  %4605 = vmax.xlane.f32.xlu1 %v9600_v12  ;;  %v9604_v6 = vpop.f32.mrb[147].mxu1 }
 0xd41   :  { %v9606_v34 = vpop.f32.mrb[148].mxu1 }
 0xd42   :  { %4919 = vmax.xlane.f32.xlu1 %v9604_v6  ;;  %4607 = vmax.xlane.f32.xlu0 %v9606_v34  ;;  %v9610_v16 = vpop.f32.mrb[149].mxu1 }
 0xd45   :  { %v9612_v0 = vpop.f32.mrb[150].mxu1 }
 0xd46   :  { %4921 = vmax.xlane.f32.xlu0 %v9610_v16  ;;  %4609 = vmax.xlane.f32.xlu1 %v9612_v0  ;;  %v9616_v36 = vpop.f32.mrb[151].mxu1 }
 0xd49   :  { %v9618_v4 = vpop.f32.mrb[152].mxu1 }
 0xd4a   :  { %4923 = vmax.xlane.f32.xlu1 %v9616_v36  ;;  %4611 = vmax.xlane.f32.xlu0 %v9618_v4  ;;  %v9622_v28 = vpop.f32.mrb[153].mxu1 }
 0xd4d   :  { %v9624_v31 = vpop.f32.mrb[154].mxu1 }
 0xd4e   :  { %4925 = vmax.xlane.f32.xlu0 %v9622_v28  ;;  %4613 = vmax.xlane.f32.xlu1 %v9624_v31  ;;  %v9628_v57 = vpop.f32.mrb[155].mxu1 }
 0xd51   :  { %v9630_v47 = vpop.f32.mrb[156].mxu1 }
 0xd52   :  { %4927 = vmax.xlane.f32.xlu1 %v9628_v57  ;;  %4615 = vmax.xlane.f32.xlu0 %v9630_v47  ;;  %v9634_v15 = vpop.f32.mrb[157].mxu1 }
 0xd55   :  { %v9636_v39 = vpop.f32.mrb[158].mxu1 }
 0xd56   :  { %4617 = vmax.xlane.f32.xlu1 %v9636_v39  ;;  %v9639_v50 = vpop.f32.mrb[159].mxu1 }
 0xd59   :  { %v9641_v45 = vpop.f32.mrb[160].mxu1 }
 0xd5a   :  { %4619 = vmax.xlane.f32.xlu0 %v9641_v45  ;;  %v9644_v26 = vpop.f32.mrb[161].mxu1 }
 0xd5d   :  { %v9646_v17 = vpop.f32.mrb[162].mxu1 }
 0xd5e   :  { %4929 = vmax.xlane.f32.xlu0 %v9634_v15  ;;  %4621 = vmax.xlane.f32.xlu1 %v9646_v17  ;;  %v9650_v2 = vpop.f32.mrb[163].mxu1 }
 0xd62   :  { %4933 = vmax.xlane.f32.xlu0 %v9644_v26  ;;  %4931 = vmax.xlane.f32.xlu1 %v9639_v50 }
 0xd66   :  { %4935 = vmax.xlane.f32.xlu1 %v9650_v2 }
 0xdaf   :  { %v4592_v1 = vpop.xlane.xlu0 %4591 }
 0xdb0   :  { %v4623_v24 = vsub.f32 %v9559_v18, %v4592_v1 }
 0xdb2   :  { %v4639_v48 = vmul.f32 1.442695, %v4623_v24 }
 0xdb3   :  { %v4906_v27 = vpop.xlane.xlu0 %4905  ;;  %v4594_v21 = vpop.xlane.xlu1 %4593 }
 0xdb4   :  { %7225 = vpow2.f32 %v4639_v48  ;;  %v4937_v40 = vsub.f32 %v9562_v5, %v4906_v27  ;;  %v4624_v8 = vsub.f32 %v9564_v41, %v4594_v21 }
 0xdb6   :  { %v4953_v33 = vmul.f32 1.442695, %v4937_v40  ;;  %v4641_v11 = vmul.f32 1.442695, %v4624_v8 }
 0xdb7   :  { %v4908_v9 = vpop.xlane.xlu1 %4907  ;;  %v4596_v20 = vpop.xlane.xlu0 %4595 }
 0xdb8   :  { %7227 = vpow2.f32 %v4953_v33  ;;  %v4938_v59 = vsub.f32 %v9568_v43, %v4908_v9  ;;  %v4625_v63 = vsub.f32 %v9570_v56, %v4596_v20 }
 0xdb9   :  { %7229 = vpow2.f32 %v4641_v11 }
 0xdba   :  { %v4955_v46 = vmul.f32 1.442695, %v4938_v59  ;;  %v4643_v32 = vmul.f32 1.442695, %v4625_v63 }
 0xdbb   :  { %v4910_v22 = vpop.xlane.xlu0 %4909  ;;  %v4598_v35 = vpop.xlane.xlu1 %4597 }
 0xdbc   :  { %7231 = vpow2.f32 %v4955_v46  ;;  %v4939_v19 = vsub.f32 %v9574_v14, %v4910_v22  ;;  %v4626_v60 = vsub.f32 %v9576_v38, %v4598_v35 }
 0xdbd   :  { %7233 = vpow2.f32 %v4643_v32 }
 0xdbe   :  { %v9662_v62 = vpop.eup %7225  ;;  %v4957_v44 = vmul.f32 1.442695, %v4939_v19  ;;  %v4645_v52 = vmul.f32 1.442695, %v4626_v60 }
 0xdbf   :  { %v4912_v49 = vpop.xlane.xlu1 %4911  ;;  %v4600_v42 = vpop.xlane.xlu0 %4599  ;;  %4671 = vadd.xlane.f32.xlu0 %v9662_v62 }
 0xdc0   :  { %7235 = vpow2.f32 %v4957_v44  ;;  %v4940_v18 = vsub.f32 %v9580_v7, %v4912_v49  ;;  %v4627_v5 = vsub.f32 %v9582_v29, %v4600_v42 }
 0xdc1   :  { %7237 = vpow2.f32 %v4645_v52 }
 0xdc2   :  { %v9667_v41 = vpop.eup %7227  ;;  %v4959_v43 = vmul.f32 1.442695, %v4940_v18  ;;  %v4647_v56 = vmul.f32 1.442695, %v4627_v5 }
 0xdc3   :  { %v9669_v14 = vpop.eup %7229  ;;  %v4914_v38 = vpop.xlane.xlu0 %4913  ;;  %4985 = vadd.xlane.f32.xlu0 %v9667_v41 }
 0xdc4   :  { %v4602_v1 = vpop.xlane.xlu1 %4601  ;;  %7239 = vpow2.f32 %v4959_v43  ;;  %v4941_v24 = vsub.f32 %v9586_v3, %v4914_v38  ;;  %4673 = vadd.xlane.f32.xlu1 %v9669_v14 }
 0xdc5   :  { %v4628_v48 = vsub.f32 %v9588_v58, %v4602_v1  ;;  %7241 = vpow2.f32 %v4647_v56 }
 0xdc6   :  { %v9675_v7 = vpop.eup %7231  ;;  %v4961_v29 = vmul.f32 1.442695, %v4941_v24 }
 0xdc7   :  { %v4649_v27 = vmul.f32 1.442695, %v4628_v48  ;;  %v9677_v21 = vpop.eup %7233  ;;  %v4604_v8 = vpop.xlane.xlu0 %4603 }
 0xdc8   :  { %v4916_v40 = vpop.xlane.xlu1 %4915  ;;  %7243 = vpow2.f32 %v4961_v29  ;;  %v4629_v11 = vsub.f32 %v9594_v30, %v4604_v8  ;;  %4675 = vadd.xlane.f32.xlu0 %v9677_v21  ;;  %4987 = vadd.xlane.f32.xlu1 %v9675_v7 }
 0xdc9   :  { %v4942_v33 = vsub.f32 %v9592_v13, %v4916_v40  ;;  %7245 = vpow2.f32 %v4649_v27 }
 0xdca   :  { %v9683_v3 = vpop.eup %7235  ;;  %v4651_v9 = vmul.f32 1.442695, %v4629_v11 }
 0xdcb   :  { %v4963_v58 = vmul.f32 1.442695, %v4942_v33  ;;  %v9685_v20 = vpop.eup %7237  ;;  %v4918_v59 = vpop.xlane.xlu0 %4917 }
 0xdcc   :  { %v4606_v63 = vpop.xlane.xlu1 %4605  ;;  %v4943_v46 = vsub.f32 %v9598_v53, %v4918_v59  ;;  %4989 = vadd.xlane.f32.xlu0 %v9683_v3  ;;  %4677 = vadd.xlane.f32.xlu1 %v9685_v20 }
 0xdcd   :  { %7247 = vpow2.f32 %v4963_v58  ;;  %v4630_v13 = vsub.f32 %v9600_v12, %v4606_v63 }
 0xdce   :  { %7249 = vpow2.f32 %v4651_v9  ;;  %v9691_v30 = vpop.eup %7239  ;;  %v4965_v32 = vmul.f32 1.442695, %v4943_v46 }
 0xdcf   :  { %v4653_v22 = vmul.f32 1.442695, %v4630_v13  ;;  %v9693_v35 = vpop.eup %7241  ;;  %v4608_v60 = vpop.xlane.xlu0 %4607 }
 0xdd0   :  { %v4920_v19 = vpop.xlane.xlu1 %4919  ;;  %7251 = vpow2.f32 %v4965_v32  ;;  %v4631_v53 = vsub.f32 %v9606_v34, %v4608_v60  ;;  %4679 = vadd.xlane.f32.xlu0 %v9693_v35  ;;  %4991 = vadd.xlane.f32.xlu1 %v9691_v30 }
 0xdd1   :  { %v4944_v44 = vsub.f32 %v9604_v6, %v4920_v19  ;;  %7253 = vpow2.f32 %v4653_v22 }
 0xdd2   :  { %v9699_v12 = vpop.eup %7243  ;;  %v4655_v49 = vmul.f32 1.442695, %v4631_v53 }
 0xdd3   :  { %v4967_v52 = vmul.f32 1.442695, %v4944_v44  ;;  %v9701_v42 = vpop.eup %7245  ;;  %v4922_v18 = vpop.xlane.xlu0 %4921 }
 0xdd4   :  { %v4610_v5 = vpop.xlane.xlu1 %4609  ;;  %v4945_v43 = vsub.f32 %v9610_v16, %v4922_v18  ;;  %4993 = vadd.xlane.f32.xlu0 %v9699_v12  ;;  %4681 = vadd.xlane.f32.xlu1 %v9701_v42 }
 0xdd5   :  { %7255 = vpow2.f32 %v4967_v52  ;;  %v4632_v6 = vsub.f32 %v9612_v0, %v4610_v5 }
 0xdd6   :  { %7257 = vpow2.f32 %v4655_v49  ;;  %v4969_v56 = vmul.f32 1.442695, %v4945_v43 }
 0xdd7   :  { %v9707_v34 = vpop.eup %7247  ;;  %v4657_v38 = vmul.f32 1.442695, %v4632_v6  ;;  %v4612_v48 = vpop.xlane.xlu0 %4611 }
 0xdd8   :  { %v9709_v1 = vpop.eup %7249  ;;  %v4924_v24 = vpop.xlane.xlu1 %4923  ;;  %7259 = vpow2.f32 %v4969_v56  ;;  %v4633_v16 = vsub.f32 %v9618_v4, %v4612_v48  ;;  %4995 = vadd.xlane.f32.xlu1 %v9707_v34 }
 0xdd9   :  { %v4946_v29 = vsub.f32 %v9616_v36, %v4924_v24  ;;  %4683 = vadd.xlane.f32.xlu0 %v9709_v1  ;;  %7261 = vpow2.f32 %v4657_v38 }
 0xdda   :  { %v9715_v0 = vpop.eup %7251  ;;  %v4659_v40 = vmul.f32 1.442695, %v4633_v16 }
 0xddb   :  { %v4971_v27 = vmul.f32 1.442695, %v4946_v29  ;;  %v9717_v8 = vpop.eup %7253  ;;  %v4926_v33 = vpop.xlane.xlu0 %4925 }
 0xddc   :  { %v4614_v11 = vpop.xlane.xlu1 %4613  ;;  %v4947_v58 = vsub.f32 %v9622_v28, %v4926_v33  ;;  %4685 = vadd.xlane.f32.xlu1 %v9717_v8 }
 0xddd   :  { %7263 = vpow2.f32 %v4971_v27  ;;  %v4634_v36 = vsub.f32 %v9624_v31, %v4614_v11  ;;  %4997 = vadd.xlane.f32.xlu0 %v9715_v0 }
 0xdde   :  { %7265 = vpow2.f32 %v4659_v40  ;;  %v4973_v9 = vmul.f32 1.442695, %v4947_v58 }
 0xddf   :  { %v9723_v4 = vpop.eup %7255  ;;  %v4661_v59 = vmul.f32 1.442695, %v4634_v36  ;;  %v4616_v13 = vpop.xlane.xlu0 %4615 }
 0xde0   :  { %v9725_v63 = vpop.eup %7257  ;;  %v4928_v46 = vpop.xlane.xlu1 %4927  ;;  %7267 = vpow2.f32 %v4973_v9  ;;  %v4635_v28 = vsub.f32 %v9630_v47, %v4616_v13  ;;  %4999 = vadd.xlane.f32.xlu1 %v9723_v4 }
 0xde1   :  { %v4948_v32 = vsub.f32 %v9628_v57, %v4928_v46  ;;  %4687 = vadd.xlane.f32.xlu0 %v9725_v63  ;;  %7269 = vpow2.f32 %v4661_v59 }
 0xde2   :  { %v9731_v31 = vpop.eup %7259  ;;  %v4663_v19 = vmul.f32 1.442695, %v4635_v28  ;;  %v76_v28 = vld [vmem:[%s9998_s9 + $0x8] sm:$0xff] }
 0xde3   :  { %v4975_v22 = vmul.f32 1.442695, %v4948_v32  ;;  %v9733_v60 = vpop.eup %7261 }
 0xde4   :  { %v4618_v44 = vpop.xlane.xlu1 %4617  ;;  %4689 = vadd.xlane.f32.xlu1 %v9733_v60 }
 0xde5   :  { %7271 = vpow2.f32 %v4975_v22  ;;  %v4636_v53 = vsub.f32 %v9636_v39, %v4618_v44  ;;  %5001 = vadd.xlane.f32.xlu0 %v9731_v31  ;;  %v75_v22 = vld [vmem:[%s9998_s9] sm:$0xff]  ;;  %v10145_v44 = vmov 0  }
 0xde6   :  { %7273 = vpow2.f32 %v4663_v19  ;;  %v10144_v19 = vmov 1  }
 0xde7   :  { %v9738_v57 = vpop.eup %7263  ;;  %v4665_v47 = vmul.f32 1.442695, %v4636_v53  ;;  %v4620_v49 = vpop.xlane.xlu0 %4619  ;;  %v78_v53 = vld [vmem:[%s9998_s9 + $0x18] sm:$0xff] }
 0xde8   :  { %v9740_v52 = vpop.eup %7265  ;;  %v4637_v18 = vsub.f32 %v9641_v45, %v4620_v49  ;;  %5003 = vadd.xlane.f32.xlu1 %v9738_v57 }
 0xde9   :  { %7275 = vpow2.f32 %v4665_v47  ;;  %4691 = vadd.xlane.f32.xlu0 %v9740_v52  ;;  %v77_v47 = vld [vmem:[%s9998_s9 + $0x10] sm:$0xff] }
 0xdea   :  { %v9745_v5 = vpop.eup %7267  ;;  %v4667_v39 = vmul.f32 1.442695, %v4637_v18 }
 0xdeb   :  { %v9747_v43 = vpop.eup %7269  ;;  %v4930_v6 = vpop.xlane.xlu0 %4929 }
 0xdec   :  { %v4622_v56 = vpop.xlane.xlu1 %4621  ;;  %7277 = vpow2.f32 %v4667_v39  ;;  %v4949_v38 = vsub.f32 %v9634_v15, %v4930_v6  ;;  %4693 = vadd.xlane.f32.xlu1 %v9747_v43 }
 0xded   :  { %5005 = vadd.xlane.f32.xlu0 %v9745_v5  ;;  %v4638_v24 = vsub.f32 %v9646_v17, %v4622_v56 }
 0xdee   :  { %v4977_v48 = vmul.f32 1.442695, %v4949_v38 }
 0xdef   :  { %v9753_v45 = vpop.eup %7271  ;;  %v4669_v29 = vmul.f32 1.442695, %v4638_v24  ;;  %v4934_v27 = vpop.xlane.xlu0 %4933 }
 0xdf0   :  { %v9755_v16 = vpop.eup %7273  ;;  %v4932_v40 = vpop.xlane.xlu1 %4931  ;;  %7279 = vpow2.f32 %v4977_v48  ;;  %v4951_v33 = vsub.f32 %v9644_v26, %v4934_v27  ;;  %5007 = vadd.xlane.f32.xlu1 %v9753_v45 }
 0xdf1   :  { %4695 = vadd.xlane.f32.xlu0 %v9755_v16  ;;  %v4950_v15 = vsub.f32 %v9639_v50, %v4932_v40  ;;  %7281 = vpow2.f32 %v4669_v29 }
 0xdf2   :  { %v4981_v11 = vmul.f32 1.442695, %v4951_v33 }
 0xdf3   :  { %v9761_v17 = vpop.eup %7275  ;;  %v4979_v58 = vmul.f32 1.442695, %v4950_v15 }
 0xdf4   :  { %v4936_v36 = vpop.xlane.xlu1 %4935  ;;  %7283 = vpow2.f32 %v4981_v11  ;;  %4697 = vadd.xlane.f32.xlu1 %v9761_v17 }
 0xdf5   :  { %v4952_v9 = vsub.f32 %v9650_v2, %v4936_v36  ;;  %7285 = vpow2.f32 %v4979_v58 }
 0xdf6   :  { %v9765_v59 = vpop.eup %7277 }
 0xdf7   :  { %v4983_v46 = vmul.f32 1.442695, %v4952_v9  ;;  %4699 = vadd.xlane.f32.xlu0 %v9765_v59 }
 0xdf9   :  { %7287 = vpow2.f32 %v4983_v46 }
 0xdfa   :  { %v9768_v50 = vpop.eup %7279 }
 0xdfb   :  { %v9770_v26 = vpop.eup %7281  ;;  %5009 = vadd.xlane.f32.xlu0 %v9768_v50 }
 0xdfc   :  { %4701 = vadd.xlane.f32.xlu1 %v9770_v26 }
 0xdfe   :  { %v9774_v13 = vpop.eup %7283 }
 0xdff   :  { %v9776_v32 = vpop.eup %7285  ;;  %5013 = vadd.xlane.f32.xlu0 %v9774_v13 }
 0xe00   :  { %5011 = vadd.xlane.f32.xlu1 %v9776_v32 }
 0xe03   :  { %v9780_v2 = vpop.eup %7287 }
 0xe04   :  { %5015 = vadd.xlane.f32.xlu1 %v9780_v2 }
 0xe15   :  { %1712 = vperm.xlu1 %6832, %v76_v28   ;;  %2269 = vperm.xlu0 %6834, %v76_v28  }
 0xe19   :  { %6833 = vset.pattern.permute.xlu1 %v10144_v19  ;;  %6835 = vset.pattern.permute.xlu0 %v10145_v44 }
 0xe1a   :  { %2265 = vperm.xlu1 %6833, %v75_v22   ;;  %1707 = vperm.xlu0 %6835, %v75_v22  }
 0xe1e   :  { %6836 = vset.pattern.permute.xlu1 %v10145_v44  ;;  %1722 = vperm.xlu0 %6835, %v78_v53  }
 0xe1f   :  { %1717 = vperm.xlu1 %6836, %v77_v47  }
 0xe22   :  { %6838 = vset.pattern.permute.xlu0 %v10144_v19 }
 0xe23   :  { %6837 = vset.pattern.permute.xlu1 %v10144_v19 }
 0xe24   :  { %2273 = vperm.xlu1 %6837, %v77_v47  }
 0xe28   :  { %2277 = vperm.xlu1 %6837, %v78_v53  }
 0xe4c   :  { %v4672_v49 = vpop.xlane.xlu0 %4671 }
 0xe4d   :  { %7289 = vrcp.f32 %v4672_v49 }
 0xe50   :  { %v4986_v18 = vpop.xlane.xlu0 %4985 }
 0xe51   :  { %v4674_v39 = vpop.xlane.xlu1 %4673 }
 0xe52   :  { %7291 = vrcp.f32 %v4674_v39 }
 0xe53   :  { %7293 = vrcp.f32 %v4986_v18 }
 0xe55   :  { %v4676_v6 = vpop.xlane.xlu0 %4675  ;;  %v4988_v56 = vpop.xlane.xlu1 %4987 }
 0xe56   :  { %7295 = vrcp.f32 %v4988_v56 }
 0xe57   :  { %7297 = vrcp.f32 %v4676_v6  ;;  %v7290_v48 = vpop.eup %7289 }
 0xe58   :  { %v4719_v33 = vmul.f32 %v7290_v48, %v9662_v62 }
 0xe59   :  { %v4990_v38 = vpop.xlane.xlu0 %4989  ;;  %v4678_v24 = vpop.xlane.xlu1 %4677 }
 0xe5a   :  { %7299 = vrcp.f32 %v4678_v24 }
 0xe5b   :  { %7301 = vrcp.f32 %v4990_v38 }
 0xe5c   :  { %v7292_v29 = vpop.eup %7291 }
 0xe5d   :  { %v4680_v27 = vpop.xlane.xlu0 %4679  ;;  %v4992_v40 = vpop.xlane.xlu1 %4991  ;;  %v4720_v15 = vmul.f32 %v7292_v29, %v9669_v14 }
 0xe5e   :  { %v7294_v11 = vpop.eup %7293  ;;  %7303 = vrcp.f32 %v4992_v40 }
 0xe5f   :  { %v6737_v58 = vpack.c.bf16 %v4720_v15, %v4719_v33  ;;  %7305 = vrcp.f32 %v4680_v27  ;;  %v5033_v28 = vmul.f32 %v7294_v11, %v9667_v41 }
 0xe60   :  { %v7296_v36 = vpop.eup %7295 }
 0xe61   :  { %v4994_v9 = vpop.xlane.xlu0 %4993  ;;  %6738 = vmatprep.subr.bf16.mxu0 %v6737_v58  ;;  %v4682_v46 = vpop.xlane.xlu1 %4681  ;;  %v5034_v22 = vmul.f32 %v7296_v36, %v9675_v7 }
 0xe62   :  { %6740 = vmatpush3.bf16.xpose.msra.mxu0 %v6737_v58  ;;  %v7298_v19 = vpop.eup %7297  ;;  %7307 = vrcp.f32 %v4682_v46 }
 0xe63   :  { %v6777_v44 = vpack.c.bf16 %v5034_v22, %v5033_v28  ;;  %7309 = vrcp.f32 %v4994_v9  ;;  %v4721_v47 = vmul.f32 %v7298_v19, %v9677_v21 }
 0xe64   :  { %v7300_v53 = vpop.eup %7299 }
 0xe65   :  { %v4996_v14 = vpop.xlane.xlu1 %4995  ;;  %6778 = vmatprep.subr.bf16.mxu1 %v6777_v44  ;;  %v4722_v49 = vmul.f32 %v7300_v53, %v9685_v20  ;;  %v7302_v18 = vpop.eup %7301 }
 0xe66   :  { %v4684_v62 = vpop.xlane.xlu0 %4683  ;;  %7311 = vrcp.f32 %v4996_v14  ;;  %6780 = vmatpush3.bf16.xpose.msra.mxu1 %v6777_v44  ;;  %v5035_v56 = vmul.f32 %v7302_v18, %v9683_v3 }
 0xe67   :  { %v6741_v39 = vpack.c.bf16 %v4722_v49, %v4721_v47  ;;  %7313 = vrcp.f32 %v4684_v62 }
 0xe68   :  { %v7304_v6 = vpop.eup %7303 }
 0xe69   :  { %v4686_v7 = vpop.xlane.xlu1 %4685  ;;  %6742 = vmatprep.subr.bf16.mxu0 %v6741_v39  ;;  %v5036_v38 = vmul.f32 %v7304_v6, %v9691_v30  ;;  %v7306_v24 = vpop.eup %7305 }
 0xe6a   :  { %v4998_v41 = vpop.xlane.xlu0 %4997  ;;  %7315 = vrcp.f32 %v4686_v7  ;;  %6744 = vmatpush3.bf16.xpose.msra.mxu0 %v6741_v39  ;;  %v4723_v27 = vmul.f32 %v7306_v24, %v9693_v35 }
 0xe6b   :  { %v6781_v48 = vpack.c.bf16 %v5036_v38, %v5035_v56  ;;  %7317 = vrcp.f32 %v4998_v41 }
 0xe6c   :  { %v7308_v21 = vpop.eup %7307 }
 0xe6d   :  { %v5000_v29 = vpop.xlane.xlu1 %4999  ;;  %6782 = vmatprep.subr.bf16.mxu1 %v6781_v48  ;;  %v4724_v40 = vmul.f32 %v7308_v21, %v9701_v42  ;;  %v7310_v33 = vpop.eup %7309 }
 0xe6e   :  { %v4688_v20 = vpop.xlane.xlu0 %4687  ;;  %7319 = vrcp.f32 %v5000_v29  ;;  %6784 = vmatpush3.bf16.xpose.msra.mxu1 %v6781_v48  ;;  %v5037_v58 = vmul.f32 %v7310_v33, %v9699_v12 }
 0xe6f   :  { %v6745_v15 = vpack.c.bf16 %v4724_v40, %v4723_v27  ;;  %7321 = vrcp.f32 %v4688_v20 }
 0xe70   :  { %v7312_v3 = vpop.eup %7311 }
 0xe71   :  { %v4690_v11 = vpop.xlane.xlu1 %4689  ;;  %6746 = vmatprep.subr.bf16.mxu0 %v6745_v15  ;;  %v5038_v36 = vmul.f32 %v7312_v3, %v9707_v34  ;;  %v7314_v9 = vpop.eup %7313 }
 0xe72   :  { %v5002_v30 = vpop.xlane.xlu0 %5001  ;;  %7323 = vrcp.f32 %v4690_v11  ;;  %6748 = vmatpush3.bf16.xpose.msra.mxu0 %v6745_v15  ;;  %v4725_v22 = vmul.f32 %v7314_v9, %v9709_v1 }
 0xe73   :  { %v6785_v46 = vpack.c.bf16 %v5038_v36, %v5037_v58  ;;  %7325 = vrcp.f32 %v5002_v30 }
 0xe74   :  { %v7316_v35 = vpop.eup %7315 }
 0xe75   :  { %v5004_v28 = vpop.xlane.xlu1 %5003  ;;  %6786 = vmatprep.subr.bf16.mxu1 %v6785_v46  ;;  %v4726_v19 = vmul.f32 %v7316_v35, %v9717_v8  ;;  %v7318_v44 = vpop.eup %7317 }
 0xe76   :  { %v4692_v42 = vpop.xlane.xlu0 %4691  ;;  %7327 = vrcp.f32 %v5004_v28  ;;  %6788 = vmatpush3.bf16.xpose.msra.mxu1 %v6785_v46  ;;  %v5039_v14 = vmul.f32 %v7318_v44, %v9715_v0  ;;  %v10146_v28 = vld [vmem:[#allocation27_spill] sm:$0xff]  ;;  %v10148_v44 = vld [vmem:[#allocation13_spill] sm:$0xff] }
 0xe77   :  { %v6749_v53 = vpack.c.bf16 %v4726_v19, %v4725_v22  ;;  %7329 = vrcp.f32 %v4692_v42  ;;  %v10147_v22 = vld [vmem:[#allocation8_spill] sm:$0xff] }
 0xe78   :  { %v7320_v12 = vpop.eup %7319  ;;  %v9828_v19 = vadd.f32 %v10147_v22, %v10146_v28 }
 0xe79   :  { %v4694_v62 = vpop.xlane.xlu1 %4693  ;;  %6750 = vmatprep.subr.bf16.mxu0 %v6749_v53  ;;  %v5040_v47 = vmul.f32 %v7320_v12, %v9723_v4  ;;  %v7322_v49 = vpop.eup %7321 }
 0xe7a   :  { %v5006_v34 = vpop.xlane.xlu0 %5005  ;;  %7331 = vrcp.f32 %v4694_v62  ;;  %6752 = vmatpush3.bf16.xpose.msra.mxu0 %v6749_v53  ;;  %v4727_v6 = vmul.f32 %v7322_v49, %v9725_v63  ;;  %v10149_v53 = vld [vmem:[#allocation28_spill] sm:$0xff] }
 0xe7b   :  { %v6789_v18 = vpack.c.bf16 %v5040_v47, %v5039_v14  ;;  %7333 = vrcp.f32 %v5006_v34  ;;  %v10150_v34 = vld [vmem:[#allocation32_spill] sm:$0xff] }
 0xe7c   :  { %v7324_v1 = vpop.eup %7323 }
 0xe7d   :  { %v5008_v39 = vpop.xlane.xlu1 %5007  ;;  %6790 = vmatprep.subr.bf16.mxu1 %v6789_v18  ;;  %v4728_v41 = vmul.f32 %v7324_v1, %v9733_v60  ;;  %v7326_v7 = vpop.eup %7325 }
 0xe7e   :  { %v4696_v8 = vpop.xlane.xlu0 %4695  ;;  %7335 = vrcp.f32 %v5008_v39  ;;  %6792 = vmatpush3.bf16.xpose.msra.mxu1 %v6789_v18  ;;  %v5041_v38 = vmul.f32 %v7326_v7, %v9731_v31  ;;  %v10151_v18 = vld [vmem:[#allocation18_spill] sm:$0xff] }
 0xe7f   :  { %7337 = vrcp.f32 %v4696_v8  ;;  %v6753_v0 = vpack.c.bf16 %v4728_v41, %v4727_v6  ;;  %v10152_v8 = vld [vmem:[#allocation21_spill] sm:$0xff] }
 0xe80   :  { %v7328_v56 = vpop.eup %7327 }
 0xe81   :  { %v4698_v4 = vpop.xlane.xlu1 %4697  ;;  %6754 = vmatprep.subr.bf16.mxu0 %v6753_v0  ;;  %v5042_v24 = vmul.f32 %v7328_v56, %v9738_v57  ;;  %v7330_v48 = vpop.eup %7329  ;;  %v10154_v56 = vld [vmem:[#allocation11_spill] sm:$0xff] }
 0xe82   :  { %7339 = vrcp.f32 %v4698_v4  ;;  %6756 = vmatpush3.bf16.xpose.msra.mxu0 %v6753_v0  ;;  %v4729_v60 = vmul.f32 %v7330_v48, %v9740_v52  ;;  %v10153_v0 = vld [vmem:[#allocation26_spill] sm:$0xff] }
 0xe83   :  { %v6793_v20 = vpack.c.bf16 %v5042_v24, %v5041_v38  ;;  %v2963_v4 = vadd.f32 %v10154_v56, %v10153_v0  ;;  %v10155_v38 = vld [vmem:[#allocation29_spill] sm:$0xff]  ;;  %v10156_v24 = vld [vmem:[#allocation34_spill] sm:$0xff]  ;;  %v10164_v56 = vld [vmem:[#allocation23_spill] sm:$0xff] }
 0xe84   :  { %v4700_v21 = vpop.xlane.xlu0 %4699  ;;  %v7332_v63 = vpop.eup %7331  ;;  %v9854_v48 = vadd.f32 %v10156_v24, %v10155_v38 }
 0xe85   :  { %6794 = vmatprep.subr.bf16.mxu1 %v6793_v20  ;;  %v4730_v29 = vmul.f32 %v7332_v63, %v9747_v43  ;;  %v7334_v27 = vpop.eup %7333  ;;  %7341 = vrcp.f32 %v4700_v21 }
 0xe86   :  { %6796 = vmatpush3.bf16.xpose.msra.mxu1 %v6793_v20  ;;  %v5043_v57 = vmul.f32 %v7334_v27, %v9745_v5 }
 0xe87   :  { %v6757_v33 = vpack.c.bf16 %v4730_v29, %v4729_v60 }
 0xe88   :  { %v5010_v40 = vpop.xlane.xlu0 %5009  ;;  %v7336_v15 = vpop.eup %7335 }
 0xe89   :  { %7343 = vrcp.f32 %v5010_v40  ;;  %v4702_v31 = vpop.xlane.xlu1 %4701  ;;  %v7338_v3 = vpop.eup %7337  ;;  %6758 = vmatprep.subr.bf16.mxu0 %v6757_v33  ;;  %v5044_v30 = vmul.f32 %v7336_v15, %v9753_v45 }
 0xe8a   :  { %7345 = vrcp.f32 %v4702_v31  ;;  %6760 = vmatpush3.bf16.xpose.msra.mxu0 %v6757_v33  ;;  %v4731_v36 = vmul.f32 %v7338_v3, %v9755_v16  ;;  %v9832_v16 = vadd.f32 %v10148_v44, %v10146_v28  ;;  %v10157_v31 = vld [vmem:[#allocation31_spill] sm:$0xff] }
 0xe8b   :  { %v6797_v58 = vpack.c.bf16 %v5044_v30, %v5043_v57  ;;  %v10159_v30 = vld [vmem:[#allocation17_spill] sm:$0xff] }
 0xe8c   :  { %v7340_v11 = vpop.eup %7339  ;;  %v5014_v52 = vpop.xlane.xlu0 %5013 }
 0xe8d   :  { %7347 = vrcp.f32 %v5014_v52  ;;  %v5012_v43 = vpop.xlane.xlu1 %5011  ;;  %v4732_v9 = vmul.f32 %v7340_v11, %v9761_v17  ;;  %6798 = vmatprep.subr.bf16.mxu1 %v6797_v58  ;;  %v10160_v52 = vld [vmem:[#allocation19_spill] sm:$0xff] }
 0xe8e   :  { %7349 = vrcp.f32 %v5012_v43  ;;  %6800 = vmatpush3.bf16.xpose.msra.mxu1 %v6797_v58 }
 0xe8f   :  { %v6761_v46 = vpack.c.bf16 %v4732_v9, %v4731_v36  ;;  %v7342_v42 = vpop.eup %7341 }
 0xe90   :  { %v4733_v47 = vmul.f32 %v7342_v42, %v9765_v59 }
 0xe91   :  { %6762 = vmatprep.subr.bf16.mxu0 %v6761_v46  ;;  %v5016_v35 = vpop.xlane.xlu1 %5015 }
 0xe92   :  { %7351 = vrcp.f32 %v5016_v35  ;;  %6764 = vmatpush3.bf16.xpose.msra.mxu0 %v6761_v46 }
 0xe93   :  { %v7344_v5 = vpop.eup %7343 }
 0xe94   :  { %v7346_v45 = vpop.eup %7345  ;;  %v9834_v17 = vpop.permute.xlu0 %2269 }
 0xe95   :  { %v2364_v12 = vadd.f32 %v10149_v53, %v9834_v17  ;;  %v2678_v62 = vadd.f32 %v10150_v34, %v9834_v17  ;;  %v1713_v14 = vpop.permute.xlu1 %1712  ;;  %v4734_v49 = vmul.f32 %v7346_v45, %v9770_v26  ;;  %v5045_v26 = vmul.f32 %v7344_v5, %v9768_v50  ;;  %v10158_v50 = vld [vmem:[#allocation5_spill] sm:$0xff] }
 0xe96   :  { %v1810_v1 = vadd.f32 %v10151_v18, %v1713_v14  ;;  %v1812_v39 = vadd.f32 %v10152_v8, %v1713_v14  ;;  %v9845_v6 = vadd.f32 %v9547_v61, %v1713_v14  ;;  %v9848_v41 = vadd.f32 %v9549_v25, %v1713_v14 }
 0xe97   :  { %v7348_v7 = vpop.eup %7347  ;;  %v6765_v59 = vpack.c.bf16 %v4734_v49, %v4733_v47  ;;  %v2718_v20 = vmul.f32 %v2364_v12, %v2364_v12  ;;  %v2773_v63 = vmul.f32 %v2678_v62, %v2678_v62  ;;  %v10161_v49 = vld [vmem:[#allocation22_spill] sm:$0xff] }
 0xe98   :  { %v7350_v21 = vpop.eup %7349  ;;  %v2692_v60 = vmul.f32 %v2364_v12, %v1810_v1  ;;  %v2747_v61 = vmul.f32 %v2678_v62, %v1812_v39  ;;  %v2705_v29 = vmul.f32 %v1810_v1, %v1810_v1  ;;  %v2760_v27 = vmul.f32 %v1812_v39, %v1812_v39  ;;  %v10162_v1 = vld [vmem:[#allocation25_spill] sm:$0xff]  ;;  %v10163_v39 = vld [vmem:[#allocation20_spill] sm:$0xff] }
 0xe99   :  { %6766 = vmatprep.subr.bf16.mxu0 %v6765_v59  ;;  %v9857_v25 = vpop.permute.xlu1 %2265  ;;  %v1708_v40 = vpop.permute.xlu0 %1707  ;;  %v5046_v33 = vmul.f32 %v7350_v21, %v9776_v32  ;;  %v5047_v15 = vmul.f32 %v7348_v7, %v9774_v13  ;;  %v5233_v36 = vmul.f32 %v9845_v6, %v9845_v6 }
 0xe9a   :  { %v2359_v3 = vadd.f32 %v10157_v31, %v9857_v25  ;;  %v2673_v57 = vadd.f32 %v10158_v50, %v9857_v25  ;;  %v1804_v11 = vadd.f32 %v10159_v30, %v1708_v40  ;;  %v1806_v58 = vadd.f32 %v10160_v52, %v1708_v40  ;;  %6768 = vmatpush3.bf16.xpose.msra.mxu0 %v6765_v59  ;;  %v10166_v50 = vld [vmem:[#allocation7_spill] sm:$0xff] }
 0xe9b   :  { %v6801_v43 = vpack.c.bf16 %v5046_v33, %v5045_v26  ;;  %v9870_v9 = vadd.f32 %v9543_v51, %v1708_v40  ;;  %v9873_v13 = vadd.f32 %v9545_v55, %v1708_v40 }
 0xe9c   :  { %v7352_v32 = vpop.eup %7351  ;;  %v2717_v46 = vmul.f32 %v2359_v3, %v2359_v3  ;;  %v2772_v35 = vmul.f32 %v2673_v57, %v2673_v57  ;;  %v2691_v42 = vmul.f32 %v2359_v3, %v1804_v11  ;;  %v2704_v5 = vmul.f32 %v1804_v11, %v1804_v11 }
 0xe9d   :  { %v2746_v45 = vmul.f32 %v2673_v57, %v1806_v58  ;;  %v2759_v28 = vmul.f32 %v1806_v58, %v1806_v58  ;;  %6802 = vmatprep.subr.bf16.mxu1 %v6801_v43  ;;  %v1723_v22 = vpop.permute.xlu0 %1722  ;;  %v5048_v44 = vmul.f32 %v7352_v32, %v9780_v2  ;;  %v5232_v53 = vmul.f32 %v9870_v9, %v9870_v9 }
 0xe9e   :  { %v2721_v12 = vadd.f32 %v2718_v20, %v2717_v46  ;;  %v2776_v51 = vadd.f32 %v2773_v63, %v2772_v35  ;;  %v2695_v34 = vadd.f32 %v2692_v60, %v2691_v42  ;;  %v2708_v62 = vadd.f32 %v2705_v29, %v2704_v5  ;;  %6804 = vmatpush3.bf16.xpose.msra.mxu1 %v6801_v43  ;;  %v1718_v55 = vpop.permute.xlu1 %1717  ;;  %v9917_v42 = vld [vmem:[%s9997_s8 + $0x20] sm:$0xff] }
 0xe9f   :  { %v2750_v14 = vadd.f32 %v2747_v61, %v2746_v45  ;;  %v2763_v47 = vadd.f32 %v2760_v27, %v2759_v28  ;;  %v1822_v18 = vadd.f32 %v10161_v49, %v1723_v22  ;;  %v1824_v8 = vadd.f32 %v10162_v1, %v1723_v22 }
 0xea0   :  { %v1816_v7 = vadd.f32 %v10163_v39, %v1718_v55  ;;  %v1818_v24 = vadd.f32 %v10164_v56, %v1718_v55  ;;  %v6805_v2 = vpack.c.bf16 %v5048_v44, %v5047_v15  ;;  %v5236_v59 = vadd.f32 %v5233_v36, %v5232_v53  ;;  %v10167_v53 = vld [vmem:[#allocation30_spill] sm:$0xff] }
 0xea1   :  { %v2707_v26 = vmul.f32 %v1822_v18, %v1822_v18  ;;  %v9883_v21 = vadd.f32 %v9555_v23, %v1723_v22  ;;  %v9886_v20 = vadd.f32 %v9551_v54, %v1718_v55  ;;  %v5287_v63 = vmul.f32 %v9848_v41, %v9848_v41  ;;  %6474 = vmatmul.mubr.f32.vlgmr.msra.gmra.mrb[156].mxu0 %v9828_v19  ;;  %v10165_v19 = vld [vmem:[#allocation33_spill] sm:$0xff] }
 0xea2   :  { %v2706_v60 = vmul.f32 %v1816_v7, %v1816_v7  ;;  %v2761_v61 = vmul.f32 %v1818_v24, %v1818_v24  ;;  %6806 = vmatprep.subr.bf16.mxu1 %v6805_v2  ;;  %v5286_v29 = vmul.f32 %v9873_v13, %v9873_v13  ;;  %v2762_v27 = vmul.f32 %v1824_v8, %v1824_v8 }
 0xea3   :  { %6476 = vmatprep.mubr.f32.mxu0 %v2963_v4  ;;  %v9893_v40 = vpop.permute.xlu1 %2273  ;;  %v5235_v23 = vmul.f32 %v9883_v21, %v9883_v21  ;;  %v5234_v54 = vmul.f32 %v9886_v20, %v9886_v20  ;;  %v9900_v33 = vadd.f32 %v9553_v10, %v1718_v55  ;;  %v9907_v11 = vadd.f32 %v9557_v37, %v1723_v22  ;;  %v10168_v55 = vld [vmem:[#allocation6_spill] sm:$0xff] }
 0xea4   :  { %v2709_v15 = vadd.f32 %v2708_v62, %v2706_v60  ;;  %v2764_v31 = vadd.f32 %v2763_v47, %v2761_v61  ;;  %v2369_v3 = vadd.f32 %v10165_v19, %v9893_v40  ;;  %v2683_v57 = vadd.f32 %v10166_v50, %v9893_v40 }
 0xea5   :  { %v5237_v4 = vadd.f32 %v5236_v59, %v5234_v54  ;;  %v5290_v30 = vadd.f32 %v5287_v63, %v5286_v29  ;;  %v5288_v52 = vmul.f32 %v9900_v33, %v9900_v33  ;;  %6477 = vmatmul.mubr.f32.gmra.mrb[158].mxu0 %v9854_v48  ;;  %v5289_v39 = vmul.f32 %v9907_v11, %v9907_v11 }
 0xea6   :  { %v2710_v58 = vadd.f32 %v2709_v15, %v2707_v26  ;;  %v2765_v43 = vadd.f32 %v2764_v31, %v2762_v27  ;;  %v2693_v10 = vmul.f32 %v2369_v3, %v1816_v7  ;;  %v2719_v36 = vmul.f32 %v2369_v3, %v2369_v3  ;;  %6808 = vmatpush3.bf16.xpose.msra.mxu1 %v6805_v2 }
 0xea7   :  { %v2748_v32 = vmul.f32 %v2683_v57, %v1818_v24  ;;  %v2774_v46 = vmul.f32 %v2683_v57, %v2683_v57  ;;  %v9912_v35 = vpop.permute.xlu1 %2277  ;;  %6487 = vmatprep.mubr.msk.f32.mxu0 %vm1006_vm2, %v9917_v42  ;;  %v9921_v37 = vadd.f32 %v5237_v4, %v5235_v23  ;;  %v5291_v7 = vadd.f32 %v5290_v30, %v5288_v52 }
 0xea8   :  { %v2711_v5 = vrot.slane %v2710_v58, 4  ;;  %v2766_v45 = vrot.slane %v2765_v43, 4  ;;  %v2696_v28 = vadd.f32 %v2695_v34, %v2693_v10  ;;  %v2722_v22 = vadd.f32 %v2721_v12, %v2719_v36  ;;  %v10169_v12 = vld [vmem:[#allocation14_spill] sm:$0xff] }
 0xea9   :  { %v2751_v48 = vadd.f32 %v2750_v14, %v2748_v32  ;;  %v2777_v44 = vadd.f32 %v2776_v51, %v2774_v46  ;;  %v2374_v62 = vadd.f32 %v10167_v53, %v9912_v35  ;;  %v2688_v47 = vadd.f32 %v10168_v55, %v9912_v35 }
 0xeaa   :  { %v2712_v49 = vadd.f32 %v2711_v5, %v2710_v58  ;;  %v2767_v1 = vadd.f32 %v2766_v45, %v2765_v43  ;;  %v2965_v34 = vadd.f32 %v10169_v12, %v10153_v0  ;;  %v9931_v26 = vadd.f32 %v5291_v7, %v5289_v39 }
 0xeab   :  { %v2694_v56 = vmul.f32 %v2374_v62, %v1822_v18  ;;  %v2720_v24 = vmul.f32 %v2374_v62, %v2374_v62  ;;  %v2749_v2 = vmul.f32 %v2688_v47, %v1824_v8  ;;  %v2775_v59 = vmul.f32 %v2688_v47, %v2688_v47  ;;  %v10170_v18 = vld [vmem:[#allocation35_spill] sm:$0xff] }
 0xeac   :  { %v2713_v51 = vrot.slane %v2712_v49, 2  ;;  %v2768_v14 = vrot.slane %v2767_v1, 2  ;;  %v2971_v8 = vadd.f32 %v10170_v18, %v10155_v38 }
 0xead   :  { %v2697_v63 = vadd.f32 %v2696_v28, %v2694_v56  ;;  %v2723_v60 = vadd.f32 %v2722_v22, %v2720_v24  ;;  %v2752_v61 = vadd.f32 %v2751_v48, %v2749_v2  ;;  %v2778_v29 = vadd.f32 %v2777_v44, %v2775_v59  ;;  %6526 = vmatmul.mubr.f32.vlgmr.msra.gmra.mrb[164].mxu1 %v9832_v16 }
 0xeae   :  { %6528 = vmatprep.mubr.f32.mxu1 %v2965_v34  ;;  %v2714_v54 = vadd.f32 %v2713_v51, %v2712_v49  ;;  %v2769_v15 = vadd.f32 %v2768_v14, %v2767_v1 }
 0xeaf   :  { %v2724_v27 = vrot.slane %v2723_v60, 4  ;;  %v2779_v23 = vrot.slane %v2778_v29, 4  ;;  %v2753_v19 = vrot.slane %v2752_v61, 4  ;;  %v2698_v57 = vrot.slane %v2697_v63, 4 }
 0xeb0   :  { %v2715_v4 = vrot.slane %v2714_v54, 1  ;;  %v2770_v30 = vrot.slane %v2769_v15, 1 }
 0xeb1   :  { %v2725_v31 = vadd.f32 %v2724_v27, %v2723_v60  ;;  %v2780_v0 = vadd.f32 %v2779_v23, %v2778_v29  ;;  %6529 = vmatmul.mubr.f32.gmra.mrb[166].mxu1 %v2971_v8  ;;  %v2754_v16 = vadd.f32 %v2753_v19, %v2752_v61  ;;  %v2699_v36 = vadd.f32 %v2698_v57, %v2697_v63  ;;  %v7392_v57 = vld [vmem:[%s9997_s8 + $0x28] sm:$0xff] }
 0xeb2   :  { %v2771_v38 = vadd.f32 %v2770_v30, %v2769_v15  ;;  %v2716_v5 = vadd.f32 %v2715_v4, %v2714_v54 }
 0xeb3   :  { %v2726_v3 = vrot.slane %v2725_v31, 2  ;;  %v2781_v50 = vrot.slane %v2780_v0, 2  ;;  %v2755_v45 = vrot.slane %v2754_v16, 2  ;;  %v2700_v22 = vrot.slane %v2699_v36, 2 }
 0xeb5   :  { %v2727_v52 = vadd.f32 %v2726_v3, %v2725_v31  ;;  %v2782_v58 = vadd.f32 %v2781_v50, %v2780_v0  ;;  %v2756_v44 = vadd.f32 %v2755_v45, %v2754_v16  ;;  %v2701_v53 = vadd.f32 %v2700_v22, %v2699_v36  ;;  %v7394_v16 = vld [vmem:[%s9997_s8 + $0x38] sm:$0xff] }
 0xeb7   :  { %v2728_v43 = vrot.slane %v2727_v52, 1  ;;  %v2783_v10 = vrot.slane %v2782_v58, 1  ;;  %v2757_v62 = vrot.slane %v2756_v44, 1  ;;  %v2702_v55 = vrot.slane %v2701_v53, 1 }
 0xeb9   :  { %v2729_v32 = vadd.f32 %v2728_v43, %v2727_v52  ;;  %v2784_v46 = vadd.f32 %v2783_v10, %v2782_v58  ;;  %v2758_v47 = vadd.f32 %v2757_v62, %v2756_v44  ;;  %v2703_v1 = vadd.f32 %v2702_v55, %v2701_v53  ;;  %v7393_v52 = vld [vmem:[%s9997_s8 + $0x30] sm:$0xff] }
 0xeba   :  { %v5239_v44 = vrot.slane %v9921_v37, 4 }
 0xebb   :  { %v2785_v28 = vmul.f32 %v2784_v46, %v2771_v38  ;;  %v2730_v48 = vmul.f32 %v2729_v32, %v2716_v5 }
 0xebd   :  { %7353 = vrsqrt.f32 %v2785_v28 }
 0xebe   :  { %7355 = vrsqrt.f32 %v2730_v48 }
 0xec7   :  { %v7354_v49 = vpop.eup %7353 }
 0xec8   :  { %v7356_v39 = vpop.eup %7355  ;;  %v2787_v7 = vmul.f32 %v7354_v49, %v2758_v47 }
 0xec9   :  { %v2732_v56 = vmul.f32 %v7356_v39, %v2703_v1 }
 0xeca   :  { %v2788_v24 = vsel %vm2733_vm3, %v2787_v7, 0.0 }
 0xecb   :  { %2789 = vadd.xlane.f32.xlu0 %v2788_v24  ;;  %v2734_v2 = vsel %vm2733_vm3, %v2732_v56, 0.0 }
 0xecc   :  { %2735 = vadd.xlane.f32.xlu1 %v2734_v2 }
 0xf58   :  { %v2790_v59 = vpop.xlane.xlu0 %2789 }
 0xf59   :  { %v2791_v12 = vrot.slane %v2790_v59, 4  ;;  %v2736_v34 = vpop.xlane.xlu1 %2735 }
 0xf5a   :  { %v2737_v51 = vrot.slane %v2736_v34, 4 }
 0xf5b   :  { %v2792_v14 = vadd.f32 %v2791_v12, %v2790_v59 }
 0xf5c   :  { %v2738_v63 = vadd.f32 %v2737_v51, %v2736_v34 }
 0xf5d   :  { %v2793_v60 = vrot.slane %v2792_v14, 2 }
 0xf5e   :  { %v2739_v61 = vrot.slane %v2738_v63, 2 }
 0xf5f   :  { %v2794_v29 = vadd.f32 %v2793_v60, %v2792_v14 }
 0xf60   :  { %v2740_v27 = vadd.f32 %v2739_v61, %v2738_v63 }
 0xf61   :  { %v2795_v23 = vrot.slane %v2794_v29, 1 }
 0xf62   :  { %v2741_v18 = vrot.slane %v2740_v27, 1 }
 0xf63   :  { %v2796_v8 = vadd.f32 %v2795_v23, %v2794_v29 }
 0xf64   :  { %v2742_v54 = vadd.f32 %v2741_v18, %v2740_v27 }
 0xf66   :  { %6817 = vpush %v2742_v54 }
 0xf67   :  { %6819 = vpush %v2796_v8 }
 0xf74   :  { %v6475_v15 = vpop.f32.mrb[156].mxu0 }
 0xf75   :  { %v4801_v31 = vpop.f32.mrb[157].mxu0 }
 0xf76   :  { %v6769_v0 = vpack.c.bf16 %v6475_v15, %v4801_v31 }
 0xf78   :  { %v6478_v19 = vpop.f32.mrb[158].mxu0  ;;  %6770 = vmatprep.subr.bf16.mxu0 %v6769_v0 }
 0xf79   :  { %v4811_v3 = vpop.f32.mrb[159].mxu0  ;;  %6772 = vmatpush3.bf16.msra.mxu0 %v6769_v0 }
 0xf7a   :  { %v6773_v50 = vpack.c.bf16 %v6478_v19, %v4811_v3 }
 0xf7c   :  { %6774 = vmatprep.subr.bf16.mxu0 %v6773_v50 }
 0xf7d   :  { %6776 = vmatpush3.bf16.msra.mxu0 %v6773_v50 }
 0xf80   :  { %6488 = vmatmul.mubr.msk.f32.vlgmr.msra.gmra.mrb[160].mxu0 %vm1006_vm2, %v7392_v57  ;;  %v6527_v4 = vpop.f32.mrb[164].mxu1 }
 0xf81   :  { %v5115_v30 = vpop.f32.mrb[165].mxu1  ;;  %6490 = vmatprep.mubr.msk.f32.mxu0 %vm1006_vm2, %v7393_v52 }
 0xf82   :  { %v6809_v58 = vpack.c.bf16 %v6527_v4, %v5115_v30 }
 0xf84   :  { %6491 = vmatmul.mubr.msk.f32.gmra.mrb[162].mxu0 %vm1006_vm2, %v7394_v16  ;;  %v6530_v43 = vpop.f32.mrb[166].mxu1  ;;  %6810 = vmatprep.subr.bf16.mxu0 %v6809_v58 }
 0xf85   :  { %v5125_v10 = vpop.f32.mrb[167].mxu1  ;;  %6812 = vmatpush3.bf16.msra.mxu0 %v6809_v58  ;;  %6539 = vmatprep.mubr.msk.f32.mxu0 %vm1006_vm2, %v9917_v42 }
 0xf86   :  { %v6813_v36 = vpack.c.bf16 %v6530_v43, %v5125_v10 }
 0xf88   :  { %6814 = vmatprep.subr.bf16.mxu0 %v6813_v36 }
 0xf89   :  { %6816 = vmatpush3.bf16.msra.mxu0 %v6813_v36 }
 0xf8c   :  { %6540 = vmatmul.mubr.msk.f32.vlgmr.msra.gmra.mrb[164].mxu0 %vm1006_vm2, %v7392_v57 }
 0xf8d   :  { %6542 = vmatprep.mubr.msk.f32.mxu0 %vm1006_vm2, %v7393_v52 }
 0xf90   :  { %6543 = vmatmul.mubr.msk.f32.gmra.mrb[166].mxu0 %vm1006_vm2, %v7394_v16 }
 0xf97   :  { %s6818_s12 = spop %6817 }
 0xf98   :  { %2745 = sst [smem:[#allocation2]] %s6818_s12  ;;  %s6820_s8 = spop %6819 }
 0xf99   :  { %2799 = sst [smem:[#allocation2 + $0x1]] %s6820_s8 }
0x1053   :  { %v6489_v32 = vpop.f32.mrb[160].mxu0 }
0x1054   :  { %v4892_v46 = vadd.f32 %v6489_v32, %v9834_v17  ;;  %v4886_v38 = vpop.f32.mrb[161].mxu0 }
0x1055   :  { %v4887_v5 = vadd.f32 %v4886_v38, %v9857_v25 }
0x1056   :  { %v5220_v42 = vmul.f32 %v4892_v46, %v9845_v6  ;;  %v5246_v45 = vmul.f32 %v4892_v46, %v4892_v46  ;;  %v5240_v6 = vadd.f32 %v5239_v44, %v9921_v37 }
0x1057   :  { %v5219_v28 = vmul.f32 %v4887_v5, %v9870_v9  ;;  %v5245_v22 = vmul.f32 %v4887_v5, %v4887_v5  ;;  %v6492_v48 = vpop.f32.mrb[162].mxu0 }
0x1058   :  { %v4902_v53 = vadd.f32 %v6492_v48, %v9912_v35  ;;  %v4896_v62 = vpop.f32.mrb[163].mxu0  ;;  %v5241_v59 = vrot.slane %v5240_v6, 2 }
0x1059   :  { %v5223_v55 = vadd.f32 %v5220_v42, %v5219_v28  ;;  %v5249_v47 = vadd.f32 %v5246_v45, %v5245_v22  ;;  %v4897_v49 = vadd.f32 %v4896_v62, %v9893_v40 }
0x105a   :  { %v5222_v1 = vmul.f32 %v4902_v53, %v9883_v21  ;;  %v5248_v39 = vmul.f32 %v4902_v53, %v4902_v53  ;;  %v5242_v29 = vadd.f32 %v5241_v59, %v5240_v6 }
0x105b   :  { %v5221_v7 = vmul.f32 %v4897_v49, %v9886_v20  ;;  %v5247_v56 = vmul.f32 %v4897_v49, %v4897_v49  ;;  %v5293_v20 = vrot.slane %v9931_v26, 4 }
0x105c   :  { %v5243_v3 = vrot.slane %v5242_v29, 1 }
0x105d   :  { %v5224_v9 = vadd.f32 %v5223_v55, %v5221_v7  ;;  %v5250_v24 = vadd.f32 %v5249_v47, %v5247_v56  ;;  %v5294_v19 = vadd.f32 %v5293_v20, %v9931_v26 }
0x105e   :  { %v5244_v43 = vadd.f32 %v5243_v3, %v5242_v29 }
0x105f   :  { %v5225_v2 = vadd.f32 %v5224_v9, %v5222_v1  ;;  %v5251_v12 = vadd.f32 %v5250_v24, %v5248_v39  ;;  %v6541_v34 = vpop.f32.mrb[164].mxu0  ;;  %v5295_v16 = vrot.slane %v5294_v19, 2 }
0x1060   :  { %v5206_v51 = vadd.f32 %v6541_v34, %v9834_v17  ;;  %v5200_v14 = vpop.f32.mrb[165].mxu0 }
0x1061   :  { %v5252_v63 = vrot.slane %v5251_v12, 4  ;;  %v5201_v60 = vadd.f32 %v5200_v14, %v9857_v25  ;;  %v5226_v8 = vrot.slane %v5225_v2, 4  ;;  %v5296_v38 = vadd.f32 %v5295_v16, %v5294_v19 }
0x1062   :  { %v5274_v21 = vmul.f32 %v5206_v51, %v9848_v41  ;;  %v5300_v61 = vmul.f32 %v5206_v51, %v5206_v51 }
0x1063   :  { %v5253_v37 = vadd.f32 %v5252_v63, %v5251_v12  ;;  %v5273_v27 = vmul.f32 %v5201_v60, %v9873_v13  ;;  %v5299_v23 = vmul.f32 %v5201_v60, %v5201_v60  ;;  %v6544_v18 = vpop.f32.mrb[166].mxu0  ;;  %v5227_v4 = vadd.f32 %v5226_v8, %v5225_v2 }
0x1064   :  { %v5216_v54 = vadd.f32 %v6544_v18, %v9912_v35  ;;  %v5210_v15 = vpop.f32.mrb[167].mxu0  ;;  %v5297_v45 = vrot.slane %v5296_v38, 1 }
0x1065   :  { %v5254_v17 = vrot.slane %v5253_v37, 2  ;;  %v5277_v31 = vadd.f32 %v5274_v21, %v5273_v27  ;;  %v5303_v0 = vadd.f32 %v5300_v61, %v5299_v23  ;;  %v5211_v25 = vadd.f32 %v5210_v15, %v9893_v40 }
0x1066   :  { %v5276_v41 = vmul.f32 %v5216_v54, %v9907_v11  ;;  %v5302_v52 = vmul.f32 %v5216_v54, %v5216_v54  ;;  %v5228_v40 = vrot.slane %v5227_v4, 2  ;;  %v5298_v53 = vadd.f32 %v5297_v45, %v5296_v38 }
0x1067   :  { %v5255_v50 = vadd.f32 %v5254_v17, %v5253_v37  ;;  %v5275_v57 = vmul.f32 %v5211_v25, %v9900_v33  ;;  %v5301_v13 = vmul.f32 %v5211_v25, %v5211_v25 }
0x1068   :  { %v5229_v42 = vadd.f32 %v5228_v40, %v5227_v4 }
0x1069   :  { %v5256_v30 = vrot.slane %v5255_v50, 1  ;;  %v5278_v58 = vadd.f32 %v5277_v31, %v5275_v57  ;;  %v5304_v35 = vadd.f32 %v5303_v0, %v5301_v13 }
0x106a   :  { %v5230_v48 = vrot.slane %v5229_v42, 1 }
0x106b   :  { %v5257_v10 = vadd.f32 %v5256_v30, %v5255_v50  ;;  %v5279_v36 = vadd.f32 %v5278_v58, %v5276_v41  ;;  %v5305_v32 = vadd.f32 %v5304_v35, %v5302_v52 }
0x106c   :  { %v5231_v55 = vadd.f32 %v5230_v48, %v5229_v42 }
0x106d   :  { %v5258_v46 = vmul.f32 %v5257_v10, %v5244_v43  ;;  %v5306_v11 = vrot.slane %v5305_v32, 4  ;;  %v5280_v5 = vrot.slane %v5279_v36, 4 }
0x106f   :  { %v5307_v26 = vadd.f32 %v5306_v11, %v5305_v32  ;;  %7357 = vrsqrt.f32 %v5258_v46  ;;  %v5281_v22 = vadd.f32 %v5280_v5, %v5279_v36 }
0x1071   :  { %v5308_v33 = vrot.slane %v5307_v26, 2  ;;  %v5282_v47 = vrot.slane %v5281_v22, 2 }
0x1073   :  { %v5309_v28 = vadd.f32 %v5308_v33, %v5307_v26  ;;  %v5283_v6 = vadd.f32 %v5282_v47, %v5281_v22 }
0x1075   :  { %v5310_v44 = vrot.slane %v5309_v28, 1  ;;  %v5284_v56 = vrot.slane %v5283_v6, 1 }
0x1077   :  { %v5311_v62 = vadd.f32 %v5310_v44, %v5309_v28  ;;  %v5285_v9 = vadd.f32 %v5284_v56, %v5283_v6 }
0x1079   :  { %v7358_v49 = vpop.eup %7357  ;;  %v5312_v1 = vmul.f32 %v5311_v62, %v5298_v53 }
0x107a   :  { %v5260_v39 = vmul.f32 %v7358_v49, %v5231_v55 }
0x107b   :  { %7359 = vrsqrt.f32 %v5312_v1 }
0x107c   :  { %v5261_v7 = vsel %vm2733_vm3, %v5260_v39, 0.0 }
0x107d   :  { %5262 = vadd.xlane.f32.xlu0 %v5261_v7 }
0x1085   :  { %v7360_v24 = vpop.eup %7359 }
0x1086   :  { %v5314_v2 = vmul.f32 %v7360_v24, %v5285_v9 }
0x1088   :  { %v5315_v59 = vsel %vm2733_vm3, %v5314_v2, 0.0 }
0x1089   :  { %5316 = vadd.xlane.f32.xlu1 %v5315_v59 }
0x110a   :  { %v5263_v12 = vpop.xlane.xlu0 %5262 }
0x110b   :  { %v5264_v34 = vrot.slane %v5263_v12, 4 }
0x110d   :  { %v5265_v51 = vadd.f32 %v5264_v34, %v5263_v12 }
0x110f   :  { %v5266_v14 = vrot.slane %v5265_v51, 2 }
0x1111   :  { %v5267_v63 = vadd.f32 %v5266_v14, %v5265_v51 }
0x1113   :  { %v5268_v60 = vrot.slane %v5267_v63, 1 }
0x1115   :  { %v5269_v21 = vadd.f32 %v5268_v60, %v5267_v63 }
0x1116   :  { %v5317_v61 = vpop.xlane.xlu1 %5316 }
0x1117   :  { %v5318_v20 = vrot.slane %v5317_v61, 4  ;;  %6821 = vpush %v5269_v21 }
0x1119   :  { %v5319_v29 = vadd.f32 %v5318_v20, %v5317_v61 }
0x111b   :  { %v5320_v37 = vrot.slane %v5319_v29, 2 }
0x111d   :  { %v5321_v27 = vadd.f32 %v5320_v37, %v5319_v29 }
0x111f   :  { %v5322_v23 = vrot.slane %v5321_v27, 1 }
0x1121   :  { %v5323_v18 = vadd.f32 %v5322_v23, %v5321_v27 }
0x1123   :  { %6823 = vpush %v5323_v18 }
0x1148   :  { %s6822_s5 = spop %6821 }
0x1149   :  { %5272 = sst [smem:[#allocation2 + $0x80]] %s6822_s5 }
0x1154   :  { %s6824_s13 = spop %6823 }
0x1155   :  { %5326 = sst [smem:[#allocation2 + $0x81]] %s6824_s13 }
0x1156   :  { %7404 = shalt.err (!%p7401_p2)
}
0x1157   :  { %s7410_s19 = smov [#allocation2]  }
0x1158   :  { %5334 = dma.smem_to_hbm %s7410_s19, 32, %s9999_s10, [#allocation3]  }
0x1159   :  { %7405 = dma.done.wait [#allocation3], 32  }
0x115a   :  { %7406 = vsyncadd [#allocation3], 4294967264 }
0x115b   :  { %5338 = sfence }
0x115c   :  { %5339 = vsyncpa [#allocation3], 1 }

</bundles_post_ra>
